<compile_context>
chip_gen: v7x
topology: tpu7x:2x2x1
jax: 0.10.0
libtpu: 0.0.40
codegen_flags: <defaults>
</compile_context>

<pallas_src>
import jax
import jax.numpy as jnp
from jax.experimental import pallas as pl
from jax.experimental.pallas import tpu as pltpu


def fire_kernel(x_ref, wsq_ref, bsq_ref, w1_ref, w3_ref, bex_ref, o_ref,
                pad_ref, slab_ref):
    # x_ref   : (Bt, H, W, Cin)      bf16  input activations (NHWC)
    # wsq_ref : (Cin, Cs)            bf16  squeeze 1x1 weight
    # bsq_ref : (1, Cs)              f32   squeeze bias
    # w1_ref  : (Cs, Ce)             bf16  expand_1x1 weight
    # w3_ref  : (9*Cs, Ce)           bf16  expand_3x3 im2col weight
    # bex_ref : (1, 2*Ce)            f32   fused expand bias [b1 | b3]
    # o_ref   : (Bt, H, W, 2*Ce)     f32   fused output [e1 | e3]
    # pad_ref : (Bt, H+2, W+2, Cs)   f32   zero-padded squeeze activations
    # slab_ref: (Bt*H*W, 9*Cs)       bf16  im2col slab (tap k in lanes k*Cs..)
    Bt, H, W, Cin = x_ref.shape
    Cs = wsq_ref.shape[1]
    Ce = w1_ref.shape[1]
    Co = 2 * Ce
    M = Bt * H * W

    # ---- squeeze: 1x1 conv + ReLU (one matmul over the whole batch tile) ----
    xf = x_ref[...].reshape(M, Cin)
    s = jnp.dot(xf, wsq_ref[...], preferred_element_type=jnp.float32)
    s = jnp.maximum(s + bsq_ref[...], 0.0)                      # (M, Cs) f32
    s_bf = s.astype(jnp.bfloat16)

    # ---- refresh only the 1-pixel border of the pad scratch.  The interior
    #      [:, 1:H+1, 1:W+1, :] is fully overwritten below every grid step and
    #      the border is never written elsewhere, so zeroing the ring is enough
    #      (and keeps the kernel safe under "parallel" batch semantics). ----
    pad_ref[:, 0:1, :, :] = jnp.zeros((Bt, 1, W + 2, Cs), pad_ref.dtype)
    pad_ref[:, H + 1:H + 2, :, :] = jnp.zeros((Bt, 1, W + 2, Cs), pad_ref.dtype)
    pad_ref[:, :, 0:1, :] = jnp.zeros((Bt, H + 2, 1, Cs), pad_ref.dtype)
    pad_ref[:, :, W + 1:W + 2, :] = jnp.zeros((Bt, H + 2, 1, Cs), pad_ref.dtype)
    pad_ref[:, 1:H + 1, 1:W + 1, :] = s.reshape(Bt, H, W, Cs)

    # ---- im2col: tap k = dy*3 + dx occupies lanes [k*Cs, (k+1)*Cs). ----
    for k in range(9):                                          # static unroll
        dy, dx = k // 3, k % 3
        win = pad_ref[:, dy:dy + H, dx:dx + W, :].reshape(M, Cs)
        slab_ref[:, k * Cs:(k + 1) * Cs] = win.astype(jnp.bfloat16)

    # ---- expand_1x1 (K=Cs) and expand_3x3 (K=9*Cs): two MXU matmuls,
    #      concatenated in-register, one bias+ReLU, one lane-dense store. ----
    e1 = jnp.dot(s_bf, w1_ref[...], preferred_element_type=jnp.float32)
    e3 = jnp.dot(slab_ref[...], w3_ref[...], preferred_element_type=jnp.float32)
    out = jnp.concatenate([e1, e3], axis=-1) + bex_ref[...]     # (M, 2*Ce)
    out = jnp.maximum(out, 0.0)
    o_ref[...] = out.reshape(Bt, H, W, Co)


def fire_pallas(x_nchw, params, *, bt_max=8):
    """Fire forward. x_nchw: (N, Cin, H, W) f32. Returns (N, 2*Ce, H, W) f32."""
    wsq, bsq, w1, b1, w3, b3 = params           # PyTorch (out, in, kh, kw) layout
    N, Cin, H, W = x_nchw.shape
    Cs = wsq.shape[0]
    Ce = w1.shape[0]
    Co = 2 * Ce

    # Batch tile: fold several images into one grid step (larger matmul M,
    # fewer grid steps).  Largest divisor of N that is <= bt_max.
    bt = max(d for d in range(1, min(N, bt_max) + 1) if N % d == 0)

    # NCHW -> NHWC; bf16 activations for the MXU (accumulation stays f32).
    # TODO(synk): if the surrounding network is NHWC, drop this transpose and
    # the final NHWC->NCHW transpose (each is a full HBM relayout pass).
    x = jnp.transpose(x_nchw, (0, 2, 3, 1)).astype(jnp.bfloat16)

    # Weights in matmul-friendly layouts (plain-JAX glue, done once).
    wsq_k = jnp.transpose(wsq[:, :, 0, 0], (1, 0)).astype(jnp.bfloat16)   # (Cin, Cs)
    w1_k = jnp.transpose(w1[:, :, 0, 0], (1, 0)).astype(jnp.bfloat16)     # (Cs, Ce)
    # im2col weight rows ordered (dy, dx, c) to match the slab lane layout.
    w3_k = jnp.transpose(w3, (2, 3, 1, 0)).reshape(9 * Cs, Ce).astype(jnp.bfloat16)
    bex = jnp.concatenate([b1, b3]).reshape(1, Co).astype(jnp.float32)
    bsq_k = bsq.reshape(1, Cs).astype(jnp.float32)

    grid_spec = pltpu.PrefetchScalarGridSpec(
        num_scalar_prefetch=0,
        grid=(N // bt,),
        in_specs=[
            pl.BlockSpec((bt, H, W, Cin), lambda b: (b, 0, 0, 0)),
            pl.BlockSpec((Cin, Cs), lambda b: (0, 0)),
            pl.BlockSpec((1, Cs), lambda b: (0, 0)),
            pl.BlockSpec((Cs, Ce), lambda b: (0, 0)),
            pl.BlockSpec((9 * Cs, Ce), lambda b: (0, 0)),
            pl.BlockSpec((1, Co), lambda b: (0, 0)),
        ],
        out_specs=pl.BlockSpec((bt, H, W, Co), lambda b: (b, 0, 0, 0)),
        scratch_shapes=[
            pltpu.VMEM((bt, H + 2, W + 2, Cs), jnp.float32),    # padded squeeze act
            pltpu.VMEM((bt * H * W, 9 * Cs), jnp.bfloat16),     # im2col slab
        ],
    )

    out_nhwc = pl.pallas_call(
        fire_kernel,
        out_shape=jax.ShapeDtypeStruct((N, H, W, Co), jnp.float32),
        grid_spec=grid_spec,
        compiler_params=pltpu.CompilerParams(
            dimension_semantics=("parallel",)),   # batch steps are independent
    )(x, wsq_k, bsq_k, w1_k, w3_k, bex)

    # Channel order [e1 | e3] matches torch.cat(dim=1); back to NCHW.
    return jnp.transpose(out_nhwc, (0, 3, 1, 2))


def fire_reference(x_nchw, params):
    """Pure-JAX reference mirroring the PyTorch module (NCHW convs)."""
    wsq, bsq, w1, b1, w3, b3 = params

    def conv(x, w, b, pad):
        y = jax.lax.conv_general_dilated(
            x, w, window_strides=(1, 1),
            padding=[(pad, pad), (pad, pad)],
            dimension_numbers=("NCHW", "OIHW", "NCHW"),
            precision=jax.lax.Precision.HIGHEST)
        return jax.nn.relu(y + b[None, :, None, None])

    s = conv(x_nchw, wsq, bsq, 0)
    e1 = conv(s, w1, b1, 0)
    e3 = conv(s, w3, b3, 1)
    return jnp.concatenate([e1, e3], axis=1)


def init_fire_params(key, in_channels, squeeze_channels):
    """Deterministic synthetic params in PyTorch Conv2d (out,in,kh,kw) layout."""
    ce = squeeze_channels * 4
    ks = jax.random.split(key, 6)
    scale = 0.1
    wsq = scale * jax.random.normal(ks[0], (squeeze_channels, in_channels, 1, 1), jnp.float32)
    bsq = scale * jax.random.normal(ks[1], (squeeze_channels,), jnp.float32)
    w1 = scale * jax.random.normal(ks[2], (ce, squeeze_channels, 1, 1), jnp.float32)
    b1 = scale * jax.random.normal(ks[3], (ce,), jnp.float32)
    w3 = scale * jax.random.normal(ks[4], (ce, squeeze_channels, 3, 3), jnp.float32)
    b3 = scale * jax.random.normal(ks[5], (ce,), jnp.float32)
    return (wsq, bsq, w1, b1, w3, b3)


if __name__ == "__main__":
    key = jax.random.PRNGKey(0)
    k_x, k_p = jax.random.split(key)

    N, Cin, H, W = 2, 4, 16, 16
    squeeze_channels = 8            # expand channels = 32 each, fused output = 64

    x = jax.random.normal(k_x, (N, Cin, H, W), jnp.float32)
    params = init_fire_params(k_p, Cin, squeeze_channels)

    out = jax.jit(fire_pallas)(x, params)
    out = jax.block_until_ready(out)

    ref = fire_reference(x, params)
    assert out.shape == (N, 8 * squeeze_channels, H, W), out.shape
    assert jnp.allclose(out, ref, atol=2e-2, rtol=2e-2), (
        f"max abs diff {float(jnp.max(jnp.abs(out - ref)))}")

    print("KERNEL_OK")
</pallas_src>

<mosaic_0001>
module attributes {stable_mosaic.version = 11 : i64} {
  func.func @fire_kernel(%arg0: i32, %arg1: memref<2x16x16x4xbf16, #tpu.memory_space<vmem>>, %arg2: memref<4x8xbf16, #tpu.memory_space<vmem>>, %arg3: memref<1x8xf32, #tpu.memory_space<vmem>>, %arg4: memref<8x32xbf16, #tpu.memory_space<vmem>>, %arg5: memref<72x32xbf16, #tpu.memory_space<vmem>>, %arg6: memref<1x64xf32, #tpu.memory_space<vmem>>, %arg7: memref<2x16x16x64xf32, #tpu.memory_space<vmem>>, %arg8: memref<2x18x18x8xf32, #tpu.memory_space<vmem>>, %arg9: memref<512x72xbf16, #tpu.memory_space<vmem>>) attributes {dimension_semantics = [#tpu.dimension_semantics<parallel>], iteration_bounds = array<i64: 1>, scalar_prefetch = 0 : i64, scratch_operands = 2 : i64, tpu.core_type = #tpu.core_type<tc>, window_params = [{transform_indices = @transform_0, window_bounds = array<i64: 2, 16, 16, 4>}, {pipeline_mode = #tpu.pipeline_mode<synchronous>, transform_indices = @transform_1, window_bounds = array<i64: 4, 8>}, {pipeline_mode = #tpu.pipeline_mode<synchronous>, transform_indices = @transform_2, window_bounds = array<i64: 1, 8>}, {pipeline_mode = #tpu.pipeline_mode<synchronous>, transform_indices = @transform_3, window_bounds = array<i64: 8, 32>}, {pipeline_mode = #tpu.pipeline_mode<synchronous>, transform_indices = @transform_4, window_bounds = array<i64: 72, 32>}, {pipeline_mode = #tpu.pipeline_mode<synchronous>, transform_indices = @transform_5, window_bounds = array<i64: 1, 64>}, {transform_indices = @transform_6, window_bounds = array<i64: 2, 16, 16, 64>}]} {
    %c0 = arith.constant 0 : index
    %c0_0 = arith.constant 0 : index
    %c0_1 = arith.constant 0 : index
    %c0_2 = arith.constant 0 : index
    %0 = vector.load %arg1[%c0, %c0_0, %c0_1, %c0_2] : memref<2x16x16x4xbf16, #tpu.memory_space<vmem>>, vector<2x16x16x4xbf16>
    %1 = vector.shape_cast %0 : vector<2x16x16x4xbf16> to vector<512x4xbf16>
    %c0_3 = arith.constant 0 : index
    %c0_4 = arith.constant 0 : index
    %2 = vector.load %arg2[%c0_3, %c0_4] : memref<4x8xbf16, #tpu.memory_space<vmem>>, vector<4x8xbf16>
    %cst = arith.constant dense<0.000000e+00> : vector<512x8xf32>
    %3 = tpu.matmul %1, %2, %cst {dimension_numbers = #tpu.dot_dimension_numbers<[1], [0], [0], [1], [0, 0, 1, 1], [], []>} : vector<512x4xbf16>, vector<4x8xbf16>, vector<512x8xf32> -> vector<512x8xf32>
    %c0_5 = arith.constant 0 : index
    %c0_6 = arith.constant 0 : index
    %4 = vector.load %arg3[%c0_5, %c0_6] : memref<1x8xf32, #tpu.memory_space<vmem>>, vector<1x8xf32>
    %5 = vector.broadcast %4 : vector<1x8xf32> to vector<512x8xf32>
    %6 = arith.addf %3, %5 : vector<512x8xf32>
    %cst_7 = arith.constant 0.000000e+00 : f32
    %7 = vector.broadcast %cst_7 : f32 to vector<512x8xf32>
    %8 = arith.maximumf %6, %7 : vector<512x8xf32>
    %9 = arith.truncf %8 : vector<512x8xf32> to vector<512x8xbf16>
    %cst_8 = arith.constant 0.000000e+00 : f32
    %10 = vector.broadcast %cst_8 : f32 to vector<2x1x18x8xf32>
    %c0_9 = arith.constant 0 : index
    %c0_10 = arith.constant 0 : index
    %c0_11 = arith.constant 0 : index
    %c0_12 = arith.constant 0 : index
    %11 = vector.load %arg8[%c0_9, %c0_10, %c0_11, %c0_12] : memref<2x18x18x8xf32, #tpu.memory_space<vmem>>, vector<2x1x18x8xf32>
    tpu.vector_store %arg8[%c0_9, %c0_10, %c0_11, %c0_12], %10 {strides = array<i32>} : memref<2x18x18x8xf32, #tpu.memory_space<vmem>>, vector<2x1x18x8xf32>,
    %cst_13 = arith.constant 0.000000e+00 : f32
    %12 = vector.broadcast %cst_13 : f32 to vector<2x1x18x8xf32>
    %c0_14 = arith.constant 0 : index
    %c17 = arith.constant 17 : index
    %c0_15 = arith.constant 0 : index
    %c0_16 = arith.constant 0 : index
    %13 = vector.load %arg8[%c0_14, %c17, %c0_15, %c0_16] : memref<2x18x18x8xf32, #tpu.memory_space<vmem>>, vector<2x1x18x8xf32>
    tpu.vector_store %arg8[%c0_14, %c17, %c0_15, %c0_16], %12 {strides = array<i32>} : memref<2x18x18x8xf32, #tpu.memory_space<vmem>>, vector<2x1x18x8xf32>,
    %cst_17 = arith.constant 0.000000e+00 : f32
    %14 = vector.broadcast %cst_17 : f32 to vector<2x18x1x8xf32>
    %c0_18 = arith.constant 0 : index
    %c0_19 = arith.constant 0 : index
    %c0_20 = arith.constant 0 : index
    %c0_21 = arith.constant 0 : index
    %15 = vector.load %arg8[%c0_18, %c0_19, %c0_20, %c0_21] : memref<2x18x18x8xf32, #tpu.memory_space<vmem>>, vector<2x18x1x8xf32>
    tpu.vector_store %arg8[%c0_18, %c0_19, %c0_20, %c0_21], %14 {strides = array<i32>} : memref<2x18x18x8xf32, #tpu.memory_space<vmem>>, vector<2x18x1x8xf32>,
    %cst_22 = arith.constant 0.000000e+00 : f32
    %16 = vector.broadcast %cst_22 : f32 to vector<2x18x1x8xf32>
    %c0_23 = arith.constant 0 : index
    %c0_24 = arith.constant 0 : index
    %c17_25 = arith.constant 17 : index
    %c0_26 = arith.constant 0 : index
    %17 = vector.load %arg8[%c0_23, %c0_24, %c17_25, %c0_26] : memref<2x18x18x8xf32, #tpu.memory_space<vmem>>, vector<2x18x1x8xf32>
    tpu.vector_store %arg8[%c0_23, %c0_24, %c17_25, %c0_26], %16 {strides = array<i32>} : memref<2x18x18x8xf32, #tpu.memory_space<vmem>>, vector<2x18x1x8xf32>,
    %18 = vector.shape_cast %8 : vector<512x8xf32> to vector<2x16x16x8xf32>
    %c0_27 = arith.constant 0 : index
    %c1 = arith.constant 1 : index
    %c1_28 = arith.constant 1 : index
    %c0_29 = arith.constant 0 : index
    %19 = vector.load %arg8[%c0_27, %c1, %c1_28, %c0_29] : memref<2x18x18x8xf32, #tpu.memory_space<vmem>>, vector<2x16x16x8xf32>
    tpu.vector_store %arg8[%c0_27, %c1, %c1_28, %c0_29], %18 {strides = array<i32>} : memref<2x18x18x8xf32, #tpu.memory_space<vmem>>, vector<2x16x16x8xf32>,
    %c0_30 = arith.constant 0 : index
    %c0_31 = arith.constant 0 : index
    %c0_32 = arith.constant 0 : index
    %c0_33 = arith.constant 0 : index
    %20 = vector.load %arg8[%c0_30, %c0_31, %c0_32, %c0_33] : memref<2x18x18x8xf32, #tpu.memory_space<vmem>>, vector<2x16x16x8xf32>
    %21 = vector.shape_cast %20 : vector<2x16x16x8xf32> to vector<512x8xf32>
    %22 = arith.truncf %21 : vector<512x8xf32> to vector<512x8xbf16>
    %c0_34 = arith.constant 0 : index
    %c0_35 = arith.constant 0 : index
    %23 = vector.load %arg9[%c0_34, %c0_35] : memref<512x72xbf16, #tpu.memory_space<vmem>>, vector<512x8xbf16>
    tpu.vector_store %arg9[%c0_34, %c0_35], %22 {strides = array<i32>} : memref<512x72xbf16, #tpu.memory_space<vmem>>, vector<512x8xbf16>,
    %c0_36 = arith.constant 0 : index
    %c0_37 = arith.constant 0 : index
    %c1_38 = arith.constant 1 : index
    %c0_39 = arith.constant 0 : index
    %24 = vector.load %arg8[%c0_36, %c0_37, %c1_38, %c0_39] : memref<2x18x18x8xf32, #tpu.memory_space<vmem>>, vector<2x16x16x8xf32>
    %25 = vector.shape_cast %24 : vector<2x16x16x8xf32> to vector<512x8xf32>
    %26 = arith.truncf %25 : vector<512x8xf32> to vector<512x8xbf16>
    %c0_40 = arith.constant 0 : index
    %c8 = arith.constant 8 : index
    %27 = vector.load %arg9[%c0_40, %c8] : memref<512x72xbf16, #tpu.memory_space<vmem>>, vector<512x8xbf16>
    tpu.vector_store %arg9[%c0_40, %c8], %26 {strides = array<i32>} : memref<512x72xbf16, #tpu.memory_space<vmem>>, vector<512x8xbf16>,
    %c0_41 = arith.constant 0 : index
    %c0_42 = arith.constant 0 : index
    %c2 = arith.constant 2 : index
    %c0_43 = arith.constant 0 : index
    %28 = vector.load %arg8[%c0_41, %c0_42, %c2, %c0_43] : memref<2x18x18x8xf32, #tpu.memory_space<vmem>>, vector<2x16x16x8xf32>
    %29 = vector.shape_cast %28 : vector<2x16x16x8xf32> to vector<512x8xf32>
    %30 = arith.truncf %29 : vector<512x8xf32> to vector<512x8xbf16>
    %c0_44 = arith.constant 0 : index
    %c16 = arith.constant 16 : index
    %31 = vector.load %arg9[%c0_44, %c16] : memref<512x72xbf16, #tpu.memory_space<vmem>>, vector<512x8xbf16>
    tpu.vector_store %arg9[%c0_44, %c16], %30 {strides = array<i32>} : memref<512x72xbf16, #tpu.memory_space<vmem>>, vector<512x8xbf16>,
    %c0_45 = arith.constant 0 : index
    %c1_46 = arith.constant 1 : index
    %c0_47 = arith.constant 0 : index
    %c0_48 = arith.constant 0 : index
    %32 = vector.load %arg8[%c0_45, %c1_46, %c0_47, %c0_48] : memref<2x18x18x8xf32, #tpu.memory_space<vmem>>, vector<2x16x16x8xf32>
    %33 = vector.shape_cast %32 : vector<2x16x16x8xf32> to vector<512x8xf32>
    %34 = arith.truncf %33 : vector<512x8xf32> to vector<512x8xbf16>
    %c0_49 = arith.constant 0 : index
    %c24 = arith.constant 24 : index
    %35 = vector.load %arg9[%c0_49, %c24] : memref<512x72xbf16, #tpu.memory_space<vmem>>, vector<512x8xbf16>
    tpu.vector_store %arg9[%c0_49, %c24], %34 {strides = array<i32>} : memref<512x72xbf16, #tpu.memory_space<vmem>>, vector<512x8xbf16>,
    %c0_50 = arith.constant 0 : index
    %c1_51 = arith.constant 1 : index
    %c1_52 = arith.constant 1 : index
    %c0_53 = arith.constant 0 : index
    %36 = vector.load %arg8[%c0_50, %c1_51, %c1_52, %c0_53] : memref<2x18x18x8xf32, #tpu.memory_space<vmem>>, vector<2x16x16x8xf32>
    %37 = vector.shape_cast %36 : vector<2x16x16x8xf32> to vector<512x8xf32>
    %38 = arith.truncf %37 : vector<512x8xf32> to vector<512x8xbf16>
    %c0_54 = arith.constant 0 : index
    %c32 = arith.constant 32 : index
    %39 = vector.load %arg9[%c0_54, %c32] : memref<512x72xbf16, #tpu.memory_space<vmem>>, vector<512x8xbf16>
    tpu.vector_store %arg9[%c0_54, %c32], %38 {strides = array<i32>} : memref<512x72xbf16, #tpu.memory_space<vmem>>, vector<512x8xbf16>,
    %c0_55 = arith.constant 0 : index
    %c1_56 = arith.constant 1 : index
    %c2_57 = arith.constant 2 : index
    %c0_58 = arith.constant 0 : index
    %40 = vector.load %arg8[%c0_55, %c1_56, %c2_57, %c0_58] : memref<2x18x18x8xf32, #tpu.memory_space<vmem>>, vector<2x16x16x8xf32>
    %41 = vector.shape_cast %40 : vector<2x16x16x8xf32> to vector<512x8xf32>
    %42 = arith.truncf %41 : vector<512x8xf32> to vector<512x8xbf16>
    %c0_59 = arith.constant 0 : index
    %c40 = arith.constant 40 : index
    %43 = vector.load %arg9[%c0_59, %c40] : memref<512x72xbf16, #tpu.memory_space<vmem>>, vector<512x8xbf16>
    tpu.vector_store %arg9[%c0_59, %c40], %42 {strides = array<i32>} : memref<512x72xbf16, #tpu.memory_space<vmem>>, vector<512x8xbf16>,
    %c0_60 = arith.constant 0 : index
    %c2_61 = arith.constant 2 : index
    %c0_62 = arith.constant 0 : index
    %c0_63 = arith.constant 0 : index
    %44 = vector.load %arg8[%c0_60, %c2_61, %c0_62, %c0_63] : memref<2x18x18x8xf32, #tpu.memory_space<vmem>>, vector<2x16x16x8xf32>
    %45 = vector.shape_cast %44 : vector<2x16x16x8xf32> to vector<512x8xf32>
    %46 = arith.truncf %45 : vector<512x8xf32> to vector<512x8xbf16>
    %c0_64 = arith.constant 0 : index
    %c48 = arith.constant 48 : index
    %47 = vector.load %arg9[%c0_64, %c48] : memref<512x72xbf16, #tpu.memory_space<vmem>>, vector<512x8xbf16>
    tpu.vector_store %arg9[%c0_64, %c48], %46 {strides = array<i32>} : memref<512x72xbf16, #tpu.memory_space<vmem>>, vector<512x8xbf16>,
    %c0_65 = arith.constant 0 : index
    %c2_66 = arith.constant 2 : index
    %c1_67 = arith.constant 1 : index
    %c0_68 = arith.constant 0 : index
    %48 = vector.load %arg8[%c0_65, %c2_66, %c1_67, %c0_68] : memref<2x18x18x8xf32, #tpu.memory_space<vmem>>, vector<2x16x16x8xf32>
    %49 = vector.shape_cast %48 : vector<2x16x16x8xf32> to vector<512x8xf32>
    %50 = arith.truncf %49 : vector<512x8xf32> to vector<512x8xbf16>
    %c0_69 = arith.constant 0 : index
    %c56 = arith.constant 56 : index
    %51 = vector.load %arg9[%c0_69, %c56] : memref<512x72xbf16, #tpu.memory_space<vmem>>, vector<512x8xbf16>
    tpu.vector_store %arg9[%c0_69, %c56], %50 {strides = array<i32>} : memref<512x72xbf16, #tpu.memory_space<vmem>>, vector<512x8xbf16>,
    %c0_70 = arith.constant 0 : index
    %c2_71 = arith.constant 2 : index
    %c2_72 = arith.constant 2 : index
    %c0_73 = arith.constant 0 : index
    %52 = vector.load %arg8[%c0_70, %c2_71, %c2_72, %c0_73] : memref<2x18x18x8xf32, #tpu.memory_space<vmem>>, vector<2x16x16x8xf32>
    %53 = vector.shape_cast %52 : vector<2x16x16x8xf32> to vector<512x8xf32>
    %54 = arith.truncf %53 : vector<512x8xf32> to vector<512x8xbf16>
    %c0_74 = arith.constant 0 : index
    %c64 = arith.constant 64 : index
    %55 = vector.load %arg9[%c0_74, %c64] : memref<512x72xbf16, #tpu.memory_space<vmem>>, vector<512x8xbf16>
    tpu.vector_store %arg9[%c0_74, %c64], %54 {strides = array<i32>} : memref<512x72xbf16, #tpu.memory_space<vmem>>, vector<512x8xbf16>,
    %c0_75 = arith.constant 0 : index
    %c0_76 = arith.constant 0 : index
    %56 = vector.load %arg4[%c0_75, %c0_76] : memref<8x32xbf16, #tpu.memory_space<vmem>>, vector<8x32xbf16>
    %cst_77 = arith.constant dense<0.000000e+00> : vector<512x32xf32>
    %57 = tpu.matmul %9, %56, %cst_77 {dimension_numbers = #tpu.dot_dimension_numbers<[1], [0], [0], [1], [0, 0, 1, 1], [], []>} : vector<512x8xbf16>, vector<8x32xbf16>, vector<512x32xf32> -> vector<512x32xf32>
    %c0_78 = arith.constant 0 : index
    %c0_79 = arith.constant 0 : index
    %58 = vector.load %arg9[%c0_78, %c0_79] : memref<512x72xbf16, #tpu.memory_space<vmem>>, vector<512x72xbf16>
    %c0_80 = arith.constant 0 : index
    %c0_81 = arith.constant 0 : index
    %59 = vector.load %arg5[%c0_80, %c0_81] : memref<72x32xbf16, #tpu.memory_space<vmem>>, vector<72x32xbf16>
    %cst_82 = arith.constant dense<0.000000e+00> : vector<512x32xf32>
    %60 = tpu.matmul %58, %59, %cst_82 {dimension_numbers = #tpu.dot_dimension_numbers<[1], [0], [0], [1], [0, 0, 1, 1], [], []>} : vector<512x72xbf16>, vector<72x32xbf16>, vector<512x32xf32> -> vector<512x32xf32>
    %61 = tpu.concatenate %57, %60 in 1 : vector<512x32xf32>, vector<512x32xf32> -> vector<512x64xf32>
    %c0_83 = arith.constant 0 : index
    %c0_84 = arith.constant 0 : index
    %62 = vector.load %arg6[%c0_83, %c0_84] : memref<1x64xf32, #tpu.memory_space<vmem>>, vector<1x64xf32>
    %63 = vector.broadcast %62 : vector<1x64xf32> to vector<512x64xf32>
    %64 = arith.addf %61, %63 : vector<512x64xf32>
    %cst_85 = arith.constant 0.000000e+00 : f32
    %65 = vector.broadcast %cst_85 : f32 to vector<512x64xf32>
    %66 = arith.maximumf %64, %65 : vector<512x64xf32>
    %67 = vector.shape_cast %66 : vector<512x64xf32> to vector<2x16x16x64xf32>
    %c0_86 = arith.constant 0 : index
    %c0_87 = arith.constant 0 : index
    %c0_88 = arith.constant 0 : index
    %c0_89 = arith.constant 0 : index
    %68 = vector.load %arg7[%c0_86, %c0_87, %c0_88, %c0_89] : memref<2x16x16x64xf32, #tpu.memory_space<vmem>>, vector<2x16x16x64xf32>
    tpu.vector_store %arg7[%c0_86, %c0_87, %c0_88, %c0_89], %67 {strides = array<i32>} : memref<2x16x16x64xf32, #tpu.memory_space<vmem>>, vector<2x16x16x64xf32>,
    return
  }
  func.func @transform_0(%arg0: i32) -> (i32, i32, i32, i32) {
    %c0_i32 = arith.constant 0 : i32
    %c0_i32_0 = arith.constant 0 : i32
    %c0_i32_1 = arith.constant 0 : i32
    %c0_i32_2 = arith.constant 0 : i32
    return %arg0, %c0_i32, %c0_i32_0, %c0_i32_1 : i32, i32, i32, i32
  }
  func.func @transform_1(%arg0: i32) -> (i32, i32) {
    %c0_i32 = arith.constant 0 : i32
    %c0_i32_0 = arith.constant 0 : i32
    %c0_i32_1 = arith.constant 0 : i32
    return %c0_i32, %c0_i32_0 : i32, i32
  }
  func.func @transform_2(%arg0: i32) -> (i32, i32) {
    %c0_i32 = arith.constant 0 : i32
    %c0_i32_0 = arith.constant 0 : i32
    %c0_i32_1 = arith.constant 0 : i32
    return %c0_i32, %c0_i32_0 : i32, i32
  }
  func.func @transform_3(%arg0: i32) -> (i32, i32) {
    %c0_i32 = arith.constant 0 : i32
    %c0_i32_0 = arith.constant 0 : i32
    %c0_i32_1 = arith.constant 0 : i32
    return %c0_i32, %c0_i32_0 : i32, i32
  }
  func.func @transform_4(%arg0: i32) -> (i32, i32) {
    %c0_i32 = arith.constant 0 : i32
    %c0_i32_0 = arith.constant 0 : i32
    %c0_i32_1 = arith.constant 0 : i32
    return %c0_i32, %c0_i32_0 : i32, i32
  }
  func.func @transform_5(%arg0: i32) -> (i32, i32) {
    %c0_i32 = arith.constant 0 : i32
    %c0_i32_0 = arith.constant 0 : i32
    %c0_i32_1 = arith.constant 0 : i32
    return %c0_i32, %c0_i32_0 : i32, i32
  }
  func.func @transform_6(%arg0: i32) -> (i32, i32, i32, i32) {
    %c0_i32 = arith.constant 0 : i32
    %c0_i32_0 = arith.constant 0 : i32
    %c0_i32_1 = arith.constant 0 : i32
    %c0_i32_2 = arith.constant 0 : i32
    return %arg0, %c0_i32, %c0_i32_0, %c0_i32_1 : i32, i32, i32, i32
  }
}

</mosaic_0001>

<bundles_post_ra>
// kernel: fire_pallas.1
= control target key start
LH: loop header
LB: loop body
LE: loop exit
PB: predicated region body
PF: predicated region fallthrough
CT: control target
= control target key end

     0   :  { %vm354_vm0 = vcmask 1041408   ;;  %vm257_vm1 = vcmask 31744   ;;  %s6942_s0 = inlined_call_operand.vmem [shape: bf16[2,16,16,4], index: 0, kind: input, shape index: {}]   ;;  %s6943_s1 = inlined_call_operand.vmem [shape: bf16[4,8], index: 1, kind: input, shape index: {}]   ;;  %s6944_s2 = inlined_call_operand.vmem [shape: f32[1,8], index: 2, kind: input, shape index: {}]   ;;  %s6945_s3 = inlined_call_operand.vmem [shape: bf16[8,32], index: 3, kind: input, shape index: {}]   ;;  %s6946_s4 = inlined_call_operand.vmem [shape: bf16[72,32], index: 4, kind: input, shape index: {}]   ;;  %s6947_s5 = inlined_call_operand.vmem [shape: f32[1,64], index: 5, kind: input, shape index: {}]   ;;  %s6948_s6 = inlined_call_operand.hbm [shape: f32[2,16,16,64], index: 6, kind: output, shape index: {}]  }
   0x1   :  { %v89_v0 = vld [vmem:[%s6943_s1] sm:$0x3]  ;;  %v4928_v4 = vld [vmem:[%s6942_s0 + $0x8] sm:$0xff]   ;;  %v4930_v6 = vld [vmem:[%s6942_s0 + $0x10] sm:$0xff]  }
   0x2   :  { %v4926_v1 = vld [vmem:[%s6942_s0] sm:$0xff]   ;;  %4911 = vmatprep.subr.msk.bf16.mxu0 %vm354_vm0, %v89_v0  ;;  %4912 = vmatprep.subr.msk.bf16.mxu1 %vm354_vm0, %v89_v0  ;;  %v356_v2 = vsel %vm354_vm0, %v89_v0, 0  ;;  %v4929_v5 = vld [vmem:[%s6942_s0 + $0x88] sm:$0xff]   ;;  %v4931_v7 = vld [vmem:[%s6942_s0 + $0x18] sm:$0xff]  }
   0x3   :  { %4704 = vmatpush3.bf16.msra.mxu0 %v356_v2  ;;  %4910 = vmatpush3.bf16.msra.mxu1 %v356_v2  ;;  %v4927_v3 = vld [vmem:[%s6942_s0 + $0x80] sm:$0xff]   ;;  %v4938_v9 = vld [vmem:[%s6942_s0 + $0x90] sm:$0xff]   ;;  %v4939_v10 = vld [vmem:[%s6942_s0 + $0x98] sm:$0xff]  }
   0x4   :  { %4705 = vmatprep.mubr.msk.bf16.mxu0 %vm257_vm1, %v4926_v1  ;;  %4737 = vmatprep.mubr.msk.bf16.mxu1 %vm257_vm1, %v4927_v3  ;;  %v4932_v8 = vld [vmem:[%s6942_s0 + $0x20] sm:$0xff]   ;;  %v4933_v11 = vld [vmem:[%s6942_s0 + $0x28] sm:$0xff]   ;;  %v4934_v12 = vld [vmem:[%s6942_s0 + $0x30] sm:$0xff]  }
   0x5   :  { %v4946_v13 = vld [vmem:[%s6942_s0 + $0xa0] sm:$0xff]   ;;  %v4947_v14 = vld [vmem:[%s6942_s0 + $0xa8] sm:$0xff]   ;;  %v4948_v15 = vld [vmem:[%s6942_s0 + $0xb0] sm:$0xff]  }
   0x6   :  { %4706 = vmatmul.mubr.msk.bf16.vlgmr.msra.gmra.mrb[0].mxu0 %vm257_vm1, %v4928_v4  ;;  %4738 = vmatmul.mubr.msk.bf16.vlgmr.msra.gmra.mrb[0].mxu1 %vm257_vm1, %v4929_v5  ;;  %v4935_v16 = vld [vmem:[%s6942_s0 + $0x38] sm:$0xff]   ;;  %v4936_v17 = vld [vmem:[%s6942_s0 + $0x40] sm:$0xff]   ;;  %v4937_v20 = vld [vmem:[%s6942_s0 + $0x48] sm:$0xff]  }
   0x7   :  { %4709 = vmatprep.mubr.msk.bf16.mxu0 %vm257_vm1, %v4930_v6  ;;  %4741 = vmatprep.mubr.msk.bf16.mxu1 %vm257_vm1, %v4938_v9  ;;  %v4949_v18 = vld [vmem:[%s6942_s0 + $0xb8] sm:$0xff]   ;;  %v4950_v19 = vld [vmem:[%s6942_s0 + $0xc0] sm:$0xff]   ;;  %v4940_v21 = vld [vmem:[%s6942_s0 + $0x50] sm:$0xff]  }
   0xe   :  { %4710 = vmatmul.mubr.msk.bf16.gmra.mrb[4].mxu0 %vm257_vm1, %v4931_v7  ;;  %4742 = vmatmul.mubr.msk.bf16.gmra.mrb[4].mxu1 %vm257_vm1, %v4939_v10 }
   0xf   :  { %4713 = vmatprep.mubr.msk.bf16.mxu0 %vm257_vm1, %v4932_v8  ;;  %4745 = vmatprep.mubr.msk.bf16.mxu1 %vm257_vm1, %v4946_v13 }
  0x16   :  { %4714 = vmatmul.mubr.msk.bf16.gmra.mrb[8].mxu0 %vm257_vm1, %v4933_v11  ;;  %4746 = vmatmul.mubr.msk.bf16.gmra.mrb[8].mxu1 %vm257_vm1, %v4947_v14 }
  0x17   :  { %4717 = vmatprep.mubr.msk.bf16.mxu0 %vm257_vm1, %v4934_v12  ;;  %4749 = vmatprep.mubr.msk.bf16.mxu1 %vm257_vm1, %v4948_v15 }
  0x1e   :  { %4718 = vmatmul.mubr.msk.bf16.gmra.mrb[12].mxu0 %vm257_vm1, %v4935_v16  ;;  %4750 = vmatmul.mubr.msk.bf16.gmra.mrb[12].mxu1 %vm257_vm1, %v4949_v18 }
  0x1f   :  { %4721 = vmatprep.mubr.msk.bf16.mxu0 %vm257_vm1, %v4936_v17  ;;  %4753 = vmatprep.mubr.msk.bf16.mxu1 %vm257_vm1, %v4950_v19 }
  0x20   :  { %11 = vsyncpa [#allocation5], 0  ;;  %v4951_v22 = vld [vmem:[%s6942_s0 + $0xc8] sm:$0xff]   ;;  %v4952_v23 = vld [vmem:[%s6942_s0 + $0xd0] sm:$0xff]   ;;  %vm743_vm2 = vcmask 64512   ;;  %vm746_vm3 = vcmask 58368  }
  0x21   :  { %v4941_v24 = vld [vmem:[%s6942_s0 + $0x58] sm:$0xff]   ;;  %v4942_v25 = vld [vmem:[%s6942_s0 + $0x60] sm:$0xff]   ;;  %v4943_v28 = vld [vmem:[%s6942_s0 + $0x68] sm:$0xff]   ;;  %v4987_v32 = vmov 0.0   ;;  %vm758_vm4 = vcmask 57344   ;;  %s4988_s10 = smov 8  }
  0x22   :  { %v4953_v26 = vld [vmem:[%s6942_s0 + $0xd8] sm:$0xff]   ;;  %v4954_v27 = vld [vmem:[%s6942_s0 + $0xe0] sm:$0xff]   ;;  %v4944_v29 = vld [vmem:[%s6942_s0 + $0x70] sm:$0xff]   ;;  %744 = vst.msk [vmem:[#allocation2] sm:$0xff] %vm743_vm2, %v4987_v32  ;;  %vm3178_vm5 = vcmask 1043456   ;;  %vm1248_vm6 = vcmask 130112  }
  0x23   :  { %v4955_v30 = vld [vmem:[%s6942_s0 + $0xe8] sm:$0xff]   ;;  %v4945_v31 = vld [vmem:[%s6942_s0 + $0x78] sm:$0xff]   ;;  %745 = vst.msk [vmem:[#allocation2 + $0x8] sm:$0xff] %vm743_vm2, %v4987_v32  ;;  %748 = vst.msk [vmem:[#allocation2 + $0x1b0] sm:$0xff] %vm743_vm2, %v4987_v32  ;;  %vm1505_vm7 = vcmask 195712   ;;  %s4991_s16 = smov 48  }
  0x24   :  { %747 = vst.msk [vmem:[#allocation2 + $0x10] sm:$0x3] %vm746_vm3, %v4987_v32  ;;  %750 = vst.msk [vmem:[#allocation2 + $0x1c0] sm:$0x3] %vm746_vm3, %v4987_v32  ;;  %v4956_v36 = vld [vmem:[%s6942_s0 + $0xf0] sm:$0xff]   ;;  %v4957_v37 = vld [vmem:[%s6942_s0 + $0xf8] sm:$0xff]  }
  0x25   :  { %749 = vst.msk [vmem:[#allocation2 + $0x1b8] sm:$0xff] %vm743_vm2, %v4987_v32  ;;  %752 = vst.msk [vmem:[#allocation2 + $0x198] sm:$0xff] %vm743_vm2, %v4987_v32  ;;  %v3081_v41 = vld [vmem:[%s6945_s3] sm:$0xf]  ;;  %s4989_s0 = smov 16   ;;  %s4992_s17 = smov 32  }
  0x26   :  { %4722 = vmatmul.mubr.msk.bf16.gmra.mrb[16].mxu0 %vm257_vm1, %v4937_v20  ;;  %4754 = vmatmul.mubr.msk.bf16.gmra.mrb[16].mxu1 %vm257_vm1, %v4951_v22  ;;  %753 = vst.msk [vmem:[#allocation2 + $0x1a0] sm:$0xff] %vm743_vm2, %v4987_v32  ;;  %755 = vst.msk [vmem:[#allocation2 + $0x348] sm:$0xff] %vm743_vm2, %v4987_v32  ;;  %v3180_v44 = vsel %vm3178_vm5, %v3081_v41, 0  ;;  %v5354_v58 = vld [vmem:[%s6944_s2] ss:$0 sm:$0xff]  ;;  %s4990_s2 = smov 24  }
  0x27   :  { %4725 = vmatprep.mubr.msk.bf16.mxu0 %vm257_vm1, %v4940_v21  ;;  %4757 = vmatprep.mubr.msk.bf16.mxu1 %vm257_vm1, %v4952_v23  ;;  %754 = vst.msk [vmem:[#allocation2 + $0x1a8] sm:$0x3] %vm746_vm3, %v4987_v32  ;;  %757 = vst.msk [vmem:[#allocation2 + $0x358] sm:$0x3] %vm746_vm3, %v4987_v32  ;;  %s4993_s18 = smov 56   ;;  %s4994_s19 = smov 40  }
  0x28   :  { %756 = vst.msk [vmem:[#allocation2 + $0x350] sm:$0xff] %vm743_vm2, %v4987_v32  ;;  %4913 = vmatprep.subr.msk.bf16.mxu1 %vm3178_vm5, %v3081_v41  ;;  %s4995_s20 = smov 64   ;;  %vm1762_vm8 = vcmask 261312   ;;  %vm2019_vm9 = vcmask 326912   ;;  %vm2276_vm10 = vcmask 392512   ;;  %vm2534_vm11 = vcmask 458112  }
  0x29   :  { %795 = vst.msk [vmem:[#allocation2 + $0x11] sm:$0x1] %vm758_vm4, %v4987_v32  ;;  %759 = vst.msk [vmem:[#allocation2] sm:$0x1] %vm758_vm4, %v4987_v32  ;;  %4770 = vmatpush3.bf16.msra.mxu1 %v3180_v44  ;;  %vm2791_vm12 = vcmask 523712   ;;  %vm3048_vm13 = vcmask 589312  }
  0x2a   :  { %v5176_v33 = vld [vmem:[#allocation2 + $0x1] sm:$0xff]  ;;  %760 = vst.msk [vmem:[#allocation2 + $0x18] sm:$0x1] %vm758_vm4, %v4987_v32  ;;  %761 = vst.msk [vmem:[#allocation2 + $0x30] sm:$0x1] %vm758_vm4, %v4987_v32  ;;  %vm3539_vm14 = vcmask 588800  }
  0x2b   :  { %v5178_v34 = vld [vmem:[#allocation2 + $0x9] sm:$0xff]  ;;  %762 = vst.msk [vmem:[#allocation2 + $0x48] sm:$0x1] %vm758_vm4, %v4987_v32  ;;  %763 = vst.msk [vmem:[#allocation2 + $0x60] sm:$0x1] %vm758_vm4, %v4987_v32  ;;  %vm4184_vm15 = vcmask 261120  }
  0x2c   :  { %v1088_v35 = vpack.c.bf16 %v5178_v34, %v5176_v33  ;;  %764 = vst.msk [vmem:[#allocation2 + $0x78] sm:$0x1] %vm758_vm4, %v4987_v32  ;;  %765 = vst.msk [vmem:[#allocation2 + $0x90] sm:$0x1] %vm758_vm4, %v4987_v32  ;;  %v1056_v38 = vld [vmem:[#allocation2 + $0x1b1] sm:$0xff]  ;;  %v1057_v39 = vld [vmem:[#allocation2 + $0x1b9] sm:$0xff] }
  0x2d   :  { %766 = vst.msk [vmem:[#allocation2 + $0xa8] sm:$0x1] %vm758_vm4, %v4987_v32  ;;  %767 = vst.msk [vmem:[#allocation2 + $0xc0] sm:$0x1] %vm758_vm4, %v4987_v32  ;;  %v1104_v40 = vpack.c.bf16 %v1057_v39, %v1056_v38  ;;  %v1281_v42 = vld [vmem:[#allocation2 + $0x2] sm:$0xff]  ;;  %v1313_v46 = vld [vmem:[#allocation2 + $0x1b2] sm:$0xff] }
  0x2e   :  { %4726 = vmatmul.mubr.msk.bf16.gmra.mrb[20].mxu0 %vm257_vm1, %v4941_v24  ;;  %4758 = vmatmul.mubr.msk.bf16.gmra.mrb[20].mxu1 %vm257_vm1, %v4953_v26  ;;  %768 = vst.msk [vmem:[#allocation2 + $0xd8] sm:$0x1] %vm758_vm4, %v4987_v32  ;;  %769 = vst.msk [vmem:[#allocation2 + $0xf0] sm:$0x1] %vm758_vm4, %v4987_v32  ;;  %v897_v49 = vld [vmem:[#allocation2 + $0x8] sm:$0xff]  ;;  %v929_v54 = vld [vmem:[#allocation2 + $0x1b8] sm:$0xff] }
  0x2f   :  { %4729 = vmatprep.mubr.msk.bf16.mxu0 %vm257_vm1, %v4942_v25  ;;  %4761 = vmatprep.mubr.msk.bf16.mxu1 %vm257_vm1, %v4954_v27  ;;  %770 = vst.msk [vmem:[#allocation2 + $0x108] sm:$0x1] %vm758_vm4, %v4987_v32  ;;  %771 = vst.msk [vmem:[#allocation2 + $0x120] sm:$0x1] %vm758_vm4, %v4987_v32  ;;  %vm4384_vm0 = vcmask 523264  }
  0x30   :  { %772 = vst.msk [vmem:[#allocation2 + $0x138] sm:$0x1] %vm758_vm4, %v4987_v32  ;;  %773 = vst.msk [vmem:[#allocation2 + $0x150] sm:$0x1] %vm758_vm4, %v4987_v32  ;;  %1152 = vrot.lane.b32.xlu0 %v1088_v35, %s4988_s10  ;;  %v1282_v43 = vld [vmem:[#allocation2 + $0xa] sm:$0xff]  ;;  %v896_v50 = vld [vmem:[#allocation2] sm:$0xff] }
  0x31   :  { %774 = vst.msk [vmem:[#allocation2 + $0x168] sm:$0x1] %vm758_vm4, %v4987_v32  ;;  %775 = vst.msk [vmem:[#allocation2 + $0x180] sm:$0x1] %vm758_vm4, %v4987_v32  ;;  %v1345_v45 = vpack.c.bf16 %v1282_v43, %v1281_v42  ;;  %v960_v51 = vpack.c.bf16 %v897_v49, %v896_v50 }
  0x32   :  { %778 = vst.msk [vmem:[#allocation2 + $0x1c8] sm:$0x1] %vm758_vm4, %v4987_v32  ;;  %779 = vst.msk [vmem:[#allocation2 + $0x1e0] sm:$0x1] %vm758_vm4, %v4987_v32 }
  0x33   :  { %780 = vst.msk [vmem:[#allocation2 + $0x1f8] sm:$0x1] %vm758_vm4, %v4987_v32  ;;  %781 = vst.msk [vmem:[#allocation2 + $0x210] sm:$0x1] %vm758_vm4, %v4987_v32 }
  0x34   :  { %782 = vst.msk [vmem:[#allocation2 + $0x228] sm:$0x1] %vm758_vm4, %v4987_v32  ;;  %783 = vst.msk [vmem:[#allocation2 + $0x240] sm:$0x1] %vm758_vm4, %v4987_v32  ;;  %1184 = vrot.lane.b32.xlu0 %v1104_v40, %s4988_s10 }
  0x35   :  { %784 = vst.msk [vmem:[#allocation2 + $0x258] sm:$0x1] %vm758_vm4, %v4987_v32  ;;  %785 = vst.msk [vmem:[#allocation2 + $0x270] sm:$0x1] %vm758_vm4, %v4987_v32 }
  0x36   :  { %4730 = vmatmul.mubr.msk.bf16.gmra.mrb[24].mxu0 %vm257_vm1, %v4943_v28  ;;  %4762 = vmatmul.mubr.msk.bf16.gmra.mrb[24].mxu1 %vm257_vm1, %v4955_v30  ;;  %786 = vst.msk [vmem:[#allocation2 + $0x288] sm:$0x1] %vm758_vm4, %v4987_v32  ;;  %787 = vst.msk [vmem:[#allocation2 + $0x2a0] sm:$0x1] %vm758_vm4, %v4987_v32 }
  0x37   :  { %4733 = vmatprep.mubr.msk.bf16.mxu0 %vm257_vm1, %v4944_v29  ;;  %788 = vst.msk [vmem:[#allocation2 + $0x2b8] sm:$0x1] %vm758_vm4, %v4987_v32  ;;  %789 = vst.msk [vmem:[#allocation2 + $0x2d0] sm:$0x1] %vm758_vm4, %v4987_v32  ;;  %4765 = vmatprep.mubr.msk.bf16.mxu1 %vm257_vm1, %v4956_v36 }
  0x38   :  { %790 = vst.msk [vmem:[#allocation2 + $0x2e8] sm:$0x1] %vm758_vm4, %v4987_v32  ;;  %791 = vst.msk [vmem:[#allocation2 + $0x300] sm:$0x1] %vm758_vm4, %v4987_v32  ;;  %1409 = vrot.lane.b32.xlu0 %v1345_v45, %s4989_s0 }
  0x39   :  { %792 = vst.msk [vmem:[#allocation2 + $0x318] sm:$0x1] %vm758_vm4, %v4987_v32  ;;  %793 = vst.msk [vmem:[#allocation2 + $0x330] sm:$0x1] %vm758_vm4, %v4987_v32 }
  0x3a   :  { %796 = vst.msk [vmem:[#allocation2 + $0x29] sm:$0x1] %vm758_vm4, %v4987_v32  ;;  %797 = vst.msk [vmem:[#allocation2 + $0x41] sm:$0x1] %vm758_vm4, %v4987_v32 }
  0x3b   :  { %798 = vst.msk [vmem:[#allocation2 + $0x59] sm:$0x1] %vm758_vm4, %v4987_v32  ;;  %799 = vst.msk [vmem:[#allocation2 + $0x71] sm:$0x1] %vm758_vm4, %v4987_v32 }
  0x3c   :  { %800 = vst.msk [vmem:[#allocation2 + $0x89] sm:$0x1] %vm758_vm4, %v4987_v32  ;;  %801 = vst.msk [vmem:[#allocation2 + $0xa1] sm:$0x1] %vm758_vm4, %v4987_v32 }
  0x3d   :  { %802 = vst.msk [vmem:[#allocation2 + $0xb9] sm:$0x1] %vm758_vm4, %v4987_v32  ;;  %803 = vst.msk [vmem:[#allocation2 + $0xd1] sm:$0x1] %vm758_vm4, %v4987_v32 }
  0x3e   :  { %4734 = vmatmul.mubr.msk.bf16.gmra.mrb[28].mxu0 %vm257_vm1, %v4945_v31  ;;  %804 = vst.msk [vmem:[#allocation2 + $0xe9] sm:$0x1] %vm758_vm4, %v4987_v32  ;;  %805 = vst.msk [vmem:[#allocation2 + $0x101] sm:$0x1] %vm758_vm4, %v4987_v32  ;;  %4766 = vmatmul.mubr.msk.bf16.gmra.mrb[28].mxu1 %vm257_vm1, %v4957_v37 }
  0x3f   :  { %806 = vst.msk [vmem:[#allocation2 + $0x119] sm:$0x1] %vm758_vm4, %v4987_v32  ;;  %807 = vst.msk [vmem:[#allocation2 + $0x131] sm:$0x1] %vm758_vm4, %v4987_v32 }
  0x40   :  { %808 = vst.msk [vmem:[#allocation2 + $0x149] sm:$0x1] %vm758_vm4, %v4987_v32  ;;  %809 = vst.msk [vmem:[#allocation2 + $0x161] sm:$0x1] %vm758_vm4, %v4987_v32 }
  0x41   :  { %810 = vst.msk [vmem:[#allocation2 + $0x179] sm:$0x1] %vm758_vm4, %v4987_v32  ;;  %811 = vst.msk [vmem:[#allocation2 + $0x191] sm:$0x1] %vm758_vm4, %v4987_v32 }
  0x42   :  { %814 = vst.msk [vmem:[#allocation2 + $0x1d9] sm:$0x1] %vm758_vm4, %v4987_v32  ;;  %815 = vst.msk [vmem:[#allocation2 + $0x1f1] sm:$0x1] %vm758_vm4, %v4987_v32 }
  0x43   :  { %816 = vst.msk [vmem:[#allocation2 + $0x209] sm:$0x1] %vm758_vm4, %v4987_v32  ;;  %817 = vst.msk [vmem:[#allocation2 + $0x221] sm:$0x1] %vm758_vm4, %v4987_v32 }
  0x44   :  { %818 = vst.msk [vmem:[#allocation2 + $0x239] sm:$0x1] %vm758_vm4, %v4987_v32  ;;  %819 = vst.msk [vmem:[#allocation2 + $0x251] sm:$0x1] %vm758_vm4, %v4987_v32 }
  0x45   :  { %820 = vst.msk [vmem:[#allocation2 + $0x269] sm:$0x1] %vm758_vm4, %v4987_v32  ;;  %821 = vst.msk [vmem:[#allocation2 + $0x281] sm:$0x1] %vm758_vm4, %v4987_v32 }
  0x46   :  { %822 = vst.msk [vmem:[#allocation2 + $0x299] sm:$0x1] %vm758_vm4, %v4987_v32  ;;  %823 = vst.msk [vmem:[#allocation2 + $0x2b1] sm:$0x1] %vm758_vm4, %v4987_v32 }
  0x47   :  { %824 = vst.msk [vmem:[#allocation2 + $0x2c9] sm:$0x1] %vm758_vm4, %v4987_v32  ;;  %825 = vst.msk [vmem:[#allocation2 + $0x2e1] sm:$0x1] %vm758_vm4, %v4987_v32 }
  0x48   :  { %826 = vst.msk [vmem:[#allocation2 + $0x2f9] sm:$0x1] %vm758_vm4, %v4987_v32  ;;  %827 = vst.msk [vmem:[#allocation2 + $0x311] sm:$0x1] %vm758_vm4, %v4987_v32 }
  0x49   :  { %828 = vst.msk [vmem:[#allocation2 + $0x329] sm:$0x1] %vm758_vm4, %v4987_v32  ;;  %829 = vst.msk [vmem:[#allocation2 + $0x341] sm:$0x1] %vm758_vm4, %v4987_v32 }
  0x4a   :  { %776 = vst.msk [vmem:[#allocation2 + $0x198] sm:$0x1] %vm758_vm4, %v4987_v32  ;;  %777 = vst.msk [vmem:[#allocation2 + $0x1b0] sm:$0x1] %vm758_vm4, %v4987_v32 }
  0x4b   :  { %794 = vst.msk [vmem:[#allocation2 + $0x348] sm:$0x1] %vm758_vm4, %v4987_v32  ;;  %812 = vst.msk [vmem:[#allocation2 + $0x1a9] sm:$0x1] %vm758_vm4, %v4987_v32 }
  0x4c   :  { %813 = vst.msk [vmem:[#allocation2 + $0x1c1] sm:$0x1] %vm758_vm4, %v4987_v32  ;;  %830 = vst.msk [vmem:[#allocation2 + $0x359] sm:$0x1] %vm758_vm4, %v4987_v32 }
  0x4d   :  { %992 = vst.msk [vmem:[#allocation3] sm:$0xff] %vm743_vm2, %v960_v51 }
  0x51   :  { %v928_v53 = vld [vmem:[#allocation2 + $0x1b0] sm:$0xff] }
  0x52   :  { %v976_v55 = vpack.c.bf16 %v929_v54, %v928_v53 }
  0x53   :  { %v1314_v47 = vld [vmem:[#allocation2 + $0x1ba] sm:$0xff] }
  0x54   :  { %v1361_v48 = vpack.c.bf16 %v1314_v47, %v1313_v46  ;;  %1008 = vst.msk [vmem:[#allocation3 + $0x80] sm:$0xff] %vm743_vm2, %v976_v55 }
  0x56   :  { %1441 = vrot.lane.b32.xlu0 %v1361_v48, %s4989_s0 }
  0xa2   :  { %v1153_v52 = vpop.permute.xlu0 %1152 }
  0xa3   :  { %1249 = vst.msk [vmem:[#allocation3] sm:$0xff] %vm1248_vm6, %v1153_v52 }
  0xa6   :  { %v1185_v56 = vpop.permute.xlu0 %1184 }
  0xa7   :  { %1265 = vst.msk [vmem:[#allocation3 + $0x80] sm:$0xff] %vm1248_vm6, %v1185_v56 }
  0xaa   :  { %v1410_v57 = vpop.permute.xlu0 %1409 }
  0xab   :  { %1506 = vst.msk [vmem:[#allocation3] sm:$0xff] %vm1505_vm7, %v1410_v57 }
  0xc8   :  { %v1442_v60 = vpop.permute.xlu0 %1441 }
  0xc9   :  { %1522 = vst.msk [vmem:[#allocation3 + $0x80] sm:$0xff] %vm1505_vm7, %v1442_v60 }
  0xd9   :  { %v4707_v59 = vpop.f32.mrb[0].mxu0  ;;  %v4739_v62 = vpop.f32.mrb[0].mxu1 }
  0xda   :  { %v401_v61 = vadd.f32 %v4707_v59, %v5354_v58  ;;  %v392_v63 = vpop.f32.mrb[1].mxu0  ;;  %v529_v0 = vadd.f32 %v4739_v62, %v5354_v58  ;;  %v520_v2 = vpop.f32.mrb[1].mxu1 }
  0xdb   :  { %v393_v1 = vadd.f32 %v5354_v58, %v392_v63  ;;  %v4708_v3 = vpop.f32.mrb[2].mxu0  ;;  %v521_v5 = vadd.f32 %v5354_v58, %v520_v2  ;;  %v4740_v7 = vpop.f32.mrb[2].mxu1 }
  0xdc   :  { %v649_v4 = vmax.f32 %v401_v61, 0.0  ;;  %v404_v6 = vadd.f32 %v4708_v3, %v5354_v58  ;;  %v395_v8 = vpop.f32.mrb[3].mxu0  ;;  %v681_v9 = vmax.f32 %v529_v0, 0.0  ;;  %v532_v11 = vadd.f32 %v4740_v7, %v5354_v58  ;;  %v523_v13 = vpop.f32.mrb[3].mxu1 }
  0xdd   :  { %v647_v10 = vmax.f32 %v393_v1, 0.0  ;;  %v396_v12 = vadd.f32 %v5354_v58, %v395_v8  ;;  %v679_v14 = vmax.f32 %v521_v5, 0.0  ;;  %v524_v16 = vadd.f32 %v5354_v58, %v523_v13 }
  0xde   :  { %834 = vst.msk [vmem:[#allocation2 + $0x31] sm:$0xff] %vm743_vm2, %v649_v4  ;;  %v650_v15 = vmax.f32 %v404_v6, 0.0  ;;  %866 = vst.msk [vmem:[#allocation2 + $0x1e1] sm:$0xff] %vm743_vm2, %v681_v9  ;;  %v682_v17 = vmax.f32 %v532_v11, 0.0 }
  0xdf   :  { %832 = vst.msk [vmem:[#allocation2 + $0x19] sm:$0xff] %vm743_vm2, %v647_v10  ;;  %v648_v18 = vmax.f32 %v396_v12, 0.0  ;;  %864 = vst.msk [vmem:[#allocation2 + $0x1c9] sm:$0xff] %vm743_vm2, %v679_v14  ;;  %v680_v20 = vmax.f32 %v524_v16, 0.0 }
  0xe0   :  { %v712_v19 = vpack.c.bf16 %v650_v15, %v649_v4  ;;  %835 = vst.msk [vmem:[#allocation2 + $0x39] sm:$0xff] %vm743_vm2, %v650_v15  ;;  %v5370_v21 = vpack.c.bf16 %v682_v17, %v681_v9  ;;  %867 = vst.msk [vmem:[#allocation2 + $0x1e9] sm:$0xff] %vm743_vm2, %v682_v17 }
  0xe1   :  { %v711_v22 = vpack.c.bf16 %v648_v18, %v647_v10  ;;  %833 = vst.msk [vmem:[#allocation2 + $0x21] sm:$0xff] %vm743_vm2, %v648_v18  ;;  %v4711_v23 = vpop.f32.mrb[4].mxu0  ;;  %v5375_v25 = vpack.c.bf16 %v680_v20, %v679_v14  ;;  %865 = vst.msk [vmem:[#allocation2 + $0x1d1] sm:$0xff] %vm743_vm2, %v680_v20  ;;  %v4743_v32 = vpop.f32.mrb[4].mxu1 }
  0xe2   :  { %v417_v24 = vadd.f32 %v4711_v23, %v5354_v58  ;;  %v408_v26 = vpop.f32.mrb[5].mxu0  ;;  %v545_v35 = vadd.f32 %v4743_v32, %v5354_v58  ;;  %v536_v36 = vpop.f32.mrb[5].mxu1 }
  0xe3   :  { %v409_v27 = vadd.f32 %v5354_v58, %v408_v26  ;;  %v4712_v28 = vpop.f32.mrb[6].mxu0  ;;  %4771 = vmatprep.mubr.msk.bf16.mxu1 %vm743_vm2, %v711_v22  ;;  %v5386_v39 = vadd.f32 %v5354_v58, %v536_v36  ;;  %v4744_v40 = vpop.f32.mrb[6].mxu1 }
  0xe4   :  { %v653_v29 = vmax.f32 %v417_v24, 0.0  ;;  %v420_v30 = vadd.f32 %v4712_v28, %v5354_v58  ;;  %v411_v31 = vpop.f32.mrb[7].mxu0  ;;  %4772 = vmatmul.mubr.msk.bf16.vlgmr.msra.gmra.mrb[32].mxu1 %vm743_vm2, %v712_v19  ;;  %v685_v45 = vmax.f32 %v545_v35, 0.0  ;;  %v548_v46 = vadd.f32 %v4744_v40, %v5354_v58  ;;  %v539_v47 = vpop.f32.mrb[7].mxu1 }
  0xe5   :  { %v651_v33 = vmax.f32 %v409_v27, 0.0  ;;  %v412_v34 = vadd.f32 %v5354_v58, %v411_v31  ;;  %v1060_v38 = vld [vmem:[#allocation2 + $0x1e1] sm:$0xff]  ;;  %v1028_v42 = vld [vmem:[#allocation2 + $0x31] sm:$0xff]  ;;  %v683_v53 = vmax.f32 %v5386_v39, 0.0  ;;  %v540_v20 = vadd.f32 %v5354_v58, %v539_v47 }
  0xe6   :  { %838 = vst.msk [vmem:[#allocation2 + $0x61] sm:$0xff] %vm743_vm2, %v653_v29  ;;  %v654_v37 = vmax.f32 %v420_v30, 0.0  ;;  %v1572_v44 = vld [vmem:[#allocation2 + $0x1e0] sm:$0xff]  ;;  %v1540_v51 = vld [vmem:[#allocation2 + $0x30] sm:$0xff]  ;;  %870 = vst.msk [vmem:[#allocation2 + $0x211] sm:$0xff] %vm743_vm2, %v685_v45  ;;  %v686_v62 = vmax.f32 %v548_v46, 0.0 }
  0xe7   :  { %836 = vst.msk [vmem:[#allocation2 + $0x49] sm:$0xff] %vm743_vm2, %v651_v33  ;;  %v652_v41 = vmax.f32 %v412_v34, 0.0  ;;  %v1029_v43 = vld [vmem:[#allocation2 + $0x39] sm:$0xff]  ;;  %v1061_v49 = vld [vmem:[#allocation2 + $0x1e9] sm:$0xff]  ;;  %868 = vst.msk [vmem:[#allocation2 + $0x1f9] sm:$0xff] %vm743_vm2, %v683_v53  ;;  %v684_v30 = vmax.f32 %v540_v20, 0.0 }
  0xe8   :  { %v714_v48 = vpack.c.bf16 %v654_v37, %v653_v29  ;;  %839 = vst.msk [vmem:[#allocation2 + $0x69] sm:$0xff] %vm743_vm2, %v654_v37  ;;  %v5391_v50 = vpack.c.bf16 %v1029_v43, %v1028_v42  ;;  %v1541_v52 = vld [vmem:[#allocation2 + $0x38] sm:$0xff]  ;;  %v1106_v56 = vpack.c.bf16 %v1061_v49, %v1060_v38  ;;  %v1573_v61 = vld [vmem:[#allocation2 + $0x1e8] sm:$0xff]  ;;  %v5407_v4 = vpack.c.bf16 %v686_v62, %v685_v45  ;;  %v1539_v6 = vld [vmem:[#allocation2 + $0x20] sm:$0xff] }
  0xe9   :  { %v713_v54 = vpack.c.bf16 %v652_v41, %v651_v33  ;;  %837 = vst.msk [vmem:[#allocation2 + $0x51] sm:$0xff] %vm743_vm2, %v652_v41  ;;  %v4715_v55 = vpop.f32.mrb[8].mxu0  ;;  %v1285_v57 = vld [vmem:[#allocation2 + $0x32] sm:$0xff]  ;;  %v1286_v59 = vld [vmem:[#allocation2 + $0x3a] sm:$0xff]  ;;  %v5395_v60 = vpack.c.bf16 %v1541_v52, %v1540_v51  ;;  %v1619_v1 = vpack.c.bf16 %v1573_v61, %v1572_v44  ;;  %871 = vst.msk [vmem:[#allocation2 + $0x219] sm:$0xff] %vm743_vm2, %v686_v62  ;;  %v4747_v14 = vpop.f32.mrb[8].mxu1 }
  0xea   :  { %v433_v63 = vadd.f32 %v4715_v55, %v5354_v58  ;;  %1156 = vrot.lane.b32.xlu1 %v5391_v50, %s4988_s10  ;;  %v424_v0 = vpop.f32.mrb[9].mxu0  ;;  %1188 = vrot.lane.b32.xlu0 %v1106_v56, %s4988_s10  ;;  %v1538_v5 = vld [vmem:[#allocation2 + $0x18] sm:$0xff]  ;;  %v5414_v10 = vpack.c.bf16 %v1286_v59, %v1285_v57  ;;  %v1570_v12 = vld [vmem:[#allocation2 + $0x1c8] sm:$0xff]  ;;  %v1571_v13 = vld [vmem:[#allocation2 + $0x1d0] sm:$0xff]  ;;  %v552_v22 = vpop.f32.mrb[9].mxu1  ;;  %v561_v26 = vadd.f32 %v4747_v14, %v5354_v58 }
  0xeb   :  { %v425_v2 = vadd.f32 %v5354_v58, %v424_v0  ;;  %v4716_v3 = vpop.f32.mrb[10].mxu0  ;;  %4775 = vmatprep.mubr.msk.bf16.mxu1 %vm743_vm2, %v713_v54  ;;  %994 = vst.msk [vmem:[#allocation3 + $0x10] sm:$0xff] %vm743_vm2, %v5395_v60  ;;  %v5416_v11 = vpack.c.bf16 %v1539_v6, %v1538_v5  ;;  %1010 = vst.msk [vmem:[#allocation3 + $0x90] sm:$0xff] %vm743_vm2, %v1619_v1  ;;  %v1317_v17 = vld [vmem:[#allocation2 + $0x1e2] sm:$0xff]  ;;  %v1318_v18 = vld [vmem:[#allocation2 + $0x1ea] sm:$0xff]  ;;  %v5420_v19 = vpack.c.bf16 %v1571_v13, %v1570_v12  ;;  %v4748_v28 = vpop.f32.mrb[10].mxu1 }
  0xec   :  { %v657_v7 = vmax.f32 %v433_v63, 0.0  ;;  %v436_v8 = vadd.f32 %v4716_v3, %v5354_v58  ;;  %v427_v9 = vpop.f32.mrb[11].mxu0  ;;  %4776 = vmatmul.mubr.msk.bf16.gmra.mrb[36].mxu1 %vm743_vm2, %v714_v48  ;;  %v5428_v27 = vadd.f32 %v5354_v58, %v552_v22  ;;  %v564_v32 = vadd.f32 %v4748_v28, %v5354_v58  ;;  %v555_v33 = vpop.f32.mrb[11].mxu1  ;;  %869 = vst.msk [vmem:[#allocation2 + $0x201] sm:$0xff] %vm743_vm2, %v684_v30 }
  0xed   :  { %v655_v15 = vmax.f32 %v425_v2, 0.0  ;;  %v428_v16 = vadd.f32 %v5354_v58, %v427_v9  ;;  %v1544_v24 = vld [vmem:[#allocation2 + $0x60] sm:$0xff]  ;;  %993 = vst.msk [vmem:[#allocation3 + $0x8] sm:$0xff] %vm743_vm2, %v5416_v11  ;;  %1009 = vst.msk [vmem:[#allocation3 + $0x88] sm:$0xff] %vm743_vm2, %v5420_v19  ;;  %v1363_v35 = vpack.c.bf16 %v1318_v18, %v1317_v17  ;;  %v689_v37 = vmax.f32 %v561_v26, 0.0  ;;  %v1576_v43 = vld [vmem:[#allocation2 + $0x210] sm:$0xff] }
  0xee   :  { %842 = vst.msk [vmem:[#allocation2 + $0x91] sm:$0xff] %vm743_vm2, %v657_v7  ;;  %v658_v23 = vmax.f32 %v436_v8, 0.0  ;;  %1668 = vrot.lane.b32.xlu1 %v5395_v60, %s4990_s2  ;;  %1413 = vrot.lane.b32.xlu0 %v5414_v10, %s4989_s0  ;;  %v1542_v31 = vld [vmem:[#allocation2 + $0x48] sm:$0xff]  ;;  %v5442_v41 = vpack.c.bf16 %v684_v30, %v683_v53  ;;  %v687_v45 = vmax.f32 %v5428_v27, 0.0  ;;  %v690_v39 = vmax.f32 %v564_v32, 0.0  ;;  %v1574_v2 = vld [vmem:[#allocation2 + $0x1f8] sm:$0xff] }
  0xef   :  { %840 = vst.msk [vmem:[#allocation2 + $0x79] sm:$0xff] %vm743_vm2, %v655_v15  ;;  %v656_v29 = vmax.f32 %v428_v16, 0.0  ;;  %v1545_v36 = vld [vmem:[#allocation2 + $0x68] sm:$0xff]  ;;  %874 = vst.msk [vmem:[#allocation2 + $0x241] sm:$0xff] %vm743_vm2, %v689_v37  ;;  %v556_v63 = vadd.f32 %v5354_v58, %v555_v33 }
  0xf0   :  { %v716_v34 = vpack.c.bf16 %v658_v23, %v657_v7  ;;  %843 = vst.msk [vmem:[#allocation2 + $0x99] sm:$0xff] %vm743_vm2, %v658_v23  ;;  %v5445_v42 = vpack.c.bf16 %v1545_v36, %v1544_v24  ;;  %v1543_v44 = vld [vmem:[#allocation2 + $0x50] sm:$0xff]  ;;  %v1577_v52 = vld [vmem:[#allocation2 + $0x218] sm:$0xff]  ;;  %872 = vst.msk [vmem:[#allocation2 + $0x229] sm:$0xff] %vm743_vm2, %v687_v45  ;;  %v5463_v57 = vpack.c.bf16 %v690_v39, %v689_v37 }
  0xf1   :  { %v715_v38 = vpack.c.bf16 %v656_v29, %v655_v15  ;;  %841 = vst.msk [vmem:[#allocation2 + $0x81] sm:$0xff] %vm743_vm2, %v656_v29  ;;  %v4719_v40 = vpop.f32.mrb[12].mxu0  ;;  %v5450_v48 = vpack.c.bf16 %v1543_v44, %v1542_v31  ;;  %v5461_v56 = vpack.c.bf16 %v1577_v52, %v1576_v43  ;;  %875 = vst.msk [vmem:[#allocation2 + $0x249] sm:$0xff] %vm743_vm2, %v690_v39  ;;  %v4751_v59 = vpop.f32.mrb[12].mxu1  ;;  %v688_v8 = vmax.f32 %v556_v63, 0.0  ;;  %v1027_v26 = vld [vmem:[#allocation2 + $0x21] sm:$0xff] }
  0xf2   :  { %v449_v46 = vadd.f32 %v4719_v40, %v5354_v58  ;;  %1700 = vrot.lane.b32.xlu1 %v1619_v1, %s4990_s2  ;;  %v440_v47 = vpop.f32.mrb[13].mxu0  ;;  %1445 = vrot.lane.b32.xlu0 %v1363_v35, %s4989_s0  ;;  %996 = vst.msk [vmem:[#allocation3 + $0x20] sm:$0xff] %vm743_vm2, %v5445_v42  ;;  %v568_v0 = vpop.f32.mrb[13].mxu1  ;;  %v577_v3 = vadd.f32 %v4751_v59, %v5354_v58  ;;  %v1058_v35 = vld [vmem:[#allocation2 + $0x1c9] sm:$0xff]  ;;  %v1059_v40 = vld [vmem:[#allocation2 + $0x1d1] sm:$0xff] }
  0xf3   :  { %v441_v49 = vadd.f32 %v5354_v58, %v440_v47  ;;  %v4720_v51 = vpop.f32.mrb[14].mxu0  ;;  %4779 = vmatprep.mubr.msk.bf16.mxu1 %vm743_vm2, %v715_v38  ;;  %995 = vst.msk [vmem:[#allocation3 + $0x18] sm:$0xff] %vm743_vm2, %v5450_v48  ;;  %v5475_v5 = vadd.f32 %v5354_v58, %v568_v0  ;;  %v4752_v6 = vpop.f32.mrb[14].mxu1  ;;  %1012 = vst.msk [vmem:[#allocation3 + $0xa0] sm:$0xff] %vm743_vm2, %v5461_v56  ;;  %v1575_v14 = vld [vmem:[#allocation2 + $0x200] sm:$0xff]  ;;  %v5487_v20 = vpack.c.bf16 %v688_v8, %v687_v45 }
  0xf4   :  { %v661_v53 = vmax.f32 %v449_v46, 0.0  ;;  %v452_v54 = vadd.f32 %v4720_v51, %v5354_v58  ;;  %v443_v55 = vpop.f32.mrb[15].mxu0  ;;  %4780 = vmatmul.mubr.msk.bf16.gmra.mrb[40].mxu1 %vm743_vm2, %v716_v34  ;;  %v571_v12 = vpop.f32.mrb[15].mxu1  ;;  %v693_v15 = vmax.f32 %v577_v3, 0.0  ;;  %v5485_v18 = vpack.c.bf16 %v1575_v14, %v1574_v2  ;;  %873 = vst.msk [vmem:[#allocation2 + $0x231] sm:$0xff] %vm743_vm2, %v688_v8  ;;  %v1026_v34 = vld [vmem:[#allocation2 + $0x19] sm:$0xff] }
  0xf5   :  { %v659_v61 = vmax.f32 %v441_v49, 0.0  ;;  %v444_v62 = vadd.f32 %v5354_v58, %v443_v55  ;;  %v1548_v9 = vld [vmem:[#allocation2 + $0x90] sm:$0xff]  ;;  %v691_v28 = vmax.f32 %v5475_v5, 0.0  ;;  %v5509_v38 = vpack.c.bf16 %v1027_v26, %v1026_v34 }
  0xf6   :  { %846 = vst.msk [vmem:[#allocation2 + $0xc1] sm:$0xff] %vm743_vm2, %v661_v53  ;;  %v662_v1 = vmax.f32 %v452_v54, 0.0  ;;  %2438 = vrot.lane.b32.xlu1 %v5395_v60, %s4991_s16  ;;  %1925 = vrot.lane.b32.xlu0 %v5391_v50, %s4992_s17  ;;  %v580_v60 = vadd.f32 %v4752_v6, %v5354_v58  ;;  %878 = vst.msk [vmem:[#allocation2 + $0x271] sm:$0xff] %vm743_vm2, %v693_v15  ;;  %v940_v45 = vld [vmem:[#allocation2 + $0x240] sm:$0xff]  ;;  %v572_v47 = vadd.f32 %v5354_v58, %v571_v12  ;;  %v1316_v14 = vld [vmem:[#allocation2 + $0x1d2] sm:$0xff] }
  0xf7   :  { %844 = vst.msk [vmem:[#allocation2 + $0xa9] sm:$0xff] %vm743_vm2, %v659_v61  ;;  %v660_v7 = vmax.f32 %v444_v62, 0.0  ;;  %v1549_v22 = vld [vmem:[#allocation2 + $0x98] sm:$0xff]  ;;  %1011 = vst.msk [vmem:[#allocation3 + $0x98] sm:$0xff] %vm743_vm2, %v5485_v18  ;;  %v1284_v62 = vld [vmem:[#allocation2 + $0x22] sm:$0xff] }
  0xf8   :  { %v718_v13 = vpack.c.bf16 %v662_v1, %v661_v53  ;;  %847 = vst.msk [vmem:[#allocation2 + $0xc9] sm:$0xff] %vm743_vm2, %v662_v1  ;;  %v5493_v27 = vpack.c.bf16 %v1549_v22, %v1548_v9  ;;  %v694_v31 = vmax.f32 %v580_v60, 0.0  ;;  %876 = vst.msk [vmem:[#allocation2 + $0x259] sm:$0xff] %vm743_vm2, %v691_v28  ;;  %v941_v49 = vld [vmem:[#allocation2 + $0x248] sm:$0xff]  ;;  %v692_v63 = vmax.f32 %v572_v47, 0.0  ;;  %v906_v26 = vld [vmem:[#allocation2 + $0x78] sm:$0xff] }
  0xf9   :  { %v717_v16 = vpack.c.bf16 %v660_v7, %v659_v61  ;;  %845 = vst.msk [vmem:[#allocation2 + $0xb1] sm:$0xff] %vm743_vm2, %v660_v7  ;;  %v4723_v17 = vpop.f32.mrb[16].mxu0  ;;  %v4755_v39 = vpop.f32.mrb[16].mxu1  ;;  %v982_v55 = vpack.c.bf16 %v941_v49, %v940_v45  ;;  %v1283_v61 = vld [vmem:[#allocation2 + $0x1a] sm:$0xff]  ;;  %v1064_v49 = vld [vmem:[#allocation2 + $0x211] sm:$0xff] }
  0xfa   :  { %v465_v23 = vadd.f32 %v4723_v17, %v5354_v58  ;;  %2695 = vrot.lane.b32.xlu1 %v5391_v50, %s4993_s18  ;;  %v456_v24 = vpop.f32.mrb[17].mxu0  ;;  %2182 = vrot.lane.b32.xlu0 %v5414_v10, %s4994_s19  ;;  %998 = vst.msk [vmem:[#allocation3 + $0x30] sm:$0xff] %vm743_vm2, %v5493_v27  ;;  %v5511_v43 = vpack.c.bf16 %v694_v31, %v693_v15  ;;  %879 = vst.msk [vmem:[#allocation2 + $0x279] sm:$0xff] %vm743_vm2, %v694_v31  ;;  %v584_v54 = vpop.f32.mrb[17].mxu1  ;;  %v1032_v15 = vld [vmem:[#allocation2 + $0x61] sm:$0xff] }
  0xfb   :  { %v457_v29 = vadd.f32 %v5354_v58, %v456_v24  ;;  %v4724_v30 = vpop.f32.mrb[18].mxu0  ;;  %4783 = vmatprep.mubr.msk.bf16.mxu1 %vm743_vm2, %v717_v16  ;;  %v5522_v53 = vadd.f32 %v4755_v39, %v5354_v58  ;;  %v4756_v1 = vpop.f32.mrb[18].mxu1  ;;  %1014 = vst.msk [vmem:[#allocation3 + $0xb0] sm:$0xff] %vm743_vm2, %v982_v55  ;;  %v5532_v8 = vpack.c.bf16 %v692_v63, %v691_v28  ;;  %877 = vst.msk [vmem:[#allocation2 + $0x261] sm:$0xff] %vm743_vm2, %v692_v63  ;;  %v907_v28 = vld [vmem:[#allocation2 + $0x80] sm:$0xff]  ;;  %v938_v31 = vld [vmem:[#allocation2 + $0x228] sm:$0xff] }
  0xfc   :  { %v665_v50 = vmax.f32 %v465_v23, 0.0  ;;  %v468_v32 = vadd.f32 %v4724_v30, %v5354_v58  ;;  %v459_v33 = vpop.f32.mrb[19].mxu0  ;;  %4784 = vmatmul.mubr.msk.bf16.gmra.mrb[44].mxu1 %vm743_vm2, %v718_v13  ;;  %v5541_v12 = vpack.c.bf16 %v1284_v62, %v1283_v61  ;;  %v1315_v13 = vld [vmem:[#allocation2 + $0x1ca] sm:$0xff]  ;;  %v5547_v24 = vadd.f32 %v5354_v58, %v584_v54 }
  0xfd   :  { %v663_v36 = vmax.f32 %v457_v29, 0.0  ;;  %v460_v37 = vadd.f32 %v5354_v58, %v459_v33  ;;  %v1552_v44 = vld [vmem:[#allocation2 + $0xc0] sm:$0xff]  ;;  %v697_v5 = vmax.f32 %v5522_v53, 0.0  ;;  %v1033_v23 = vld [vmem:[#allocation2 + $0x69] sm:$0xff]  ;;  %v1362_v45 = vpack.c.bf16 %v1316_v14, %v1315_v13  ;;  %v587_v53 = vpop.f32.mrb[19].mxu1 }
  0xfe   :  { %850 = vst.msk [vmem:[#allocation2 + $0xf1] sm:$0xff] %vm743_vm2, %v665_v50  ;;  %v666_v46 = vmax.f32 %v468_v32, 0.0  ;;  %2952 = vrot.lane.b32.xlu1 %v5414_v10, %s4995_s20  ;;  %1154 = vrot.lane.b32.xlu0 %v5509_v38, %s4988_s10  ;;  %v1105_v10 = vpack.c.bf16 %v1059_v40, %v1058_v35  ;;  %v944_v32 = vld [vmem:[#allocation2 + $0x270] sm:$0xff]  ;;  %v695_v34 = vmax.f32 %v5547_v24, 0.0  ;;  %v965_v47 = vpack.c.bf16 %v907_v28, %v906_v26 }
  0xff   :  { %848 = vst.msk [vmem:[#allocation2 + $0xd9] sm:$0xff] %vm743_vm2, %v663_v36  ;;  %v664_v51 = vmax.f32 %v460_v37, 0.0  ;;  %v1553_v52 = vld [vmem:[#allocation2 + $0xc8] sm:$0xff]  ;;  %882 = vst.msk [vmem:[#allocation2 + $0x2a1] sm:$0xff] %vm743_vm2, %v697_v5  ;;  %v588_v61 = vadd.f32 %v5354_v58, %v587_v53 }
 0x100   :  { %v720_v59 = vpack.c.bf16 %v666_v46, %v665_v50  ;;  %851 = vst.msk [vmem:[#allocation2 + $0xf9] sm:$0xff] %vm743_vm2, %v666_v46  ;;  %v5525_v0 = vpack.c.bf16 %v1553_v52, %v1552_v44  ;;  %v939_v50 = vld [vmem:[#allocation2 + $0x230] sm:$0xff]  ;;  %v910_v37 = vld [vmem:[#allocation2 + $0xa8] sm:$0xff]  ;;  %v5558_v46 = vpack.c.bf16 %v1033_v23, %v1032_v15  ;;  %880 = vst.msk [vmem:[#allocation2 + $0x289] sm:$0xff] %vm743_vm2, %v695_v34 }
 0x101   :  { %v719_v2 = vpack.c.bf16 %v664_v51, %v663_v36  ;;  %849 = vst.msk [vmem:[#allocation2 + $0xe1] sm:$0xff] %vm743_vm2, %v664_v51  ;;  %v4727_v3 = vpop.f32.mrb[20].mxu0  ;;  %v945_v36 = vld [vmem:[#allocation2 + $0x278] sm:$0xff]  ;;  %v911_v40 = vld [vmem:[#allocation2 + $0xb0] sm:$0xff]  ;;  %v5565_v54 = vpack.c.bf16 %v939_v50, %v938_v31  ;;  %997 = vst.msk [vmem:[#allocation3 + $0x28] sm:$0xff] %vm743_vm2, %v965_v47 }
 0x102   :  { %v481_v6 = vadd.f32 %v4727_v3, %v5354_v58  ;;  %1186 = vrot.lane.b32.xlu1 %v1105_v10, %s4988_s10  ;;  %v472_v7 = vpop.f32.mrb[21].mxu0  ;;  %1000 = vst.msk [vmem:[#allocation3 + $0x40] sm:$0xff] %vm743_vm2, %v5525_v0  ;;  %1666 = vrot.lane.b32.xlu0 %v5416_v11, %s4990_s2  ;;  %v596_v11 = vadd.f32 %v4756_v1, %v5354_v58  ;;  %v1065_v51 = vld [vmem:[#allocation2 + $0x219] sm:$0xff]  ;;  %v1289_v15 = vld [vmem:[#allocation2 + $0x62] sm:$0xff] }
 0x103   :  { %v473_v9 = vadd.f32 %v5354_v58, %v472_v7  ;;  %v4728_v60 = vpop.f32.mrb[22].mxu0  ;;  %4787 = vmatprep.mubr.msk.bf16.mxu1 %vm743_vm2, %v719_v2  ;;  %v984_v55 = vpack.c.bf16 %v945_v36, %v944_v32  ;;  %v967_v62 = vpack.c.bf16 %v911_v40, %v910_v37  ;;  %1013 = vst.msk [vmem:[#allocation3 + $0xa8] sm:$0xff] %vm743_vm2, %v5565_v54  ;;  %v943_v2 = vld [vmem:[#allocation2 + $0x260] sm:$0xff]  ;;  %v696_v7 = vmax.f32 %v588_v61, 0.0 }
 0x104   :  { %v669_v16 = vmax.f32 %v481_v6, 0.0  ;;  %v484_v17 = vadd.f32 %v4728_v60, %v5354_v58  ;;  %v475_v22 = vpop.f32.mrb[23].mxu0  ;;  %4788 = vmatmul.mubr.msk.bf16.gmra.mrb[48].mxu1 %vm743_vm2, %v720_v59  ;;  %v698_v35 = vmax.f32 %v596_v11, 0.0  ;;  %v1108_v6 = vpack.c.bf16 %v1065_v51, %v1064_v49  ;;  %v4958_v61 = vld [vmem:[%s6946_s4] sm:$0xff]  }
 0x105   :  { %v667_v29 = vmax.f32 %v473_v9, 0.0  ;;  %v476_v30 = vadd.f32 %v5354_v58, %v475_v22  ;;  %1016 = vst.msk [vmem:[#allocation3 + $0xc0] sm:$0xff] %vm743_vm2, %v984_v55  ;;  %999 = vst.msk [vmem:[#allocation3 + $0x38] sm:$0xff] %vm743_vm2, %v967_v62  ;;  %v5585_v23 = vpack.c.bf16 %v696_v7, %v695_v34  ;;  %v1556_v32 = vld [vmem:[#allocation2 + $0xf0] sm:$0xff]  ;;  %4835 = vmatprep.subr.bf16.mxu0 %v4958_v61 }
 0x106   :  { %854 = vst.msk [vmem:[#allocation2 + $0x121] sm:$0xff] %vm743_vm2, %v669_v16  ;;  %v670_v33 = vmax.f32 %v484_v17, 0.0  ;;  %1411 = vrot.lane.b32.xlu1 %v5541_v12, %s4989_s0  ;;  %1698 = vrot.lane.b32.xlu0 %v5420_v19, %s4990_s2  ;;  %v5562_v52 = vpack.c.bf16 %v698_v35, %v697_v5  ;;  %883 = vst.msk [vmem:[#allocation2 + $0x2a9] sm:$0xff] %vm743_vm2, %v698_v35  ;;  %v942_v19 = vld [vmem:[#allocation2 + $0x258] sm:$0xff]  ;;  %v948_v62 = vld [vmem:[#allocation2 + $0x2a0] sm:$0xff] }
 0x107   :  { %852 = vst.msk [vmem:[#allocation2 + $0x109] sm:$0xff] %vm743_vm2, %v667_v29  ;;  %v668_v44 = vmax.f32 %v476_v30, 0.0  ;;  %v5580_v9 = vpack.c.bf16 %v943_v2, %v942_v19  ;;  %881 = vst.msk [vmem:[#allocation2 + $0x291] sm:$0xff] %vm743_vm2, %v696_v7  ;;  %v1322_v30 = vld [vmem:[#allocation2 + $0x21a] sm:$0xff]  ;;  %4836 = vmatpush3.bf16.msra.mxu0 %v4958_v61  ;;  %v946_v2 = vld [vmem:[#allocation2 + $0x288] sm:$0xff] }
 0x108   :  { %v722_v39 = vpack.c.bf16 %v670_v33, %v669_v16  ;;  %855 = vst.msk [vmem:[#allocation2 + $0x129] sm:$0xff] %vm743_vm2, %v670_v33  ;;  %v1290_v16 = vld [vmem:[#allocation2 + $0x6a] sm:$0xff]  ;;  %v1557_v33 = vld [vmem:[#allocation2 + $0xf8] sm:$0xff] }
 0x109   :  { %v721_v59 = vpack.c.bf16 %v668_v44, %v667_v29  ;;  %853 = vst.msk [vmem:[#allocation2 + $0x111] sm:$0xff] %vm743_vm2, %v668_v44  ;;  %v4731_v10 = vpop.f32.mrb[24].mxu0  ;;  %1015 = vst.msk [vmem:[#allocation3 + $0xb8] sm:$0xff] %vm743_vm2, %v5580_v9  ;;  %v5595_v26 = vpack.c.bf16 %v1290_v16, %v1289_v15  ;;  %v1321_v29 = vld [vmem:[#allocation2 + $0x212] sm:$0xff]  ;;  %v5602_v35 = vpack.c.bf16 %v1557_v33, %v1556_v32  ;;  %v4962_v16 = vld [vmem:[%s6946_s4 + $0x20] ss:$0 sps:$4 sm:$0xff]  }
 0x10a   :  { %v497_v63 = vadd.f32 %v4731_v10, %v5354_v58  ;;  %v488_v1 = vpop.f32.mrb[25].mxu0  ;;  %1443 = vrot.lane.b32.xlu1 %v1362_v45, %s4989_s0  ;;  %1160 = vrot.lane.b32.xlu0 %v5558_v46, %s4988_s10  ;;  %v1365_v40 = vpack.c.bf16 %v1322_v30, %v1321_v29  ;;  %v1554_v44 = vld [vmem:[#allocation2 + $0xd8] sm:$0xff]  ;;  %v1555_v45 = vld [vmem:[#allocation2 + $0xe0] sm:$0xff] }
 0x10b   :  { %v489_v3 = vadd.f32 %v5354_v58, %v488_v1  ;;  %v4732_v5 = vpop.f32.mrb[26].mxu0  ;;  %4791 = vmatprep.mubr.msk.bf16.mxu1 %vm743_vm2, %v721_v59  ;;  %1002 = vst.msk [vmem:[#allocation3 + $0x50] sm:$0xff] %vm743_vm2, %v5602_v35  ;;  %v1288_v29 = vld [vmem:[#allocation2 + $0x52] sm:$0xff] }
 0x10c   :  { %v673_v60 = vmax.f32 %v497_v63, 0.0  ;;  %v500_v13 = vadd.f32 %v4732_v5, %v5354_v58  ;;  %v491_v14 = vpop.f32.mrb[27].mxu0  ;;  %4792 = vmatmul.mubr.msk.bf16.gmra.mrb[52].mxu1 %vm743_vm2, %v722_v39  ;;  %v1036_v32 = vld [vmem:[#allocation2 + $0x91] sm:$0xff]  ;;  %v1037_v33 = vld [vmem:[#allocation2 + $0x99] sm:$0xff] }
 0x10d   :  { %v671_v17 = vmax.f32 %v489_v3, 0.0  ;;  %v492_v22 = vadd.f32 %v5354_v58, %v491_v14  ;;  %v949_v63 = vld [vmem:[#allocation2 + $0x2a8] sm:$0xff] }
 0x10e   :  { %858 = vst.msk [vmem:[#allocation2 + $0x151] sm:$0xff] %vm743_vm2, %v673_v60  ;;  %v674_v24 = vmax.f32 %v500_v13, 0.0  ;;  %1923 = vrot.lane.b32.xlu1 %v5509_v38, %s4992_s17  ;;  %1192 = vrot.lane.b32.xlu0 %v1108_v6, %s4988_s10  ;;  %v5640_v1 = vpack.c.bf16 %v949_v63, %v948_v62  ;;  %v947_v3 = vld [vmem:[#allocation2 + $0x290] sm:$0xff]  ;;  %v1063_v13 = vld [vmem:[#allocation2 + $0x201] sm:$0xff] }
 0x10f   :  { %856 = vst.msk [vmem:[#allocation2 + $0x139] sm:$0xff] %vm743_vm2, %v671_v17  ;;  %v672_v11 = vmax.f32 %v492_v22, 0.0  ;;  %v5644_v5 = vpack.c.bf16 %v947_v3, %v946_v2  ;;  %v1031_v6 = vld [vmem:[#allocation2 + $0x51] sm:$0xff] }
 0x110   :  { %v724_v28 = vpack.c.bf16 %v674_v24, %v673_v60  ;;  %859 = vst.msk [vmem:[#allocation2 + $0x159] sm:$0xff] %vm743_vm2, %v674_v24  ;;  %1018 = vst.msk [vmem:[#allocation3 + $0xd0] sm:$0xff] %vm743_vm2, %v5640_v1  ;;  %v1062_v60 = vld [vmem:[#allocation2 + $0x1f9] sm:$0xff] }
 0x111   :  { %v723_v31 = vpack.c.bf16 %v672_v11, %v671_v17  ;;  %857 = vst.msk [vmem:[#allocation2 + $0x141] sm:$0xff] %vm743_vm2, %v672_v11  ;;  %v4735_v50 = vpop.f32.mrb[28].mxu0  ;;  %1017 = vst.msk [vmem:[#allocation3 + $0xc8] sm:$0xff] %vm743_vm2, %v5644_v5  ;;  %v1107_v24 = vpack.c.bf16 %v1063_v13, %v1062_v60  ;;  %v1293_v3 = vld [vmem:[#allocation2 + $0x92] sm:$0xff] }
 0x112   :  { %v513_v38 = vadd.f32 %v4735_v50, %v5354_v58  ;;  %v504_v34 = vpop.f32.mrb[29].mxu0  ;;  %2180 = vrot.lane.b32.xlu1 %v5541_v12, %s4994_s19  ;;  %1417 = vrot.lane.b32.xlu0 %v5595_v26, %s4989_s0  ;;  %v5610_v12 = vpack.c.bf16 %v1555_v45, %v1554_v44 }
 0x113   :  { %v505_v36 = vadd.f32 %v5354_v58, %v504_v34  ;;  %v4736_v37 = vpop.f32.mrb[30].mxu0  ;;  %4795 = vmatprep.mubr.msk.bf16.mxu1 %vm743_vm2, %v723_v31 }
 0x114   :  { %v677_v47 = vmax.f32 %v513_v38, 0.0  ;;  %v516_v39 = vadd.f32 %v4736_v37, %v5354_v58  ;;  %v507_v49 = vpop.f32.mrb[31].mxu0  ;;  %4796 = vmatmul.mubr.msk.bf16.gmra.mrb[56].mxu1 %vm743_vm2, %v724_v28  ;;  %1001 = vst.msk [vmem:[#allocation3 + $0x48] sm:$0xff] %vm743_vm2, %v5610_v12  ;;  %v1287_v28 = vld [vmem:[#allocation2 + $0x4a] sm:$0xff]  ;;  %v1320_v37 = vld [vmem:[#allocation2 + $0x202] sm:$0xff] }
 0x115   :  { %v675_v51 = vmax.f32 %v505_v36, 0.0  ;;  %v508_v53 = vadd.f32 %v5354_v58, %v507_v49  ;;  %v1319_v36 = vld [vmem:[#allocation2 + $0x1fa] sm:$0xff] }
 0x116   :  { %862 = vst.msk [vmem:[#allocation2 + $0x181] sm:$0xff] %vm743_vm2, %v677_v47  ;;  %v678_v55 = vmax.f32 %v516_v39, 0.0  ;;  %1672 = vrot.lane.b32.xlu1 %v5445_v42, %s4990_s2  ;;  %1449 = vrot.lane.b32.xlu0 %v1365_v40, %s4989_s0 }
 0x117   :  { %860 = vst.msk [vmem:[#allocation2 + $0x169] sm:$0xff] %vm743_vm2, %v675_v51  ;;  %v676_v19 = vmax.f32 %v508_v53, 0.0  ;;  %v1068_v53 = vld [vmem:[#allocation2 + $0x241] sm:$0xff] }
 0x118   :  { %v726_v59 = vpack.c.bf16 %v678_v55, %v677_v47  ;;  %863 = vst.msk [vmem:[#allocation2 + $0x189] sm:$0xff] %vm743_vm2, %v678_v55  ;;  %v5703_v47 = vpack.c.bf16 %v1037_v33, %v1036_v32  ;;  %v1069_v55 = vld [vmem:[#allocation2 + $0x249] sm:$0xff]  ;;  %v1035_v33 = vld [vmem:[#allocation2 + $0x81] sm:$0xff] }
 0x119   :  { %v725_v10 = vpack.c.bf16 %v676_v19, %v675_v51  ;;  %861 = vst.msk [vmem:[#allocation2 + $0x171] sm:$0xff] %vm743_vm2, %v676_v19  ;;  %v1364_v51 = vpack.c.bf16 %v1320_v37, %v1319_v36 }
 0x11a   :  { %1704 = vrot.lane.b32.xlu1 %v5461_v56, %s4990_s2  ;;  %1929 = vrot.lane.b32.xlu0 %v5558_v46, %s4992_s17  ;;  %v4959_v56 = vld [vmem:[%s6946_s4 + $0x8] sm:$0xff]  }
 0x11b   :  { %4799 = vmatprep.mubr.msk.bf16.mxu1 %vm743_vm2, %v725_v10  ;;  %4837 = vmatprep.subr.bf16.mxu0 %v4959_v56 }
 0x11c   :  { %4800 = vmatmul.mubr.msk.bf16.gmra.mrb[60].mxu1 %vm743_vm2, %v726_v59  ;;  %4838 = vmatpush3.bf16.msra.mxu0 %v4959_v56 }
 0x11d   :  { %4803 = vmatprep.mubr.msk.bf16.mxu1 %vm743_vm2, %v5375_v25  ;;  %v4960_v25 = vld [vmem:[%s6946_s4 + $0x10] sm:$0xff]  }
 0x11e   :  { %2442 = vrot.lane.b32.xlu1 %v5445_v42, %s4991_s16  ;;  %2186 = vrot.lane.b32.xlu0 %v5595_v26, %s4994_s19  ;;  %v1030_v42 = vld [vmem:[#allocation2 + $0x49] sm:$0xff] }
 0x11f   :  { %4839 = vmatprep.subr.bf16.mxu0 %v4960_v25  ;;  %v5668_v7 = vpack.c.bf16 %v1031_v6, %v1030_v42 }
 0x120   :  { %4840 = vmatpush3.bf16.msra.mxu0 %v4960_v25 }
 0x122   :  { %2699 = vrot.lane.b32.xlu1 %v5558_v46, %s4993_s18  ;;  %1670 = vrot.lane.b32.xlu0 %v5450_v48, %s4990_s2  ;;  %v4961_v46 = vld [vmem:[%s6946_s4 + $0x18] sm:$0xff]  }
 0x123   :  { %4841 = vmatprep.subr.bf16.mxu0 %v4961_v46 }
 0x124   :  { %4804 = vmatmul.mubr.msk.bf16.gmra.mrb[64].mxu1 %vm743_vm2, %v5370_v21  ;;  %v4759_v21 = vpop.f32.mrb[20].mxu1  ;;  %4842 = vmatpush3.bf16.msra.mxu0 %v4961_v46 }
 0x125   :  { %4807 = vmatprep.mubr.msk.bf16.mxu1 %vm743_vm2, %v5442_v41  ;;  %v609_v41 = vadd.f32 %v4759_v21, %v5354_v58  ;;  %v600_v14 = vpop.f32.mrb[21].mxu1  ;;  %4914 = vmatprep.subr.msk.bf16.mxu0 %vm3178_vm5, %v4962_v16 }
 0x126   :  { %2956 = vrot.lane.b32.xlu1 %v5595_v26, %s4995_s20  ;;  %1702 = vrot.lane.b32.xlu0 %v5485_v18, %s4990_s2  ;;  %v601_v15 = vadd.f32 %v5354_v58, %v600_v14  ;;  %v4760_v18 = vpop.f32.mrb[22].mxu1  ;;  %v3637_v26 = vsel %vm3178_vm5, %v4962_v16, 0  ;;  %v1561_v14 = vld [vmem:[#allocation2 + $0x128] sm:$0xff] }
 0x127   :  { %v701_v17 = vmax.f32 %v609_v41, 0.0  ;;  %v612_v22 = vadd.f32 %v4760_v18, %v5354_v58  ;;  %v1560_v41 = vld [vmem:[#allocation2 + $0x120] sm:$0xff] }
 0x128   :  { %v699_v11 = vmax.f32 %v601_v15, 0.0  ;;  %4844 = vmatpush3.bf16.msra.mxu0 %v3637_v26  ;;  %v1559_v26 = vld [vmem:[#allocation2 + $0x110] sm:$0xff] }
 0x129   :  { %886 = vst.msk [vmem:[#allocation2 + $0x2d1] sm:$0xff] %vm743_vm2, %v701_v17 }
 0x12a   :  { %1158 = vrot.lane.b32.xlu1 %v5668_v7, %s4988_s10  ;;  %2440 = vrot.lane.b32.xlu0 %v5450_v48, %s4991_s16  ;;  %v702_v48 = vmax.f32 %v612_v22, 0.0  ;;  %884 = vst.msk [vmem:[#allocation2 + $0x2b9] sm:$0xff] %vm743_vm2, %v699_v11 }
 0x12c   :  { %4808 = vmatmul.mubr.msk.bf16.gmra.mrb[68].mxu1 %vm743_vm2, %v5407_v4  ;;  %v603_v4 = vpop.f32.mrb[23].mxu1  ;;  %v5691_v30 = vpack.c.bf16 %v702_v48, %v701_v17  ;;  %887 = vst.msk [vmem:[#allocation2 + $0x2d9] sm:$0xff] %vm743_vm2, %v702_v48  ;;  %v5729_v17 = vpack.c.bf16 %v1561_v14, %v1560_v41 }
 0x12d   :  { %4811 = vmatprep.mubr.msk.bf16.mxu1 %vm743_vm2, %v5487_v20  ;;  %v604_v31 = vadd.f32 %v5354_v58, %v603_v4  ;;  %v4763_v50 = vpop.f32.mrb[24].mxu1  ;;  %v5695_v20 = vpack.c.bf16 %v1288_v29, %v1287_v28  ;;  %v1325_v28 = vld [vmem:[#allocation2 + $0x242] sm:$0xff]  ;;  %v1326_v29 = vld [vmem:[#allocation2 + $0x24a] sm:$0xff] }
 0x12e   :  { %1190 = vrot.lane.b32.xlu1 %v1107_v24, %s4988_s10  ;;  %2697 = vrot.lane.b32.xlu0 %v5668_v7, %s4993_s18  ;;  %v625_v38 = vadd.f32 %v4763_v50, %v5354_v58  ;;  %v616_v34 = vpop.f32.mrb[25].mxu1  ;;  %1004 = vst.msk [vmem:[#allocation3 + $0x60] sm:$0xff] %vm743_vm2, %v5729_v17  ;;  %v1546_v50 = vld [vmem:[#allocation2 + $0x78] sm:$0xff] }
 0x12f   :  { %v700_v40 = vmax.f32 %v604_v31, 0.0  ;;  %v617_v44 = vadd.f32 %v5354_v58, %v616_v34  ;;  %v4764_v19 = vpop.f32.mrb[26].mxu1  ;;  %v1579_v34 = vld [vmem:[#allocation2 + $0x230] sm:$0xff] }
 0x130   :  { %v705_v45 = vmax.f32 %v625_v38, 0.0  ;;  %v628_v59 = vadd.f32 %v4764_v19, %v5354_v58  ;;  %v619_v10 = vpop.f32.mrb[27].mxu1  ;;  %v1578_v38 = vld [vmem:[#allocation2 + $0x228] sm:$0xff] }
 0x131   :  { %v5705_v39 = vpack.c.bf16 %v700_v40, %v699_v11  ;;  %885 = vst.msk [vmem:[#allocation2 + $0x2c1] sm:$0xff] %vm743_vm2, %v700_v40  ;;  %v703_v49 = vmax.f32 %v617_v44, 0.0  ;;  %v620_v61 = vadd.f32 %v5354_v58, %v619_v10  ;;  %v4767_v62 = vpop.f32.mrb[28].mxu1  ;;  %v1558_v11 = vld [vmem:[#allocation2 + $0x108] sm:$0xff]  ;;  %v1622_v37 = vpack.c.bf16 %v1579_v34, %v1578_v38  ;;  %v1067_v44 = vld [vmem:[#allocation2 + $0x231] sm:$0xff]  ;;  %v1070_v34 = vld [vmem:[#allocation2 + $0x259] sm:$0xff] }
 0x132   :  { %1415 = vrot.lane.b32.xlu1 %v5695_v20, %s4989_s0  ;;  %2954 = vrot.lane.b32.xlu0 %v5695_v20, %s4995_s20  ;;  %890 = vst.msk [vmem:[#allocation2 + $0x301] sm:$0xff] %vm743_vm2, %v705_v45  ;;  %v706_v63 = vmax.f32 %v628_v59, 0.0  ;;  %v641_v56 = vadd.f32 %v4767_v62, %v5354_v58  ;;  %v632_v2 = vpop.f32.mrb[29].mxu1  ;;  %v5736_v48 = vpack.c.bf16 %v1559_v26, %v1558_v11  ;;  %v1066_v40 = vld [vmem:[#allocation2 + $0x229] sm:$0xff]  ;;  %v1040_v19 = vld [vmem:[#allocation2 + $0xc1] sm:$0xff]  ;;  %v1072_v62 = vld [vmem:[#allocation2 + $0x271] sm:$0xff] }
 0x133   :  { %888 = vst.msk [vmem:[#allocation2 + $0x2e9] sm:$0xff] %vm743_vm2, %v703_v49  ;;  %v704_v25 = vmax.f32 %v620_v61, 0.0  ;;  %v633_v42 = vadd.f32 %v5354_v58, %v632_v2  ;;  %v4768_v6 = vpop.f32.mrb[30].mxu1  ;;  %v953_v31 = vld [vmem:[#allocation2 + $0x2d8] sm:$0xff]  ;;  %v1041_v59 = vld [vmem:[#allocation2 + $0xc9] sm:$0xff] }
 0x134   :  { %4812 = vmatmul.mubr.msk.bf16.gmra.mrb[72].mxu1 %vm743_vm2, %v5463_v57  ;;  %v1110_v57 = vpack.c.bf16 %v1069_v55, %v1068_v53  ;;  %v5721_v46 = vpack.c.bf16 %v706_v63, %v705_v45  ;;  %891 = vst.msk [vmem:[#allocation2 + $0x309] sm:$0xff] %vm743_vm2, %v706_v63  ;;  %v709_v21 = vmax.f32 %v641_v56, 0.0  ;;  %v644_v60 = vadd.f32 %v4768_v6, %v5354_v58  ;;  %v635_v13 = vpop.f32.mrb[31].mxu1  ;;  %v1291_v45 = vld [vmem:[#allocation2 + $0x7a] sm:$0xff] }
 0x135   :  { %4815 = vmatprep.mubr.msk.bf16.mxu1 %vm743_vm2, %v5532_v8  ;;  %v1294_v8 = vld [vmem:[#allocation2 + $0x9a] sm:$0xff]  ;;  %v739_v15 = vpack.c.bf16 %v704_v25, %v703_v49  ;;  %889 = vst.msk [vmem:[#allocation2 + $0x2f1] sm:$0xff] %vm743_vm2, %v704_v25  ;;  %v707_v18 = vmax.f32 %v633_v42, 0.0  ;;  %v636_v16 = vadd.f32 %v5354_v58, %v635_v13  ;;  %1003 = vst.msk [vmem:[#allocation3 + $0x58] sm:$0xff] %vm743_vm2, %v5736_v48  ;;  %v1323_v49 = vld [vmem:[#allocation2 + $0x22a] sm:$0xff] }
 0x136   :  { %1447 = vrot.lane.b32.xlu1 %v1364_v51, %s4989_s0  ;;  %1164 = vrot.lane.b32.xlu0 %v5703_v47, %s4988_s10  ;;  %v1351_v22 = vpack.c.bf16 %v1294_v8, %v1293_v3  ;;  %894 = vst.msk [vmem:[#allocation2 + $0x331] sm:$0xff] %vm743_vm2, %v709_v21  ;;  %v710_v24 = vmax.f32 %v644_v60, 0.0  ;;  %v1324_v51 = vld [vmem:[#allocation2 + $0x232] sm:$0xff]  ;;  %v1096_v61 = vpack.c.bf16 %v1041_v59, %v1040_v19  ;;  %v1563_v60 = vld [vmem:[#allocation2 + $0x140] sm:$0xff] }
 0x137   :  { %892 = vst.msk [vmem:[#allocation2 + $0x319] sm:$0xff] %vm743_vm2, %v707_v18  ;;  %v1366_v55 = vpack.c.bf16 %v1324_v51, %v1323_v49  ;;  %v1073_v63 = vld [vmem:[#allocation2 + $0x279] sm:$0xff]  ;;  %v1564_v8 = vld [vmem:[#allocation2 + $0x150] sm:$0xff]  ;;  %v1328_v59 = vld [vmem:[#allocation2 + $0x262] sm:$0xff] }
 0x138   :  { %v742_v58 = vpack.c.bf16 %v710_v24, %v709_v21  ;;  %895 = vst.msk [vmem:[#allocation2 + $0x339] sm:$0xff] %vm743_vm2, %v710_v24  ;;  %v950_v56 = vld [vmem:[#allocation2 + $0x2b8] sm:$0xff]  ;;  %v951_v2 = vld [vmem:[#allocation2 + $0x2c0] sm:$0xff] }
 0x139   :  { %v1565_v25 = vld [vmem:[#allocation2 + $0x158] sm:$0xff]  ;;  %v5788_v42 = vpack.c.bf16 %v951_v2, %v950_v56 }
 0x13a   :  { %1927 = vrot.lane.b32.xlu1 %v5668_v7, %s4992_s17  ;;  %1196 = vrot.lane.b32.xlu0 %v1110_v57, %s4988_s10  ;;  %v708_v7 = vmax.f32 %v636_v16, 0.0  ;;  %v5792_v6 = vpack.c.bf16 %v1565_v25, %v1564_v8  ;;  %v1562_v21 = vld [vmem:[#allocation2 + $0x138] sm:$0xff]  ;;  %v954_v2 = vld [vmem:[#allocation2 + $0x2e8] sm:$0xff] }
 0x13b   :  { %1019 = vst.msk [vmem:[#allocation3 + $0xd8] sm:$0xff] %vm743_vm2, %v5788_v42  ;;  %v5799_v41 = vpack.c.bf16 %v1563_v60, %v1562_v21  ;;  %v1330_v24 = vld [vmem:[#allocation2 + $0x27a] sm:$0xff]  ;;  %v1296_v49 = vld [vmem:[#allocation2 + $0xb2] sm:$0xff]  ;;  %v957_v56 = vld [vmem:[#allocation2 + $0x308] sm:$0xff] }
 0x13c   :  { %4816 = vmatmul.mubr.msk.bf16.gmra.mrb[76].mxu1 %vm743_vm2, %v5511_v43  ;;  %v741_v4 = vpack.c.bf16 %v708_v7, %v707_v18  ;;  %893 = vst.msk [vmem:[#allocation2 + $0x321] sm:$0xff] %vm743_vm2, %v708_v7  ;;  %v1367_v43 = vpack.c.bf16 %v1326_v29, %v1325_v28  ;;  %1006 = vst.msk [vmem:[#allocation3 + $0x70] sm:$0xff] %vm743_vm2, %v5792_v6  ;;  %v1298_v18 = vld [vmem:[#allocation2 + $0xca] sm:$0xff]  ;;  %v1327_v19 = vld [vmem:[#allocation2 + $0x25a] sm:$0xff] }
 0x13d   :  { %4819 = vmatprep.mubr.msk.bf16.mxu1 %vm743_vm2, %v5585_v23  ;;  %v952_v23 = vld [vmem:[#allocation2 + $0x2d0] sm:$0xff]  ;;  %1005 = vst.msk [vmem:[#allocation3 + $0x68] sm:$0xff] %vm743_vm2, %v5799_v41 }
 0x13e   :  { %2184 = vrot.lane.b32.xlu1 %v5695_v20, %s4994_s19  ;;  %1421 = vrot.lane.b32.xlu0 %v1351_v22, %s4989_s0  ;;  %v1547_v20 = vld [vmem:[#allocation2 + $0x80] sm:$0xff]  ;;  %v5762_v32 = vpack.c.bf16 %v953_v31, %v952_v23  ;;  %v1038_v31 = vld [vmem:[#allocation2 + $0xa9] sm:$0xff] }
 0x13f   :  { %v955_v25 = vld [vmem:[#allocation2 + $0x2f0] sm:$0xff] }
 0x140   :  { %1020 = vst.msk [vmem:[#allocation3 + $0xe0] sm:$0xff] %vm743_vm2, %v5762_v32 }
 0x142   :  { %1676 = vrot.lane.b32.xlu1 %v5493_v27, %s4990_s2  ;;  %1453 = vrot.lane.b32.xlu0 %v1367_v43, %s4989_s0 }
 0x144   :  { %4820 = vmatmul.mubr.msk.bf16.gmra.mrb[80].mxu1 %vm743_vm2, %v5562_v52  ;;  %v1034_v52 = vld [vmem:[#allocation2 + $0x79] sm:$0xff] }
 0x145   :  { %4823 = vmatprep.mubr.msk.bf16.mxu1 %vm743_vm2, %v5705_v39  ;;  %v1093_v36 = vpack.c.bf16 %v1035_v33, %v1034_v52 }
 0x146   :  { %2446 = vrot.lane.b32.xlu1 %v5493_v27, %s4991_s16  ;;  %1933 = vrot.lane.b32.xlu0 %v5703_v47, %s4992_s17  ;;  %v1606_v27 = vpack.c.bf16 %v1547_v20, %v1546_v50  ;;  %v1039_v50 = vld [vmem:[#allocation2 + $0xb1] sm:$0xff] }
 0x147   :  { %v1551_v20 = vld [vmem:[#allocation2 + $0xb0] sm:$0xff]  ;;  %v5827_v52 = vpack.c.bf16 %v1039_v50, %v1038_v31 }
 0x14a   :  { %2703 = vrot.lane.b32.xlu1 %v5703_v47, %s4993_s18  ;;  %2190 = vrot.lane.b32.xlu0 %v1351_v22, %s4994_s19  ;;  %v1292_v47 = vld [vmem:[#allocation2 + $0x82] sm:$0xff] }
 0x14b   :  { %v1350_v39 = vpack.c.bf16 %v1292_v47, %v1291_v45 }
 0x14c   :  { %4824 = vmatmul.mubr.msk.bf16.gmra.mrb[84].mxu1 %vm743_vm2, %v5691_v30  ;;  %v1109_v30 = vpack.c.bf16 %v1067_v44, %v1066_v40  ;;  %v1567_v40 = vld [vmem:[#allocation2 + $0x170] sm:$0xff] }
 0x14d   :  { %4827 = vmatprep.mubr.msk.bf16.mxu1 %vm743_vm2, %v739_v15  ;;  %v1297_v15 = vld [vmem:[#allocation2 + $0xc2] sm:$0xff] }
 0x14e   :  { %2960 = vrot.lane.b32.xlu1 %v1351_v22, %s4995_s20  ;;  %1674 = vrot.lane.b32.xlu0 %v1606_v27, %s4990_s2  ;;  %v1329_v22 = vld [vmem:[#allocation2 + $0x272] sm:$0xff]  ;;  %v1353_v26 = vpack.c.bf16 %v1298_v18, %v1297_v15 }
 0x14f   :  { %v1369_v28 = vpack.c.bf16 %v1330_v24, %v1329_v22  ;;  %v1301_v24 = vld [vmem:[#allocation2 + $0xf2] sm:$0xff] }
 0x152   :  { %1162 = vrot.lane.b32.xlu1 %v1093_v36, %s4988_s10  ;;  %1706 = vrot.lane.b32.xlu0 %v1622_v37, %s4990_s2  ;;  %v1566_v37 = vld [vmem:[#allocation2 + $0x168] sm:$0xff] }
 0x153   :  { %v5837_v44 = vpack.c.bf16 %v1567_v40, %v1566_v37 }
 0x154   :  { %4828 = vmatmul.mubr.msk.bf16.gmra.mrb[88].mxu1 %vm743_vm2, %v5721_v46  ;;  %v1112_v46 = vpack.c.bf16 %v1073_v63, %v1072_v62  ;;  %v956_v63 = vld [vmem:[#allocation2 + $0x300] sm:$0xff] }
 0x155   :  { %4831 = vmatprep.mubr.msk.bf16.mxu1 %vm743_vm2, %v741_v4  ;;  %1007 = vst.msk [vmem:[#allocation3 + $0x78] sm:$0xff] %vm743_vm2, %v5837_v44  ;;  %v5854_v8 = vpack.c.bf16 %v957_v56, %v956_v63  ;;  %v1049_v63 = vld [vmem:[#allocation2 + $0x129] sm:$0xff] }
 0x156   :  { %1194 = vrot.lane.b32.xlu1 %v1109_v30, %s4988_s10  ;;  %2444 = vrot.lane.b32.xlu0 %v1606_v27, %s4991_s16 }
 0x157   :  { %1022 = vst.msk [vmem:[#allocation3 + $0xf0] sm:$0xff] %vm743_vm2, %v5854_v8 }
 0x15a   :  { %1419 = vrot.lane.b32.xlu1 %v1350_v39, %s4989_s0  ;;  %2701 = vrot.lane.b32.xlu0 %v1093_v36, %s4993_s18 }
 0x15c   :  { %v1157_v53 = vpop.permute.xlu1 %1156  ;;  %4832 = vmatmul.mubr.msk.bf16.gmra.mrb[92].mxu1 %vm743_vm2, %v742_v58  ;;  %v1189_v10 = vpop.permute.xlu0 %1188 }
 0x15d   :  { %1251 = vst.msk [vmem:[#allocation3 + $0x10] sm:$0xff] %vm1248_vm6, %v1157_v53  ;;  %1267 = vst.msk [vmem:[#allocation3 + $0x90] sm:$0xff] %vm1248_vm6, %v1189_v10  ;;  %v1044_v10 = vld [vmem:[#allocation2 + $0xf1] sm:$0xff] }
 0x15e   :  { %1451 = vrot.lane.b32.xlu1 %v1366_v55, %s4989_s0  ;;  %2958 = vrot.lane.b32.xlu0 %v1350_v39, %s4995_s20 }
 0x160   :  { %v5786_v57 = vpop.permute.xlu1 %1668  ;;  %v1414_v3 = vpop.permute.xlu0 %1413 }
 0x161   :  { %1508 = vst.msk [vmem:[#allocation3 + $0x10] sm:$0xff] %vm1505_vm7, %v1414_v3 }
 0x162   :  { %1931 = vrot.lane.b32.xlu1 %v1093_v36, %s4992_s17  ;;  %1168 = vrot.lane.b32.xlu0 %v1096_v61, %s4988_s10  ;;  %v1071_v36 = vld [vmem:[#allocation2 + $0x261] sm:$0xff] }
 0x163   :  { %v1111_v45 = vpack.c.bf16 %v1071_v36, %v1070_v34  ;;  %v1043_v34 = vld [vmem:[#allocation2 + $0xe1] sm:$0xff] }
 0x164   :  { %v5797_v13 = vpop.permute.xlu1 %1700  ;;  %v1446_v14 = vpop.permute.xlu0 %1445 }
 0x165   :  { %1524 = vst.msk [vmem:[#allocation3 + $0x90] sm:$0xff] %vm1505_vm7, %v1446_v14  ;;  %v1077_v14 = vld [vmem:[#allocation2 + $0x2a9] sm:$0xff] }
 0x166   :  { %2188 = vrot.lane.b32.xlu1 %v1350_v39, %s4994_s19  ;;  %1200 = vrot.lane.b32.xlu0 %v1112_v46, %s4988_s10  ;;  %v1295_v39 = vld [vmem:[#allocation2 + $0xaa] sm:$0xff]  ;;  %v5860_v46 = vpack.c.bf16 %v955_v25, %v954_v2 }
 0x167   :  { %v1352_v53 = vpack.c.bf16 %v1296_v49, %v1295_v39 }
 0x168   :  { %v5808_v16 = vpop.permute.xlu1 %2438  ;;  %v1926_v11 = vpop.permute.xlu0 %1925  ;;  %1021 = vst.msk [vmem:[#allocation3 + $0xe8] sm:$0xff] %vm743_vm2, %v5860_v46 }
 0x16a   :  { %1680 = vrot.lane.b32.xlu1 %v5525_v0, %s4990_s2  ;;  %1425 = vrot.lane.b32.xlu0 %v1353_v26, %s4989_s0 }
 0x16c   :  { %v5813_v29 = vpop.permute.xlu1 %2695  ;;  %v2183_v7 = vpop.permute.xlu0 %2182 }
 0x16e   :  { %2450 = vrot.lane.b32.xlu1 %v5525_v0, %s4991_s16  ;;  %1457 = vrot.lane.b32.xlu0 %v1369_v28, %s4989_s0  ;;  %v1550_v0 = vld [vmem:[#allocation2 + $0xa8] sm:$0xff] }
 0x16f   :  { %v1608_v38 = vpack.c.bf16 %v1551_v20, %v1550_v0 }
 0x170   :  { %v5818_v58 = vpop.permute.xlu1 %2952  ;;  %v1155_v4 = vpop.permute.xlu0 %1154 }
 0x171   :  { %1250 = vst.msk [vmem:[#allocation3 + $0x8] sm:$0xff] %vm1248_vm6, %v1155_v4 }
 0x172   :  { %2707 = vrot.lane.b32.xlu1 %v1096_v61, %s4993_s18  ;;  %1937 = vrot.lane.b32.xlu0 %v1096_v61, %s4992_s17  ;;  %v1045_v61 = vld [vmem:[#allocation2 + $0xf9] sm:$0xff] }
 0x173   :  { %v1098_v21 = vpack.c.bf16 %v1045_v61, %v1044_v10  ;;  %v1331_v10 = vld [vmem:[#allocation2 + $0x28a] sm:$0xff]  ;;  %v1332_v61 = vld [vmem:[#allocation2 + $0x292] sm:$0xff] }
 0x174   :  { %v1187_v43 = vpop.permute.xlu1 %1186  ;;  %v1667_v23 = vpop.permute.xlu0 %1666 }
 0x175   :  { %1266 = vst.msk [vmem:[#allocation3 + $0x88] sm:$0xff] %vm1248_vm6, %v1187_v43 }
 0x176   :  { %1763 = vst.msk [vmem:[#allocation3] sm:$0xff] %vm1762_vm8, %v1667_v23  ;;  %2964 = vrot.lane.b32.xlu1 %v1353_v26, %s4995_s20  ;;  %2194 = vrot.lane.b32.xlu0 %v1353_v26, %s4994_s19 }
 0x178   :  { %v1412_v27 = vpop.permute.xlu1 %1411  ;;  %v1699_v33 = vpop.permute.xlu0 %1698 }
 0x179   :  { %1507 = vst.msk [vmem:[#allocation3 + $0x8] sm:$0xff] %vm1505_vm7, %v1412_v27  ;;  %v958_v27 = vld [vmem:[#allocation2 + $0x318] sm:$0xff] }
 0x17a   :  { %1764 = vst.msk [vmem:[#allocation3 + $0x8] sm:$0xff] %vm1762_vm8, %v5786_v57  ;;  %1779 = vst.msk [vmem:[#allocation3 + $0x80] sm:$0xff] %vm1762_vm8, %v1699_v33  ;;  %1166 = vrot.lane.b32.xlu1 %v5827_v52, %s4988_s10  ;;  %1678 = vrot.lane.b32.xlu0 %v1608_v38, %s4990_s2  ;;  %v1368_v57 = vpack.c.bf16 %v1328_v59, %v1327_v19 }
 0x17b   :  { %2021 = vst.msk [vmem:[#allocation3 + $0x8] sm:$0xff] %vm2019_vm9, %v1926_v11  ;;  %v1302_v11 = vld [vmem:[#allocation2 + $0xfa] sm:$0xff] }
 0x17c   :  { %v1444_v30 = vpop.permute.xlu1 %1443  ;;  %2278 = vst.msk [vmem:[#allocation3 + $0x8] sm:$0xff] %vm2276_vm10, %v2183_v7  ;;  %v1161_v47 = vpop.permute.xlu0 %1160  ;;  %v1334_v7 = vld [vmem:[#allocation2 + $0x2aa] sm:$0xff]  ;;  %v1355_v4 = vpack.c.bf16 %v1302_v11, %v1301_v24 }
 0x17d   :  { %1523 = vst.msk [vmem:[#allocation3 + $0x88] sm:$0xff] %vm1505_vm7, %v1444_v30  ;;  %v1074_v30 = vld [vmem:[#allocation2 + $0x289] sm:$0xff] }
 0x17e   :  { %1780 = vst.msk [vmem:[#allocation3 + $0x88] sm:$0xff] %vm1762_vm8, %v5797_v13  ;;  %1198 = vrot.lane.b32.xlu1 %v1111_v45, %s4988_s10  ;;  %2448 = vrot.lane.b32.xlu0 %v1608_v38, %s4991_s16  ;;  %v1076_v13 = vld [vmem:[#allocation2 + $0x2a1] sm:$0xff]  ;;  %v1042_v38 = vld [vmem:[#allocation2 + $0xd9] sm:$0xff]  ;;  %v1075_v45 = vld [vmem:[#allocation2 + $0x291] sm:$0xff] }
 0x17f   :  { %1253 = vst.msk [vmem:[#allocation3 + $0x20] sm:$0xff] %vm1248_vm6, %v1161_v47  ;;  %v1114_v18 = vpack.c.bf16 %v1077_v14, %v1076_v13  ;;  %v1097_v37 = vpack.c.bf16 %v1043_v34, %v1042_v38  ;;  %v1113_v39 = vpack.c.bf16 %v1075_v45, %v1074_v30 }
 0x180   :  { %v1924_v51 = vpop.permute.xlu1 %1923  ;;  %v1193_v55 = vpop.permute.xlu0 %1192 }
 0x181   :  { %2020 = vst.msk [vmem:[#allocation3] sm:$0xff] %vm2019_vm9, %v1924_v51  ;;  %v1299_v51 = vld [vmem:[#allocation2 + $0xda] sm:$0xff] }
 0x182   :  { %1269 = vst.msk [vmem:[#allocation3 + $0xa0] sm:$0xff] %vm1248_vm6, %v1193_v55  ;;  %1423 = vrot.lane.b32.xlu1 %v1352_v53, %s4989_s0  ;;  %2705 = vrot.lane.b32.xlu0 %v5827_v52, %s4993_s18 }
 0x184   :  { %v2181_v62 = vpop.permute.xlu1 %2180  ;;  %v1418_v3 = vpop.permute.xlu0 %1417 }
 0x185   :  { %2277 = vst.msk [vmem:[#allocation3] sm:$0xff] %vm2276_vm10, %v2181_v62 }
 0x186   :  { %2535 = vst.msk [vmem:[#allocation3] sm:$0xff] %vm2534_vm11, %v5808_v16  ;;  %1455 = vrot.lane.b32.xlu1 %v1368_v57, %s4989_s0  ;;  %2962 = vrot.lane.b32.xlu0 %v1352_v53, %s4995_s20  ;;  %v1048_v57 = vld [vmem:[#allocation2 + $0x121] sm:$0xff] }
 0x187   :  { %1510 = vst.msk [vmem:[#allocation3 + $0x20] sm:$0xff] %vm1505_vm7, %v1418_v3  ;;  %v1100_v3 = vpack.c.bf16 %v1049_v63, %v1048_v57 }
 0x188   :  { %2792 = vst.msk [vmem:[#allocation3] sm:$0xff] %vm2791_vm12, %v5813_v29  ;;  %v5869_v60 = vpop.permute.xlu1 %1672  ;;  %v1450_v15 = vpop.permute.xlu0 %1449  ;;  %v1333_v29 = vld [vmem:[#allocation2 + $0x2a2] sm:$0xff] }
 0x189   :  { %3049 = vst.msk [vmem:[#allocation3] sm:$0xff] %vm3048_vm13, %v5818_v58  ;;  %v1371_v43 = vpack.c.bf16 %v1334_v7, %v1333_v29  ;;  %v1338_v29 = vld [vmem:[#allocation2 + $0x2da] sm:$0xff] }
 0x18a   :  { %1526 = vst.msk [vmem:[#allocation3 + $0xa0] sm:$0xff] %vm1505_vm7, %v1450_v15  ;;  %1935 = vrot.lane.b32.xlu1 %v5827_v52, %s4992_s17  ;;  %1172 = vrot.lane.b32.xlu0 %v1098_v21, %s4988_s10  ;;  %v959_v52 = vld [vmem:[#allocation2 + $0x320] sm:$0xff] }
 0x18c   :  { %v5877_v16 = vpop.permute.xlu1 %1704  ;;  %v1930_v22 = vpop.permute.xlu0 %1929 }
 0x18e   :  { %2192 = vrot.lane.b32.xlu1 %v1352_v53, %s4994_s19  ;;  %1204 = vrot.lane.b32.xlu0 %v1114_v18, %s4988_s10  ;;  %v1300_v53 = vld [vmem:[#allocation2 + $0xe2] sm:$0xff] }
 0x18f   :  { %v1354_v19 = vpack.c.bf16 %v1300_v53, %v1299_v51  ;;  %v1078_v51 = vld [vmem:[#allocation2 + $0x2b9] sm:$0xff]  ;;  %v1079_v53 = vld [vmem:[#allocation2 + $0x2c1] sm:$0xff] }
 0x190   :  { %v3471_v26 = vld [vmem:[#allocation3] sm:$0xff]  ;;  %v5881_v28 = vpop.permute.xlu1 %2442  ;;  %v2187_v58 = vpop.permute.xlu0 %2186 }
 0x191   :  { %4845 = vmatprep.mubr.msk.bf16.mxu0 %vm3539_vm14, %v3471_v26 }
 0x192   :  { %1684 = vrot.lane.b32.xlu1 %v5602_v35, %s4990_s2  ;;  %1429 = vrot.lane.b32.xlu0 %v1355_v4, %s4989_s0 }
 0x194   :  { %v5887_v23 = vpop.permute.xlu1 %2699  ;;  %v1671_v31 = vpop.permute.xlu0 %1670 }
 0x195   :  { %1765 = vst.msk [vmem:[#allocation3 + $0x10] sm:$0xff] %vm1762_vm8, %v1671_v31 }
 0x196   :  { %2454 = vrot.lane.b32.xlu1 %v5602_v35, %s4991_s16  ;;  %1461 = vrot.lane.b32.xlu0 %v1371_v43, %s4989_s0  ;;  %v5899_v35 = vpack.c.bf16 %v959_v52, %v958_v27 }
 0x198   :  { %v5893_v50 = vpop.permute.xlu1 %2956  ;;  %v1703_v0 = vpop.permute.xlu0 %1702  ;;  %1023 = vst.msk [vmem:[#allocation3 + $0xf8] sm:$0xff] %vm743_vm2, %v5899_v35 }
 0x199   :  { %1781 = vst.msk [vmem:[#allocation3 + $0x90] sm:$0xff] %vm1762_vm8, %v1703_v0 }
 0x19a   :  { %2711 = vrot.lane.b32.xlu1 %v1098_v21, %s4993_s18  ;;  %1941 = vrot.lane.b32.xlu0 %v1098_v21, %s4992_s17  ;;  %v1080_v21 = vld [vmem:[#allocation2 + $0x2d1] sm:$0xff] }
 0x19c   :  { %v1159_v20 = vpop.permute.xlu1 %1158  ;;  %v2441_v33 = vpop.permute.xlu0 %2440 }
 0x19d   :  { %1252 = vst.msk [vmem:[#allocation3 + $0x18] sm:$0xff] %vm1248_vm6, %v1159_v20 }
 0x19e   :  { %2536 = vst.msk [vmem:[#allocation3 + $0x8] sm:$0xff] %vm2534_vm11, %v2441_v33  ;;  %2968 = vrot.lane.b32.xlu1 %v1355_v4, %s4995_s20  ;;  %2198 = vrot.lane.b32.xlu0 %v1355_v4, %s4994_s19 }
 0x1a0   :  { %v1191_v36 = vpop.permute.xlu1 %1190  ;;  %v2698_v40 = vpop.permute.xlu0 %2697 }
 0x1a1   :  { %1268 = vst.msk [vmem:[#allocation3 + $0x98] sm:$0xff] %vm1248_vm6, %v1191_v36 }
 0x1a2   :  { %2793 = vst.msk [vmem:[#allocation3 + $0x8] sm:$0xff] %vm2791_vm12, %v2698_v40  ;;  %1170 = vrot.lane.b32.xlu1 %v1097_v37, %s4988_s10  ;;  %1682 = vrot.lane.b32.xlu0 %v5610_v12, %s4990_s2  ;;  %v1047_v40 = vld [vmem:[#allocation2 + $0x111] sm:$0xff] }
 0x1a4   :  { %v1416_v47 = vpop.permute.xlu1 %1415  ;;  %v2955_v49 = vpop.permute.xlu0 %2954 }
 0x1a5   :  { %1509 = vst.msk [vmem:[#allocation3 + $0x18] sm:$0xff] %vm1505_vm7, %v1416_v47 }
 0x1a6   :  { %1766 = vst.msk [vmem:[#allocation3 + $0x18] sm:$0xff] %vm1762_vm8, %v5869_v60  ;;  %1202 = vrot.lane.b32.xlu1 %v1113_v39, %s4988_s10  ;;  %2452 = vrot.lane.b32.xlu0 %v5610_v12, %s4991_s16  ;;  %v1370_v12 = vpack.c.bf16 %v1332_v61, %v1331_v10  ;;  %v1081_v60 = vld [vmem:[#allocation2 + $0x2d9] sm:$0xff]  ;;  %v1115_v10 = vpack.c.bf16 %v1079_v53, %v1078_v51  ;;  %v1342_v51 = vld [vmem:[#allocation2 + $0x30a] sm:$0xff] }
 0x1a7   :  { %3050 = vst.msk [vmem:[#allocation3 + $0x8] sm:$0xff] %vm3048_vm13, %v2955_v49  ;;  %v1116_v14 = vpack.c.bf16 %v1081_v60, %v1080_v21  ;;  %v1336_v21 = vld [vmem:[#allocation2 + $0x2c2] sm:$0xff] }
 0x1a8   :  { %2023 = vst.msk [vmem:[#allocation3 + $0x18] sm:$0xff] %vm2019_vm9, %v1930_v22  ;;  %v1448_v55 = vpop.permute.xlu1 %1447  ;;  %v1165_v59 = vpop.permute.xlu0 %1164  ;;  %v1306_v22 = vld [vmem:[#allocation2 + $0x12a] sm:$0xff] }
 0x1a9   :  { %2280 = vst.msk [vmem:[#allocation3 + $0x18] sm:$0xff] %vm2276_vm10, %v2187_v58 }
 0x1aa   :  { %1525 = vst.msk [vmem:[#allocation3 + $0x98] sm:$0xff] %vm1505_vm7, %v1448_v55  ;;  %1427 = vrot.lane.b32.xlu1 %v1354_v19, %s4989_s0  ;;  %2709 = vrot.lane.b32.xlu0 %v1097_v37, %s4993_s18 }
 0x1ab   :  { %1782 = vst.msk [vmem:[#allocation3 + $0x98] sm:$0xff] %vm1762_vm8, %v5877_v16  ;;  %v1305_v16 = vld [vmem:[#allocation2 + $0x122] sm:$0xff] }
 0x1ac   :  { %1255 = vst.msk [vmem:[#allocation3 + $0x30] sm:$0xff] %vm1248_vm6, %v1165_v59  ;;  %v1928_v62 = vpop.permute.xlu1 %1927  ;;  %v1197_v56 = vpop.permute.xlu0 %1196  ;;  %v1357_v4 = vpack.c.bf16 %v1306_v22, %v1305_v16 }
 0x1ad   :  { %2022 = vst.msk [vmem:[#allocation3 + $0x10] sm:$0xff] %vm2019_vm9, %v1928_v62  ;;  %v1303_v62 = vld [vmem:[#allocation2 + $0x10a] sm:$0xff] }
 0x1ae   :  { %v3472_v2 = vld [vmem:[#allocation3 + $0x8] sm:$0xff]  ;;  %1271 = vst.msk [vmem:[#allocation3 + $0xb0] sm:$0xff] %vm1248_vm6, %v1197_v56  ;;  %1459 = vrot.lane.b32.xlu1 %v1370_v12, %s4989_s0  ;;  %2966 = vrot.lane.b32.xlu0 %v1354_v19, %s4995_s20  ;;  %v1304_v12 = vld [vmem:[#allocation2 + $0x112] sm:$0xff] }
 0x1af   :  { %4846 = vmatmul.mubr.msk.bf16.vlgmr.msra.gmra.mrb[32].mxu0 %vm3539_vm14, %v3472_v2  ;;  %v1356_v56 = vpack.c.bf16 %v1304_v12, %v1303_v62 }
 0x1b0   :  { %v2185_v25 = vpop.permute.xlu1 %2184  ;;  %v1422_v13 = vpop.permute.xlu0 %1421 }
 0x1b1   :  { %2279 = vst.msk [vmem:[#allocation3 + $0x10] sm:$0xff] %vm2276_vm10, %v2185_v25  ;;  %v1335_v25 = vld [vmem:[#allocation2 + $0x2ba] sm:$0xff] }
 0x1b2   :  { %2537 = vst.msk [vmem:[#allocation3 + $0x10] sm:$0xff] %vm2534_vm11, %v5881_v28  ;;  %1939 = vrot.lane.b32.xlu1 %v1097_v37, %s4992_s17  ;;  %1176 = vrot.lane.b32.xlu0 %v1100_v3, %s4988_s10  ;;  %v1337_v28 = vld [vmem:[#allocation2 + $0x2d2] sm:$0xff]  ;;  %v1046_v37 = vld [vmem:[#allocation2 + $0x109] sm:$0xff] }
 0x1b3   :  { %1512 = vst.msk [vmem:[#allocation3 + $0x30] sm:$0xff] %vm1505_vm7, %v1422_v13  ;;  %v1373_v31 = vpack.c.bf16 %v1338_v29, %v1337_v28  ;;  %v1099_v47 = vpack.c.bf16 %v1047_v40, %v1046_v37  ;;  %v1309_v40 = vld [vmem:[#allocation2 + $0x152] sm:$0xff] }
 0x1b4   :  { %2794 = vst.msk [vmem:[#allocation3 + $0x10] sm:$0xff] %vm2791_vm12, %v5887_v23  ;;  %v1677_v15 = vpop.permute.xlu1 %1676  ;;  %v1454_v18 = vpop.permute.xlu0 %1453 }
 0x1b5   :  { %3051 = vst.msk [vmem:[#allocation3 + $0x10] sm:$0xff] %vm3048_vm13, %v5893_v50 }
 0x1b6   :  { %1528 = vst.msk [vmem:[#allocation3 + $0xb0] sm:$0xff] %vm1505_vm7, %v1454_v18  ;;  %2196 = vrot.lane.b32.xlu1 %v1354_v19, %s4994_s19  ;;  %1208 = vrot.lane.b32.xlu0 %v1116_v14, %s4988_s10  ;;  %v1372_v14 = vpack.c.bf16 %v1336_v21, %v1335_v25  ;;  %v1053_v18 = vld [vmem:[#allocation2 + $0x159] sm:$0xff] }
 0x1b7   :  { %v5944_v24 = vpop.f32.mrb[32].mxu1 }
 0x1b8   :  { %v5946_v11 = vpop.permute.xlu1 %2446  ;;  %v5948_v26 = vpop.f32.mrb[33].mxu1 }
 0x1b9   :  { %v1934_v7 = vpop.permute.xlu0 %1933  ;;  %v5950_v58 = vpop.f32.mrb[34].mxu1 }
 0x1ba   :  { %1688 = vrot.lane.b32.xlu1 %v5729_v17, %s4990_s2  ;;  %v5954_v43 = vpop.f32.mrb[35].mxu1  ;;  %1433 = vrot.lane.b32.xlu0 %v1357_v4, %s4989_s0 }
 0x1bc   :  { %v3473_v23 = vld [vmem:[#allocation3 + $0x10] sm:$0xff]  ;;  %v5957_v50 = vpop.permute.xlu1 %2703 }
 0x1bd   :  { %4849 = vmatprep.mubr.msk.bf16.mxu0 %vm3539_vm14, %v3473_v23  ;;  %v2191_v0 = vpop.permute.xlu0 %2190 }
 0x1be   :  { %2458 = vrot.lane.b32.xlu1 %v5729_v17, %s4991_s16  ;;  %1465 = vrot.lane.b32.xlu0 %v1373_v31, %s4989_s0 }
 0x1bf   :  { %v5963_v20 = vpop.f32.mrb[36].mxu1 }
 0x1c0   :  { %v5965_v27 = vpop.permute.xlu1 %2960  ;;  %v5967_v52 = vpop.f32.mrb[37].mxu1 }
 0x1c1   :  { %v1675_v33 = vpop.permute.xlu0 %1674  ;;  %v5969_v38 = vpop.f32.mrb[38].mxu1 }
 0x1c2   :  { %1767 = vst.msk [vmem:[#allocation3 + $0x20] sm:$0xff] %vm1762_vm8, %v1675_v33  ;;  %2715 = vrot.lane.b32.xlu1 %v1100_v3, %s4993_s18  ;;  %v5973_v34 = vpop.f32.mrb[39].mxu1  ;;  %1945 = vrot.lane.b32.xlu0 %v1100_v3, %s4992_s17 }
 0x1c4   :  { %v1163_v17 = vpop.permute.xlu1 %1162 }
 0x1c5   :  { %1254 = vst.msk [vmem:[#allocation3 + $0x28] sm:$0xff] %vm1248_vm6, %v1163_v17  ;;  %v1707_v36 = vpop.permute.xlu0 %1706 }
 0x1c6   :  { %1783 = vst.msk [vmem:[#allocation3 + $0xa0] sm:$0xff] %vm1762_vm8, %v1707_v36  ;;  %2972 = vrot.lane.b32.xlu1 %v1357_v4, %s4995_s20  ;;  %2202 = vrot.lane.b32.xlu0 %v1357_v4, %s4994_s19  ;;  %v1085_v4 = vld [vmem:[#allocation2 + $0x309] sm:$0xff] }
 0x1c7   :  { %v5980_v30 = vpop.f32.mrb[40].mxu1 }
 0x1c8   :  { %v1195_v45 = vpop.permute.xlu1 %1194  ;;  %v5982_v39 = vpop.f32.mrb[41].mxu1 }
 0x1c9   :  { %1270 = vst.msk [vmem:[#allocation3 + $0xa8] sm:$0xff] %vm1248_vm6, %v1195_v45  ;;  %v2445_v49 = vpop.permute.xlu0 %2444  ;;  %v5985_v55 = vpop.f32.mrb[42].mxu1  ;;  %v1310_v45 = vld [vmem:[#allocation2 + $0x15a] sm:$0xff] }
 0x1ca   :  { %2538 = vst.msk [vmem:[#allocation3 + $0x18] sm:$0xff] %vm2534_vm11, %v2445_v49  ;;  %1174 = vrot.lane.b32.xlu1 %v1099_v47, %s4988_s10  ;;  %v5989_v19 = vpop.f32.mrb[43].mxu1  ;;  %1686 = vrot.lane.b32.xlu0 %v5736_v48, %s4990_s2  ;;  %v1341_v49 = vld [vmem:[#allocation2 + $0x302] sm:$0xff] }
 0x1cc   :  { %v1420_v59 = vpop.permute.xlu1 %1419 }
 0x1cd   :  { %1511 = vst.msk [vmem:[#allocation3 + $0x28] sm:$0xff] %vm1505_vm7, %v1420_v59  ;;  %v2702_v61 = vpop.permute.xlu0 %2701  ;;  %v6050_v59 = vpack.c.bf16 %v1310_v45, %v1309_v40 }
 0x1ce   :  { %1768 = vst.msk [vmem:[#allocation3 + $0x28] sm:$0xff] %vm1762_vm8, %v1677_v15  ;;  %1206 = vrot.lane.b32.xlu1 %v1115_v10, %s4988_s10  ;;  %2456 = vrot.lane.b32.xlu0 %v5736_v48, %s4991_s16  ;;  %v1052_v15 = vld [vmem:[#allocation2 + $0x151] sm:$0xff]  ;;  %v1050_v10 = vld [vmem:[#allocation2 + $0x139] sm:$0xff] }
 0x1cf   :  { %2795 = vst.msk [vmem:[#allocation3 + $0x18] sm:$0xff] %vm2791_vm12, %v2702_v61  ;;  %v6000_v57 = vpop.f32.mrb[44].mxu1  ;;  %v6017_v22 = vpack.c.bf16 %v1053_v18, %v1052_v15  ;;  %v1051_v61 = vld [vmem:[#allocation2 + $0x141] sm:$0xff] }
 0x1d0   :  { %2025 = vst.msk [vmem:[#allocation3 + $0x28] sm:$0xff] %vm2019_vm9, %v1934_v7  ;;  %v1452_v63 = vpop.permute.xlu1 %1451  ;;  %v6003_v2 = vpop.f32.mrb[45].mxu1  ;;  %v1084_v7 = vld [vmem:[#allocation2 + $0x301] sm:$0xff]  ;;  %v1101_v25 = vpack.c.bf16 %v1051_v61, %v1050_v10 }
 0x1d1   :  { %2282 = vst.msk [vmem:[#allocation3 + $0x28] sm:$0xff] %vm2276_vm10, %v2191_v0  ;;  %v2959_v3 = vpop.permute.xlu0 %2958  ;;  %v6006_v60 = vpop.f32.mrb[46].mxu1  ;;  %v1118_v36 = vpack.c.bf16 %v1085_v4, %v1084_v7  ;;  %v1307_v4 = vld [vmem:[#allocation2 + $0x13a] sm:$0xff] }
 0x1d2   :  { %1527 = vst.msk [vmem:[#allocation3 + $0xa8] sm:$0xff] %vm1505_vm7, %v1452_v63  ;;  %1431 = vrot.lane.b32.xlu1 %v1356_v56, %s4989_s0  ;;  %v6010_v48 = vpop.f32.mrb[47].mxu1  ;;  %2713 = vrot.lane.b32.xlu0 %v1099_v47, %s4993_s18 }
 0x1d3   :  { %3052 = vst.msk [vmem:[#allocation3 + $0x18] sm:$0xff] %vm3048_vm13, %v2959_v3 }
 0x1d4   :  { %v1932_v13 = vpop.permute.xlu1 %1931 }
 0x1d5   :  { %2024 = vst.msk [vmem:[#allocation3 + $0x20] sm:$0xff] %vm2019_vm9, %v1932_v13  ;;  %v1169_v16 = vpop.permute.xlu0 %1168  ;;  %v1082_v13 = vld [vmem:[#allocation2 + $0x2e9] sm:$0xff] }
 0x1d6   :  { %1257 = vst.msk [vmem:[#allocation3 + $0x40] sm:$0xff] %vm1248_vm6, %v1169_v16  ;;  %1463 = vrot.lane.b32.xlu1 %v1372_v14, %s4989_s0  ;;  %2970 = vrot.lane.b32.xlu0 %v1356_v56, %s4995_s20  ;;  %v1083_v14 = vld [vmem:[#allocation2 + $0x2f1] sm:$0xff] }
 0x1d7   :  { %v6019_v28 = vpop.f32.mrb[48].mxu1  ;;  %v1117_v16 = vpack.c.bf16 %v1083_v14, %v1082_v13 }
 0x1d8   :  { %v2189_v29 = vpop.permute.xlu1 %2188  ;;  %v6021_v23 = vpop.f32.mrb[49].mxu1 }
 0x1d9   :  { %2281 = vst.msk [vmem:[#allocation3 + $0x20] sm:$0xff] %vm2276_vm10, %v2189_v29  ;;  %v1201_v31 = vpop.permute.xlu0 %1200  ;;  %v6024_v33 = vpop.f32.mrb[50].mxu1 }
 0x1da   :  { %v3474_v0 = vld [vmem:[#allocation3 + $0x18] sm:$0xff]  ;;  %2539 = vst.msk [vmem:[#allocation3 + $0x20] sm:$0xff] %vm2534_vm11, %v5946_v11  ;;  %1943 = vrot.lane.b32.xlu1 %v1099_v47, %s4992_s17  ;;  %v6031_v17 = vpop.f32.mrb[51].mxu1  ;;  %1180 = vrot.lane.b32.xlu0 %v6017_v22, %s4988_s10 }
 0x1db   :  { %1273 = vst.msk [vmem:[#allocation3 + $0xc0] sm:$0xff] %vm1248_vm6, %v1201_v31  ;;  %4850 = vmatmul.mubr.msk.bf16.gmra.mrb[36].mxu0 %vm3539_vm14, %v3474_v0  ;;  %v1308_v31 = vld [vmem:[#allocation2 + $0x142] sm:$0xff] }
 0x1dc   :  { %2796 = vst.msk [vmem:[#allocation3 + $0x20] sm:$0xff] %vm2791_vm12, %v5957_v50  ;;  %v6039_v37 = vpop.permute.xlu1 %1680  ;;  %v6079_v40 = vpack.c.bf16 %v1308_v31, %v1307_v4  ;;  %v1568_v4 = vld [vmem:[#allocation2 + $0x180] sm:$0xff]  ;;  %v1569_v31 = vld [vmem:[#allocation2 + $0x188] sm:$0xff] }
 0x1dd   :  { %3053 = vst.msk [vmem:[#allocation3 + $0x20] sm:$0xff] %vm3048_vm13, %v5965_v27  ;;  %v1426_v11 = vpop.permute.xlu0 %1425 }
 0x1de   :  { %1514 = vst.msk [vmem:[#allocation3 + $0x40] sm:$0xff] %vm1505_vm7, %v1426_v11  ;;  %2200 = vrot.lane.b32.xlu1 %v1356_v56, %s4994_s19  ;;  %1212 = vrot.lane.b32.xlu0 %v1118_v36, %s4988_s10  ;;  %v1375_v56 = vpack.c.bf16 %v1342_v51, %v1341_v49  ;;  %v1339_v49 = vld [vmem:[#allocation2 + $0x2ea] sm:$0xff]  ;;  %v1340_v51 = vld [vmem:[#allocation2 + $0x2f2] sm:$0xff] }
 0x1df   :  { %v6044_v47 = vpop.f32.mrb[52].mxu1  ;;  %v1374_v61 = vpack.c.bf16 %v1340_v51, %v1339_v49  ;;  %v6112_v51 = vpack.c.bf16 %v1569_v31, %v1568_v4  ;;  %v1087_v4 = vld [vmem:[#allocation2 + $0x321] sm:$0xff] }
 0x1e0   :  { %v6046_v50 = vpop.permute.xlu1 %2450  ;;  %v6048_v53 = vpop.f32.mrb[53].mxu1 }
 0x1e1   :  { %v1458_v27 = vpop.permute.xlu0 %1457  ;;  %v6052_v62 = vpop.f32.mrb[54].mxu1 }
 0x1e2   :  { %1530 = vst.msk [vmem:[#allocation3 + $0xc0] sm:$0xff] %vm1505_vm7, %v1458_v27  ;;  %1692 = vrot.lane.b32.xlu1 %v5792_v6, %s4990_s2  ;;  %v6057_v12 = vpop.f32.mrb[55].mxu1  ;;  %1437 = vrot.lane.b32.xlu0 %v6050_v59, %s4989_s0 }
 0x1e4   :  { %v3475_v63 = vld [vmem:[#allocation3 + $0x20] sm:$0xff]  ;;  %v6061_v3 = vpop.permute.xlu1 %2707 }
 0x1e5   :  { %4853 = vmatprep.mubr.msk.bf16.mxu0 %vm3539_vm14, %v3475_v63  ;;  %v1938_v21 = vpop.permute.xlu0 %1937 }
 0x1e6   :  { %1178 = vrot.lane.b32.xlu1 %v1101_v25, %s4988_s10  ;;  %1469 = vrot.lane.b32.xlu0 %v1375_v56, %s4989_s0 }
 0x1e7   :  { %v6066_v15 = vpop.f32.mrb[56].mxu1 }
 0x1e8   :  { %v6068_v18 = vpop.permute.xlu1 %2964  ;;  %v6070_v29 = vpop.f32.mrb[57].mxu1 }
 0x1e9   :  { %v2195_v7 = vpop.permute.xlu0 %2194  ;;  %v6072_v0 = vpop.f32.mrb[58].mxu1 }
 0x1ea   :  { %1210 = vrot.lane.b32.xlu1 %v1117_v16, %s4988_s10  ;;  %v6075_v36 = vpop.f32.mrb[59].mxu1  ;;  %1690 = vrot.lane.b32.xlu0 %v5799_v41, %s4990_s2 }
 0x1ec   :  { %v1167_v11 = vpop.permute.xlu1 %1166 }
 0x1ed   :  { %1256 = vst.msk [vmem:[#allocation3 + $0x38] sm:$0xff] %vm1248_vm6, %v1167_v11  ;;  %v1679_v45 = vpop.permute.xlu0 %1678 }
 0x1ee   :  { %1769 = vst.msk [vmem:[#allocation3 + $0x30] sm:$0xff] %vm1762_vm8, %v1679_v45  ;;  %1435 = vrot.lane.b32.xlu1 %v6079_v40, %s4989_s0  ;;  %2460 = vrot.lane.b32.xlu0 %v5799_v41, %s4991_s16 }
 0x1ef   :  { %v6087_v27 = vpop.f32.mrb[60].mxu1 }
 0x1f0   :  { %v1199_v10 = vpop.permute.xlu1 %1198  ;;  %v6089_v63 = vpop.f32.mrb[61].mxu1 }
 0x1f1   :  { %6949 = vst [vmem:[#allocation7_spill] sm:$0xff] %v6089_v63  ;;  %1272 = vst.msk [vmem:[#allocation3 + $0xb8] sm:$0xff] %vm1248_vm6, %v1199_v10  ;;  %v2449_v56 = vpop.permute.xlu0 %2448  ;;  %v6092_v13 = vpop.f32.mrb[62].mxu1 }
 0x1f2   :  { %2540 = vst.msk [vmem:[#allocation3 + $0x28] sm:$0xff] %vm2534_vm11, %v2449_v56  ;;  %1467 = vrot.lane.b32.xlu1 %v1374_v61, %s4989_s0  ;;  %v6096_v14 = vpop.f32.mrb[63].mxu1  ;;  %2717 = vrot.lane.b32.xlu0 %v1101_v25, %s4993_s18  ;;  %v1055_v61 = vld [vmem:[#allocation2 + $0x171] sm:$0xff] }
 0x1f3   :  { %6950 = vst [vmem:[#allocation8_spill] sm:$0xff] %v6096_v14  ;;  %v2598_v14 = vld [vmem:[#allocation2 + $0x1a1] sm:$0xff] }
 0x1f4   :  { %v1424_v41 = vpop.permute.xlu1 %1423 }
 0x1f5   :  { %1513 = vst.msk [vmem:[#allocation3 + $0x38] sm:$0xff] %vm1505_vm7, %v1424_v41  ;;  %v2706_v16 = vpop.permute.xlu0 %2705 }
 0x1f6   :  { %1770 = vst.msk [vmem:[#allocation3 + $0x38] sm:$0xff] %vm1762_vm8, %v6039_v37  ;;  %1947 = vrot.lane.b32.xlu1 %v1101_v25, %s4992_s17  ;;  %2974 = vrot.lane.b32.xlu0 %v6079_v40, %s4995_s20  ;;  %v1054_v25 = vld [vmem:[#allocation2 + $0x169] sm:$0xff] }
 0x1f7   :  { %2797 = vst.msk [vmem:[#allocation3 + $0x28] sm:$0xff] %vm2791_vm12, %v2706_v16  ;;  %v6107_v11 = vpop.f32.mrb[64].mxu1  ;;  %v6124_v56 = vpack.c.bf16 %v1055_v61, %v1054_v25  ;;  %v1086_v16 = vld [vmem:[#allocation2 + $0x319] sm:$0xff] }
 0x1f8   :  { %2027 = vst.msk [vmem:[#allocation3 + $0x38] sm:$0xff] %vm2019_vm9, %v1938_v21  ;;  %6951 = vst [vmem:[#allocation9_spill] sm:$0xff] %v6107_v11  ;;  %v1456_v45 = vpop.permute.xlu1 %1455  ;;  %v6110_v49 = vpop.f32.mrb[65].mxu1  ;;  %v1119_v25 = vpack.c.bf16 %v1087_v4, %v1086_v16  ;;  %v2341_v11 = vld [vmem:[#allocation2 + $0x1a0] sm:$0xff] }
 0x1f9   :  { %2284 = vst.msk [vmem:[#allocation3 + $0x38] sm:$0xff] %vm2276_vm10, %v2195_v7  ;;  %6952 = vst [vmem:[#allocation10_spill] sm:$0xff] %v6110_v49  ;;  %v2963_v37 = vpop.permute.xlu0 %2962  ;;  %v6115_v10 = vpop.f32.mrb[66].mxu1  ;;  %v1311_v49 = vld [vmem:[#allocation2 + $0x16a] sm:$0xff] }
 0x1fa   :  { %1529 = vst.msk [vmem:[#allocation3 + $0xb8] sm:$0xff] %vm1505_vm7, %v1456_v45  ;;  %6953 = vst [vmem:[#allocation11_spill] sm:$0xff] %v6115_v10  ;;  %1696 = vrot.lane.b32.xlu1 %v6112_v51, %s4990_s2  ;;  %v6120_v21 = vpop.f32.mrb[67].mxu1  ;;  %1694 = vrot.lane.b32.xlu0 %v5837_v44, %s4990_s2  ;;  %v2340_v10 = vld [vmem:[#allocation2 + $0x198] sm:$0xff] }
 0x1fb   :  { %3054 = vst.msk [vmem:[#allocation3 + $0x28] sm:$0xff] %vm3048_vm13, %v2963_v37  ;;  %6954 = vst [vmem:[#allocation12_spill] sm:$0xff] %v6120_v21 }
 0x1fc   :  { %v1936_v7 = vpop.permute.xlu1 %1935 }
 0x1fd   :  { %2026 = vst.msk [vmem:[#allocation3 + $0x30] sm:$0xff] %vm2019_vm9, %v1936_v7  ;;  %v1173_v41 = vpop.permute.xlu0 %1172 }
 0x1fe   :  { %1259 = vst.msk [vmem:[#allocation3 + $0x50] sm:$0xff] %vm1248_vm6, %v1173_v41  ;;  %1182 = vrot.lane.b32.xlu1 %v6124_v56, %s4988_s10  ;;  %1949 = vrot.lane.b32.xlu0 %v6017_v22, %s4992_s17  ;;  %v1312_v41 = vld [vmem:[#allocation2 + $0x172] sm:$0xff] }
 0x1ff   :  { %v6132_v31 = vpop.f32.mrb[68].mxu1 }
 0x200   :  { %6955 = vst [vmem:[#allocation13_spill] sm:$0xff] %v6132_v31  ;;  %v2193_v45 = vpop.permute.xlu1 %2192  ;;  %v6134_v37 = vpop.f32.mrb[69].mxu1 }
 0x201   :  { %6956 = vst [vmem:[#allocation14_spill] sm:$0xff] %v6134_v37  ;;  %2283 = vst.msk [vmem:[#allocation3 + $0x30] sm:$0xff] %vm2276_vm10, %v2193_v45  ;;  %v1205_v61 = vpop.permute.xlu0 %1204  ;;  %v6137_v7 = vpop.f32.mrb[70].mxu1  ;;  %v1343_v45 = vld [vmem:[#allocation2 + $0x31a] sm:$0xff] }
 0x202   :  { %6957 = vst [vmem:[#allocation15_spill] sm:$0xff] %v6137_v7  ;;  %v3476_v21 = vld [vmem:[#allocation3 + $0x28] sm:$0xff]  ;;  %2541 = vst.msk [vmem:[#allocation3 + $0x30] sm:$0xff] %vm2534_vm11, %v6046_v50  ;;  %1214 = vrot.lane.b32.xlu1 %v1119_v25, %s4988_s10  ;;  %v6144_v31 = vpop.f32.mrb[71].mxu1  ;;  %2206 = vrot.lane.b32.xlu0 %v6050_v59, %s4994_s19  ;;  %v6154_v50 = vpack.c.bf16 %v1312_v41, %v1311_v49 }
 0x203   :  { %1275 = vst.msk [vmem:[#allocation3 + $0xd0] sm:$0xff] %vm1248_vm6, %v1205_v61  ;;  %4854 = vmatmul.mubr.msk.bf16.gmra.mrb[40].mxu0 %vm3539_vm14, %v3476_v21  ;;  %6958 = vst [vmem:[#allocation16_spill] sm:$0xff] %v6144_v31  ;;  %v1344_v21 = vld [vmem:[#allocation2 + $0x322] sm:$0xff] }
 0x204   :  { %2798 = vst.msk [vmem:[#allocation3 + $0x30] sm:$0xff] %vm2791_vm12, %v6061_v3  ;;  %v6152_v16 = vpop.permute.xlu1 %1684 }
 0x205   :  { %3055 = vst.msk [vmem:[#allocation3 + $0x30] sm:$0xff] %vm3048_vm13, %v6068_v18  ;;  %v1430_v4 = vpop.permute.xlu0 %1429  ;;  %v1376_v18 = vpack.c.bf16 %v1344_v21, %v1343_v45  ;;  %v1825_v21 = vld [vmem:[#allocation2 + $0x181] sm:$0xff] }
 0x206   :  { %1516 = vst.msk [vmem:[#allocation3 + $0x50] sm:$0xff] %vm1505_vm7, %v1430_v4  ;;  %1439 = vrot.lane.b32.xlu1 %v6154_v50, %s4989_s0  ;;  %2464 = vrot.lane.b32.xlu0 %v5837_v44, %s4991_s16 }
 0x207   :  { %v6161_v3 = vpop.f32.mrb[72].mxu1 }
 0x208   :  { %6959 = vst [vmem:[#allocation17_spill] sm:$0xff] %v6161_v3  ;;  %v6163_v25 = vpop.permute.xlu1 %2454  ;;  %v6165_v61 = vpop.f32.mrb[73].mxu1 }
 0x209   :  { %6960 = vst [vmem:[#allocation18_spill] sm:$0xff] %v6165_v61  ;;  %v1462_v49 = vpop.permute.xlu0 %1461  ;;  %v6167_v41 = vpop.f32.mrb[74].mxu1  ;;  %v1826_v61 = vld [vmem:[#allocation2 + $0x189] sm:$0xff] }
 0x20a   :  { %6961 = vst [vmem:[#allocation19_spill] sm:$0xff] %v6167_v41  ;;  %1532 = vst.msk [vmem:[#allocation3 + $0xd0] sm:$0xff] %vm1505_vm7, %v1462_v49  ;;  %1471 = vrot.lane.b32.xlu1 %v1376_v18, %s4989_s0  ;;  %v6171_v4 = vpop.f32.mrb[75].mxu1  ;;  %2721 = vrot.lane.b32.xlu0 %v6124_v56, %s4993_s18  ;;  %v6188_v3 = vpack.c.bf16 %v1826_v61, %v1825_v21 }
 0x20b   :  { %6962 = vst [vmem:[#allocation20_spill] sm:$0xff] %v6171_v4 }
 0x20c   :  { %v3477_v44 = vld [vmem:[#allocation3 + $0x30] sm:$0xff]  ;;  %v6175_v31 = vpop.permute.xlu1 %2711 }
 0x20d   :  { %4857 = vmatprep.mubr.msk.bf16.mxu0 %vm3539_vm14, %v3477_v44  ;;  %v1942_v45 = vpop.permute.xlu0 %1941  ;;  %v2083_v44 = vld [vmem:[#allocation2 + $0x18a] sm:$0xff] }
 0x20e   :  { %2204 = vrot.lane.b32.xlu1 %v6079_v40, %s4994_s19  ;;  %2978 = vrot.lane.b32.xlu0 %v6154_v50, %s4995_s20  ;;  %v2082_v40 = vld [vmem:[#allocation2 + $0x182] sm:$0xff] }
 0x20f   :  { %v6182_v18 = vpop.f32.mrb[76].mxu1  ;;  %v6199_v61 = vpack.c.bf16 %v2083_v44, %v2082_v40  ;;  %v2855_v44 = vld [vmem:[#allocation2 + $0x1a2] sm:$0xff] }
 0x210   :  { %6963 = vst [vmem:[#allocation21_spill] sm:$0xff] %v6182_v18  ;;  %v6184_v49 = vpop.permute.xlu1 %2968  ;;  %v6186_v4 = vpop.f32.mrb[77].mxu1 }
 0x211   :  { %6964 = vst [vmem:[#allocation22_spill] sm:$0xff] %v6186_v4  ;;  %v2199_v41 = vpop.permute.xlu0 %2198  ;;  %v6190_v37 = vpop.f32.mrb[78].mxu1 }
 0x212   :  { %6965 = vst [vmem:[#allocation23_spill] sm:$0xff] %v6190_v37  ;;  %2462 = vrot.lane.b32.xlu1 %v5792_v6, %s4991_s16  ;;  %v6194_v7 = vpop.f32.mrb[79].mxu1  ;;  %1953 = vrot.lane.b32.xlu0 %v6188_v3, %s4992_s17  ;;  %v2389_v6 = vpack.c.bf16 %v2341_v11, %v2340_v10  ;;  %v2597_v37 = vld [vmem:[#allocation2 + $0x199] sm:$0xff] }
 0x213   :  { %6966 = vst [vmem:[#allocation24_spill] sm:$0xff] %v6194_v7  ;;  %v2646_v11 = vpack.c.bf16 %v2598_v14, %v2597_v37 }
 0x214   :  { %v1171_v18 = vpop.permute.xlu1 %1170 }
 0x215   :  { %1258 = vst.msk [vmem:[#allocation3 + $0x48] sm:$0xff] %vm1248_vm6, %v1171_v18  ;;  %v1683_v4 = vpop.permute.xlu0 %1682 }
 0x216   :  { %1771 = vst.msk [vmem:[#allocation3 + $0x40] sm:$0xff] %vm1762_vm8, %v1683_v4  ;;  %2719 = vrot.lane.b32.xlu1 %v6017_v22, %s4993_s18  ;;  %2210 = vrot.lane.b32.xlu0 %v6199_v61, %s4994_s19  ;;  %v2854_v4 = vld [vmem:[#allocation2 + $0x19a] sm:$0xff] }
 0x217   :  { %v6206_v21 = vpop.f32.mrb[80].mxu1 }
 0x218   :  { %v1203_v7 = vpop.permute.xlu1 %1202  ;;  %v6208_v63 = vpop.f32.mrb[81].mxu1 }
 0x219   :  { %6967 = vst [vmem:[#allocation25_spill] sm:$0xff] %v6208_v63  ;;  %1274 = vst.msk [vmem:[#allocation3 + $0xc8] sm:$0xff] %vm1248_vm6, %v1203_v7  ;;  %v2453_v18 = vpop.permute.xlu0 %2452  ;;  %v6211_v40 = vpop.f32.mrb[82].mxu1 }
 0x21a   :  { %2542 = vst.msk [vmem:[#allocation3 + $0x38] sm:$0xff] %vm2534_vm11, %v2453_v18  ;;  %2976 = vrot.lane.b32.xlu1 %v6050_v59, %s4995_s20  ;;  %v6216_v22 = vpop.f32.mrb[83].mxu1  ;;  %2468 = vrot.lane.b32.xlu0 %v2389_v6, %s4991_s16  ;;  %v2903_v59 = vpack.c.bf16 %v2855_v44, %v2854_v4  ;;  %v2087_v4 = vld [vmem:[#allocation2 + $0x1ea] sm:$0xff] }
 0x21b   :  { %6968 = vst [vmem:[#allocation26_spill] sm:$0xff] %v6216_v22 }
 0x21c   :  { %v1428_v10 = vpop.permute.xlu1 %1427 }
 0x21d   :  { %1515 = vst.msk [vmem:[#allocation3 + $0x48] sm:$0xff] %vm1505_vm7, %v1428_v10  ;;  %v2710_v63 = vpop.permute.xlu0 %2709  ;;  %v2086_v10 = vld [vmem:[#allocation2 + $0x1e2] sm:$0xff] }
 0x21e   :  { %1772 = vst.msk [vmem:[#allocation3 + $0x48] sm:$0xff] %vm1762_vm8, %v6152_v16  ;;  %1951 = vrot.lane.b32.xlu1 %v6124_v56, %s4992_s17  ;;  %2725 = vrot.lane.b32.xlu0 %v2646_v11, %s4993_s18  ;;  %v1830_v56 = vld [vmem:[#allocation2 + $0x1e9] sm:$0xff] }
 0x21f   :  { %2799 = vst.msk [vmem:[#allocation3 + $0x38] sm:$0xff] %vm2791_vm12, %v2710_v63  ;;  %v6227_v14 = vpop.f32.mrb[84].mxu1  ;;  %v1829_v63 = vld [vmem:[#allocation2 + $0x1e1] sm:$0xff] }
 0x220   :  { %2029 = vst.msk [vmem:[#allocation3 + $0x48] sm:$0xff] %vm2019_vm9, %v1942_v45  ;;  %6969 = vst [vmem:[#allocation27_spill] sm:$0xff] %v6227_v14  ;;  %v1460_v37 = vpop.permute.xlu1 %1459  ;;  %v6230_v7 = vpop.f32.mrb[85].mxu1  ;;  %v6242_v11 = vpack.c.bf16 %v1830_v56, %v1829_v63 }
 0x221   :  { %2286 = vst.msk [vmem:[#allocation3 + $0x48] sm:$0xff] %vm2276_vm10, %v2199_v41  ;;  %6970 = vst [vmem:[#allocation28_spill] sm:$0xff] %v6230_v7  ;;  %v2967_v16 = vpop.permute.xlu0 %2966  ;;  %v6233_v6 = vpop.f32.mrb[86].mxu1  ;;  %v1833_v7 = vld [vmem:[#allocation2 + $0x211] sm:$0xff] }
 0x222   :  { %1531 = vst.msk [vmem:[#allocation3 + $0xc8] sm:$0xff] %vm1505_vm7, %v1460_v37  ;;  %6971 = vst [vmem:[#allocation29_spill] sm:$0xff] %v6233_v6  ;;  %2208 = vrot.lane.b32.xlu1 %v6154_v50, %s4994_s19  ;;  %v6238_v45 = vpop.f32.mrb[87].mxu1  ;;  %2982 = vrot.lane.b32.xlu0 %v2903_v59, %s4995_s20  ;;  %v6250_v37 = vpack.c.bf16 %v2087_v4, %v2086_v10  ;;  %v2602_v10 = vld [vmem:[#allocation2 + $0x201] sm:$0xff] }
 0x223   :  { %3056 = vst.msk [vmem:[#allocation3 + $0x38] sm:$0xff] %vm3048_vm13, %v2967_v16  ;;  %6972 = vst [vmem:[#allocation30_spill] sm:$0xff] %v6238_v45  ;;  %v2345_v16 = vld [vmem:[#allocation2 + $0x200] sm:$0xff] }
 0x224   :  { %v1940_v41 = vpop.permute.xlu1 %1939 }
 0x225   :  { %2028 = vst.msk [vmem:[#allocation3 + $0x40] sm:$0xff] %vm2019_vm9, %v1940_v41  ;;  %v1177_v18 = vpop.permute.xlu0 %1176  ;;  %v1827_v41 = vld [vmem:[#allocation2 + $0x1c9] sm:$0xff] }
 0x226   :  { %1261 = vst.msk [vmem:[#allocation3 + $0x60] sm:$0xff] %vm1248_vm6, %v1177_v18  ;;  %2466 = vrot.lane.b32.xlu1 %v6112_v51, %s4991_s16  ;;  %1957 = vrot.lane.b32.xlu0 %v6242_v11, %s4992_s17  ;;  %v2344_v51 = vld [vmem:[#allocation2 + $0x1f8] sm:$0xff] }
 0x227   :  { %v2391_v56 = vpack.c.bf16 %v2345_v16, %v2344_v51  ;;  %v1828_v18 = vld [vmem:[#allocation2 + $0x1d1] sm:$0xff]  ;;  %v2858_v16 = vld [vmem:[#allocation2 + $0x1fa] sm:$0xff] }
 0x228   :  { %v2197_v50 = vpop.permute.xlu1 %2196  ;;  %v2085_v51 = vld [vmem:[#allocation2 + $0x1d2] sm:$0xff] }
 0x229   :  { %2285 = vst.msk [vmem:[#allocation3 + $0x40] sm:$0xff] %vm2276_vm10, %v2197_v50  ;;  %v1209_v44 = vpop.permute.xlu0 %1208 }
 0x22a   :  { %v3478_v59 = vld [vmem:[#allocation3 + $0x38] sm:$0xff]  ;;  %2543 = vst.msk [vmem:[#allocation3 + $0x40] sm:$0xff] %vm2534_vm11, %v6163_v25  ;;  %2723 = vrot.lane.b32.xlu1 %v6188_v3, %s4993_s18  ;;  %2214 = vrot.lane.b32.xlu0 %v6250_v37, %s4994_s19 }
 0x22b   :  { %1277 = vst.msk [vmem:[#allocation3 + $0xe0] sm:$0xff] %vm1248_vm6, %v1209_v44  ;;  %4858 = vmatmul.mubr.msk.bf16.gmra.mrb[44].mxu0 %vm3539_vm14, %v3478_v59  ;;  %v2601_v3 = vld [vmem:[#allocation2 + $0x1f9] sm:$0xff]  ;;  %v2084_v59 = vld [vmem:[#allocation2 + $0x1ca] sm:$0xff] }
 0x22c   :  { %2800 = vst.msk [vmem:[#allocation3 + $0x40] sm:$0xff] %vm2791_vm12, %v6175_v31  ;;  %v6264_v63 = vpop.permute.xlu1 %1688  ;;  %v6270_v31 = vpop.f32.mrb[88].mxu1  ;;  %v2648_v44 = vpack.c.bf16 %v2602_v10, %v2601_v3 }
 0x22d   :  { %3057 = vst.msk [vmem:[#allocation3 + $0x40] sm:$0xff] %vm3048_vm13, %v6184_v49  ;;  %v1434_v25 = vpop.permute.xlu0 %1433  ;;  %6973 = vst [vmem:[#allocation31_spill] sm:$0xff] %v6270_v31  ;;  %v1875_v49 = vpack.c.bf16 %v1828_v18, %v1827_v41  ;;  %v2132_v41 = vpack.c.bf16 %v2085_v51, %v2084_v59  ;;  %v2090_v59 = vld [vmem:[#allocation2 + $0x212] sm:$0xff]  ;;  %v2091_v51 = vld [vmem:[#allocation2 + $0x21a] sm:$0xff] }
 0x22e   :  { %1518 = vst.msk [vmem:[#allocation3 + $0x60] sm:$0xff] %vm1505_vm7, %v1434_v25  ;;  %2980 = vrot.lane.b32.xlu1 %v6199_v61, %s4995_s20  ;;  %2472 = vrot.lane.b32.xlu0 %v2391_v56, %s4991_s16  ;;  %v2859_v25 = vld [vmem:[#allocation2 + $0x202] sm:$0xff]  ;;  %v6276_v61 = vpop.f32.mrb[89].mxu1 }
 0x22f   :  { %6974 = vst [vmem:[#allocation32_spill] sm:$0xff] %v6276_v61  ;;  %v6279_v45 = vpop.f32.mrb[90].mxu1  ;;  %v2905_v10 = vpack.c.bf16 %v2859_v25, %v2858_v16  ;;  %v1834_v61 = vld [vmem:[#allocation2 + $0x219] sm:$0xff] }
 0x230   :  { %v6272_v4 = vpop.permute.xlu1 %2458  ;;  %6975 = vst [vmem:[#allocation33_spill] sm:$0xff] %v6279_v45  ;;  %v6284_v18 = vpop.f32.mrb[91].mxu1  ;;  %v1878_v22 = vpack.c.bf16 %v1834_v61, %v1833_v7  ;;  %v2606_v61 = vld [vmem:[#allocation2 + $0x231] sm:$0xff] }
 0x231   :  { %v1466_v50 = vpop.permute.xlu0 %1465 }
 0x232   :  { %1534 = vst.msk [vmem:[#allocation3 + $0xe0] sm:$0xff] %vm1505_vm7, %v1466_v50  ;;  %1955 = vrot.lane.b32.xlu1 %v1875_v49, %s4992_s17  ;;  %2729 = vrot.lane.b32.xlu0 %v2648_v44, %s4993_s18  ;;  %v2342_v50 = vld [vmem:[#allocation2 + $0x1e0] sm:$0xff]  ;;  %v2343_v49 = vld [vmem:[#allocation2 + $0x1e8] sm:$0xff] }
 0x233   :  { %v2390_v45 = vpack.c.bf16 %v2343_v49, %v2342_v50 }
 0x234   :  { %v3479_v56 = vld [vmem:[#allocation3 + $0x40] sm:$0xff]  ;;  %v6281_v31 = vpop.permute.xlu1 %2715 }
 0x235   :  { %4861 = vmatprep.mubr.msk.bf16.mxu0 %vm3539_vm14, %v3479_v56  ;;  %v1946_v3 = vpop.permute.xlu0 %1945  ;;  %v2135_v56 = vpack.c.bf16 %v2091_v51, %v2090_v59  ;;  %v2862_v59 = vld [vmem:[#allocation2 + $0x22a] sm:$0xff]  ;;  %v2863_v51 = vld [vmem:[#allocation2 + $0x232] sm:$0xff] }
 0x236   :  { %2212 = vrot.lane.b32.xlu1 %v2132_v41, %s4994_s19  ;;  %2986 = vrot.lane.b32.xlu0 %v2905_v10, %s4995_s20 }
 0x238   :  { %v6288_v6 = vpop.permute.xlu1 %2972 }
 0x239   :  { %v2203_v14 = vpop.permute.xlu0 %2202 }
 0x23a   :  { %2470 = vrot.lane.b32.xlu1 %v2390_v45, %s4991_s16  ;;  %1961 = vrot.lane.b32.xlu0 %v1878_v22, %s4992_s17  ;;  %v2605_v45 = vld [vmem:[#allocation2 + $0x229] sm:$0xff] }
 0x23b   :  { %v2650_v49 = vpack.c.bf16 %v2606_v61, %v2605_v45 }
 0x23c   :  { %v1175_v16 = vpop.permute.xlu1 %1174 }
 0x23d   :  { %1260 = vst.msk [vmem:[#allocation3 + $0x58] sm:$0xff] %vm1248_vm6, %v1175_v16  ;;  %v1687_v25 = vpop.permute.xlu0 %1686 }
 0x23e   :  { %1773 = vst.msk [vmem:[#allocation3 + $0x50] sm:$0xff] %vm1762_vm8, %v1687_v25  ;;  %2727 = vrot.lane.b32.xlu1 %v6242_v11, %s4993_s18  ;;  %2218 = vrot.lane.b32.xlu0 %v2135_v56, %s4994_s19  ;;  %v2907_v25 = vpack.c.bf16 %v2863_v51, %v2862_v59  ;;  %v2350_v59 = vld [vmem:[#allocation2 + $0x240] sm:$0xff]  ;;  %v2351_v51 = vld [vmem:[#allocation2 + $0x248] sm:$0xff] }
 0x240   :  { %v1207_v41 = vpop.permute.xlu1 %1206 }
 0x241   :  { %1276 = vst.msk [vmem:[#allocation3 + $0xd8] sm:$0xff] %vm1248_vm6, %v1207_v41  ;;  %v2457_v7 = vpop.permute.xlu0 %2456  ;;  %v2347_v41 = vld [vmem:[#allocation2 + $0x218] sm:$0xff] }
 0x242   :  { %2544 = vst.msk [vmem:[#allocation3 + $0x48] sm:$0xff] %vm2534_vm11, %v2457_v7  ;;  %2984 = vrot.lane.b32.xlu1 %v6250_v37, %s4995_s20  ;;  %2476 = vrot.lane.b32.xlu0 %v5565_v54, %s4991_s16  ;;  %v6310_v37 = vpop.f32.mrb[92].mxu1 }
 0x244   :  { %v1432_v50 = vpop.permute.xlu1 %1431 }
 0x245   :  { %1517 = vst.msk [vmem:[#allocation3 + $0x58] sm:$0xff] %vm1505_vm7, %v1432_v50  ;;  %v2714_v11 = vpop.permute.xlu0 %2713 }
 0x246   :  { %1774 = vst.msk [vmem:[#allocation3 + $0x58] sm:$0xff] %vm1762_vm8, %v6264_v63  ;;  %1959 = vrot.lane.b32.xlu1 %v2648_v44, %s4992_s17  ;;  %2733 = vrot.lane.b32.xlu0 %v2650_v49, %s4993_s18  ;;  %v2346_v63 = vld [vmem:[#allocation2 + $0x210] sm:$0xff]  ;;  %v6316_v44 = vpop.f32.mrb[93].mxu1 }
 0x247   :  { %2801 = vst.msk [vmem:[#allocation3 + $0x48] sm:$0xff] %vm2791_vm12, %v2714_v11  ;;  %v2392_v45 = vpack.c.bf16 %v2347_v41, %v2346_v63  ;;  %v2608_v63 = vld [vmem:[#allocation2 + $0x249] sm:$0xff] }
 0x248   :  { %2031 = vst.msk [vmem:[#allocation3 + $0x58] sm:$0xff] %vm2019_vm9, %v1946_v3  ;;  %v1464_v54 = vpop.permute.xlu1 %1463  ;;  %v6319_v3 = vpop.f32.mrb[94].mxu1 }
 0x249   :  { %2288 = vst.msk [vmem:[#allocation3 + $0x58] sm:$0xff] %vm2276_vm10, %v2203_v14  ;;  %v2971_v16 = vpop.permute.xlu0 %2970  ;;  %v6321_v14 = vpop.f32.mrb[95].mxu1 }
 0x24a   :  { %1533 = vst.msk [vmem:[#allocation3 + $0xd8] sm:$0xff] %vm1505_vm7, %v1464_v54  ;;  %2216 = vrot.lane.b32.xlu1 %v2905_v10, %s4994_s19  ;;  %2990 = vrot.lane.b32.xlu0 %v2907_v25, %s4995_s20 }
 0x24b   :  { %3058 = vst.msk [vmem:[#allocation3 + $0x48] sm:$0xff] %vm3048_vm13, %v2971_v16  ;;  %v2394_v16 = vpack.c.bf16 %v2351_v51, %v2350_v59  ;;  %v1840_v59 = vld [vmem:[#allocation2 + $0x261] sm:$0xff] }
 0x24c   :  { %v1944_v7 = vpop.permute.xlu1 %1943 }
 0x24d   :  { %2030 = vst.msk [vmem:[#allocation3 + $0x50] sm:$0xff] %vm2019_vm9, %v1944_v7  ;;  %v1181_v61 = vpop.permute.xlu0 %1180 }
 0x24e   :  { %1263 = vst.msk [vmem:[#allocation3 + $0x70] sm:$0xff] %vm1248_vm6, %v1181_v61  ;;  %2474 = vrot.lane.b32.xlu1 %v2392_v45, %s4991_s16  ;;  %1963 = vrot.lane.b32.xlu0 %v2650_v49, %s4992_s17 }
 0x250   :  { %v2201_v10 = vpop.permute.xlu1 %2200 }
 0x251   :  { %2287 = vst.msk [vmem:[#allocation3 + $0x50] sm:$0xff] %vm2276_vm10, %v2201_v10  ;;  %v1213_v50 = vpop.permute.xlu0 %1212 }
 0x252   :  { %v3480_v11 = vld [vmem:[#allocation3 + $0x48] sm:$0xff]  ;;  %2545 = vst.msk [vmem:[#allocation3 + $0x50] sm:$0xff] %vm2534_vm11, %v6272_v4  ;;  %2731 = vrot.lane.b32.xlu1 %v1878_v22, %s4993_s18  ;;  %2220 = vrot.lane.b32.xlu0 %v2907_v25, %s4994_s19 }
 0x253   :  { %1279 = vst.msk [vmem:[#allocation3 + $0xf0] sm:$0xff] %vm1248_vm6, %v1213_v50  ;;  %4862 = vmatmul.mubr.msk.bf16.gmra.mrb[48].mxu0 %vm3539_vm14, %v3480_v11  ;;  %v2607_v4 = vld [vmem:[#allocation2 + $0x241] sm:$0xff]  ;;  %v2865_v25 = vld [vmem:[#allocation2 + $0x24a] sm:$0xff]  ;;  %v1839_v11 = vld [vmem:[#allocation2 + $0x259] sm:$0xff] }
 0x254   :  { %2802 = vst.msk [vmem:[#allocation3 + $0x50] sm:$0xff] %vm2791_vm12, %v6281_v31  ;;  %v1693_v49 = vpop.permute.xlu1 %1692  ;;  %v2651_v41 = vpack.c.bf16 %v2608_v63, %v2607_v4  ;;  %v2097_v4 = vld [vmem:[#allocation2 + $0x262] sm:$0xff] }
 0x255   :  { %3059 = vst.msk [vmem:[#allocation3 + $0x50] sm:$0xff] %vm3048_vm13, %v6288_v6  ;;  %v1438_v54 = vpop.permute.xlu0 %1437  ;;  %v2864_v6 = vld [vmem:[#allocation2 + $0x242] sm:$0xff] }
 0x256   :  { %1520 = vst.msk [vmem:[#allocation3 + $0x70] sm:$0xff] %vm1505_vm7, %v1438_v54  ;;  %2988 = vrot.lane.b32.xlu1 %v2135_v56, %s4995_s20  ;;  %2478 = vrot.lane.b32.xlu0 %v2394_v16, %s4991_s16  ;;  %v2908_v61 = vpack.c.bf16 %v2865_v25, %v2864_v6  ;;  %v2355_v6 = vld [vmem:[#allocation2 + $0x278] sm:$0xff] }
 0x258   :  { %v1179_v22 = vpop.permute.xlu1 %1178 }
 0x259   :  { %1262 = vst.msk [vmem:[#allocation3 + $0x68] sm:$0xff] %vm1248_vm6, %v1179_v22  ;;  %v1470_v31 = vpop.permute.xlu0 %1469 }
 0x25a   :  { %1536 = vst.msk [vmem:[#allocation3 + $0xf0] sm:$0xff] %vm1505_vm7, %v1470_v31  ;;  %1708 = vrot.lane.b32.xlu1 %v2394_v16, %s4990_s2  ;;  %2735 = vrot.lane.b32.xlu0 %v2651_v41, %s4993_s18  ;;  %v1881_v16 = vpack.c.bf16 %v1840_v59, %v1839_v11  ;;  %v2868_v59 = vld [vmem:[#allocation2 + $0x272] sm:$0xff] }
 0x25c   :  { %v3481_v7 = vld [vmem:[#allocation3 + $0x50] sm:$0xff]  ;;  %v1211_v45 = vpop.permute.xlu1 %1210 }
 0x25d   :  { %4865 = vmatprep.mubr.msk.bf16.mxu0 %vm3539_vm14, %v3481_v7  ;;  %1278 = vst.msk [vmem:[#allocation3 + $0xe8] sm:$0xff] %vm1248_vm6, %v1211_v45  ;;  %v1691_v56 = vpop.permute.xlu0 %1690  ;;  %v2611_v45 = vld [vmem:[#allocation2 + $0x271] sm:$0xff] }
 0x25e   :  { %1775 = vst.msk [vmem:[#allocation3 + $0x60] sm:$0xff] %vm1762_vm8, %v1691_v56  ;;  %1965 = vrot.lane.b32.xlu1 %v2651_v41, %s4992_s17  ;;  %2992 = vrot.lane.b32.xlu0 %v2908_v61, %s4995_s20  ;;  %v2354_v41 = vld [vmem:[#allocation2 + $0x270] sm:$0xff]  ;;  %v2612_v56 = vld [vmem:[#allocation2 + $0x279] sm:$0xff] }
 0x25f   :  { %v2653_v11 = vpack.c.bf16 %v2612_v56, %v2611_v45 }
 0x260   :  { %v1436_v10 = vpop.permute.xlu1 %1435 }
 0x261   :  { %1519 = vst.msk [vmem:[#allocation3 + $0x68] sm:$0xff] %vm1505_vm7, %v1436_v10  ;;  %v2461_v50 = vpop.permute.xlu0 %2460 }
 0x262   :  { %1776 = vst.msk [vmem:[#allocation3 + $0x68] sm:$0xff] %vm1762_vm8, %v1693_v49  ;;  %2222 = vrot.lane.b32.xlu1 %v2908_v61, %s4994_s19  ;;  %1710 = vrot.lane.b32.xlu0 %v5580_v9, %s4990_s2  ;;  %v2096_v49 = vld [vmem:[#allocation2 + $0x25a] sm:$0xff] }
 0x263   :  { %2546 = vst.msk [vmem:[#allocation3 + $0x58] sm:$0xff] %vm2534_vm11, %v2461_v50  ;;  %v2138_v31 = vpack.c.bf16 %v2097_v4, %v2096_v49 }
 0x264   :  { %v1468_v51 = vpop.permute.xlu1 %1467 }
 0x265   :  { %1535 = vst.msk [vmem:[#allocation3 + $0xe8] sm:$0xff] %vm1505_vm7, %v1468_v51  ;;  %v2718_v54 = vpop.permute.xlu0 %2717  ;;  %v2869_v51 = vld [vmem:[#allocation2 + $0x27a] sm:$0xff] }
 0x266   :  { %2803 = vst.msk [vmem:[#allocation3 + $0x58] sm:$0xff] %vm2791_vm12, %v2718_v54  ;;  %2480 = vrot.lane.b32.xlu1 %v5580_v9, %s4991_s16  ;;  %1967 = vrot.lane.b32.xlu0 %v1881_v16, %s4992_s17  ;;  %v2396_v9 = vpack.c.bf16 %v2355_v6, %v2354_v41  ;;  %v2910_v49 = vpack.c.bf16 %v2869_v51, %v2868_v59 }
 0x268   :  { %v1948_v63 = vpop.permute.xlu1 %1947 }
 0x269   :  { %2032 = vst.msk [vmem:[#allocation3 + $0x60] sm:$0xff] %vm2019_vm9, %v1948_v63  ;;  %v2975_v22 = vpop.permute.xlu0 %2974 }
 0x26a   :  { %3060 = vst.msk [vmem:[#allocation3 + $0x58] sm:$0xff] %vm3048_vm13, %v2975_v22  ;;  %2737 = vrot.lane.b32.xlu1 %v1881_v16, %s4993_s18  ;;  %2224 = vrot.lane.b32.xlu0 %v2138_v31, %s4994_s19  ;;  %v1843_v22 = vld [vmem:[#allocation2 + $0x289] sm:$0xff] }
 0x26c   :  { %v1697_v25 = vpop.permute.xlu1 %1696 }
 0x26d   :  { %v1695_v7 = vpop.permute.xlu0 %1694 }
 0x26e   :  { %1777 = vst.msk [vmem:[#allocation3 + $0x70] sm:$0xff] %vm1762_vm8, %v1695_v7  ;;  %2994 = vrot.lane.b32.xlu1 %v2138_v31, %s4995_s20  ;;  %2482 = vrot.lane.b32.xlu0 %v2396_v9, %s4991_s16  ;;  %v1844_v31 = vld [vmem:[#allocation2 + $0x291] sm:$0xff] }
 0x26f   :  { %v1883_v7 = vpack.c.bf16 %v1844_v31, %v1843_v22  ;;  %v2872_v22 = vld [vmem:[#allocation2 + $0x2a2] sm:$0xff]  ;;  %v2873_v31 = vld [vmem:[#allocation2 + $0x2aa] sm:$0xff] }
 0x270   :  { %v1183_v61 = vpop.permute.xlu1 %1182 }
 0x271   :  { %1264 = vst.msk [vmem:[#allocation3 + $0x78] sm:$0xff] %vm1248_vm6, %v1183_v61  ;;  %v1950_v10 = vpop.permute.xlu0 %1949  ;;  %v3482_v50 = vld [vmem:[#allocation3 + $0x58] sm:$0xff] }
 0x272   :  { %2033 = vst.msk [vmem:[#allocation3 + $0x68] sm:$0xff] %vm2019_vm9, %v1950_v10  ;;  %4866 = vmatmul.mubr.msk.bf16.gmra.mrb[52].mxu0 %vm3539_vm14, %v3482_v50  ;;  %1712 = vrot.lane.b32.xlu1 %v2396_v9, %s4990_s2  ;;  %v2101_v9 = vld [vmem:[#allocation2 + $0x292] sm:$0xff] }
 0x273   :  { %2739 = vrot.lane.b32.xlu0 %v2653_v11, %s4993_s18 }
 0x274   :  { %v1215_v54 = vpop.permute.xlu1 %1214 }
 0x275   :  { %1280 = vst.msk [vmem:[#allocation3 + $0xf8] sm:$0xff] %vm1248_vm6, %v1215_v54  ;;  %v2207_v16 = vpop.permute.xlu0 %2206  ;;  %v2615_v54 = vld [vmem:[#allocation2 + $0x2a1] sm:$0xff] }
 0x276   :  { %2290 = vst.msk [vmem:[#allocation3 + $0x68] sm:$0xff] %vm2276_vm10, %v2207_v16  ;;  %1969 = vrot.lane.b32.xlu1 %v2653_v11, %s4992_s17  ;;  %v2616_v16 = vld [vmem:[#allocation2 + $0x2a9] sm:$0xff] }
 0x277   :  { %2996 = vrot.lane.b32.xlu0 %v2910_v49, %s4995_s20 }
 0x278   :  { %v1440_v4 = vpop.permute.xlu1 %1439 }
 0x279   :  { %1521 = vst.msk [vmem:[#allocation3 + $0x78] sm:$0xff] %vm1505_vm7, %v1440_v4  ;;  %v2465_v63 = vpop.permute.xlu0 %2464 }
 0x27a   :  { %1778 = vst.msk [vmem:[#allocation3 + $0x78] sm:$0xff] %vm1762_vm8, %v1697_v25  ;;  %2226 = vrot.lane.b32.xlu1 %v2910_v49, %s4994_s19  ;;  %v2100_v25 = vld [vmem:[#allocation2 + $0x28a] sm:$0xff] }
 0x27b   :  { %2548 = vst.msk [vmem:[#allocation3 + $0x68] sm:$0xff] %vm2534_vm11, %v2465_v63  ;;  %1714 = vrot.lane.b32.xlu0 %v5644_v5, %s4990_s2  ;;  %v2140_v10 = vpack.c.bf16 %v2101_v9, %v2100_v25  ;;  %v2655_v63 = vpack.c.bf16 %v2616_v16, %v2615_v54  ;;  %v2104_v16 = vld [vmem:[#allocation2 + $0x2ba] sm:$0xff] }
 0x27c   :  { %v1472_v41 = vpop.permute.xlu1 %1471 }
 0x27d   :  { %1537 = vst.msk [vmem:[#allocation3 + $0xf8] sm:$0xff] %vm1505_vm7, %v1472_v41  ;;  %v2722_v6 = vpop.permute.xlu0 %2721 }
 0x27e   :  { %2805 = vst.msk [vmem:[#allocation3 + $0x68] sm:$0xff] %vm2791_vm12, %v2722_v6  ;;  %2484 = vrot.lane.b32.xlu1 %v5644_v5, %s4991_s16 }
 0x27f   :  { %1971 = vrot.lane.b32.xlu0 %v1883_v7, %s4992_s17 }
 0x280   :  { %v2205_v45 = vpop.permute.xlu1 %2204 }
 0x281   :  { %2289 = vst.msk [vmem:[#allocation3 + $0x60] sm:$0xff] %vm2276_vm10, %v2205_v45  ;;  %v2979_v56 = vpop.permute.xlu0 %2978  ;;  %v1848_v45 = vld [vmem:[#allocation2 + $0x2c1] sm:$0xff] }
 0x282   :  { %v6389_v61 = vpop.f32.mrb[32].mxu0  ;;  %3062 = vst.msk [vmem:[#allocation3 + $0x68] sm:$0xff] %vm3048_vm13, %v2979_v56  ;;  %2741 = vrot.lane.b32.xlu1 %v1883_v7, %s4993_s18  ;;  %v2912_v7 = vpack.c.bf16 %v2873_v31, %v2872_v22 }
 0x283   :  { %v6392_v50 = vpop.f32.mrb[33].mxu0  ;;  %2228 = vrot.lane.b32.xlu0 %v2140_v10, %s4994_s19 }
 0x284   :  { %v6396_v5 = vpop.f32.mrb[34].mxu0  ;;  %v2463_v59 = vpop.permute.xlu1 %2462 }
 0x285   :  { %v6398_v11 = vpop.f32.mrb[35].mxu0  ;;  %2547 = vst.msk [vmem:[#allocation3 + $0x60] sm:$0xff] %vm2534_vm11, %v2463_v59  ;;  %v1954_v51 = vpop.permute.xlu0 %1953 }
 0x286   :  { %2035 = vst.msk [vmem:[#allocation3 + $0x78] sm:$0xff] %vm2019_vm9, %v1954_v51  ;;  %2998 = vrot.lane.b32.xlu1 %v2140_v10, %s4995_s20 }
 0x287   :  { %2486 = vrot.lane.b32.xlu0 %v5640_v1, %s4991_s16 }
 0x288   :  { %v2720_v49 = vpop.permute.xlu1 %2719 }
 0x289   :  { %2804 = vst.msk [vmem:[#allocation3 + $0x60] sm:$0xff] %vm2791_vm12, %v2720_v49  ;;  %v2211_v4 = vpop.permute.xlu0 %2210  ;;  %v3484_v54 = vld [vmem:[#allocation3 + $0x68] sm:$0xff] }
 0x28a   :  { %2292 = vst.msk [vmem:[#allocation3 + $0x78] sm:$0xff] %vm2276_vm10, %v2211_v4  ;;  %1716 = vrot.lane.b32.xlu1 %v5640_v1, %s4990_s2  ;;  %v1847_v1 = vld [vmem:[#allocation2 + $0x2b9] sm:$0xff]  ;;  %v2105_v49 = vld [vmem:[#allocation2 + $0x2c2] sm:$0xff] }
 0x28b   :  { %2743 = vrot.lane.b32.xlu0 %v2655_v63, %s4993_s18  ;;  %v1885_v51 = vpack.c.bf16 %v1848_v45, %v1847_v1  ;;  %v2142_v22 = vpack.c.bf16 %v2105_v49, %v2104_v16  ;;  %v2876_v1 = vld [vmem:[#allocation2 + $0x2d2] sm:$0xff]  ;;  %v2877_v45 = vld [vmem:[#allocation2 + $0x2da] sm:$0xff]  ;;  %v1851_v49 = vld [vmem:[#allocation2 + $0x2e9] sm:$0xff] }
 0x28c   :  { %v2977_v41 = vpop.permute.xlu1 %2976 }
 0x28d   :  { %3061 = vst.msk [vmem:[#allocation3 + $0x60] sm:$0xff] %vm3048_vm13, %v2977_v41  ;;  %v2469_v6 = vpop.permute.xlu0 %2468  ;;  %v2619_v41 = vld [vmem:[#allocation2 + $0x2d1] sm:$0xff] }
 0x28e   :  { %2550 = vst.msk [vmem:[#allocation3 + $0x78] sm:$0xff] %vm2534_vm11, %v2469_v6  ;;  %1973 = vrot.lane.b32.xlu1 %v2655_v63, %s4992_s17  ;;  %v2620_v6 = vld [vmem:[#allocation2 + $0x2d9] sm:$0xff] }
 0x28f   :  { %3000 = vrot.lane.b32.xlu0 %v2912_v7, %s4995_s20 }
 0x290   :  { %v1952_v25 = vpop.permute.xlu1 %1951 }
 0x291   :  { %2034 = vst.msk [vmem:[#allocation3 + $0x70] sm:$0xff] %vm2019_vm9, %v1952_v25  ;;  %v2726_v9 = vpop.permute.xlu0 %2725 }
 0x292   :  { %2807 = vst.msk [vmem:[#allocation3 + $0x78] sm:$0xff] %vm2791_vm12, %v2726_v9  ;;  %2230 = vrot.lane.b32.xlu1 %v2912_v7, %s4994_s19  ;;  %v2657_v9 = vpack.c.bf16 %v2620_v6, %v2619_v41  ;;  %v2108_v6 = vld [vmem:[#allocation2 + $0x2ea] sm:$0xff] }
 0x293   :  { %1718 = vrot.lane.b32.xlu0 %v5788_v42, %s4990_s2 }
 0x294   :  { %v2209_v56 = vpop.permute.xlu1 %2208  ;;  %v3483_v10 = vld [vmem:[#allocation3 + $0x60] sm:$0xff] }
 0x295   :  { %2291 = vst.msk [vmem:[#allocation3 + $0x70] sm:$0xff] %vm2276_vm10, %v2209_v56  ;;  %v2983_v59 = vpop.permute.xlu0 %2982  ;;  %4869 = vmatprep.mubr.msk.bf16.mxu0 %vm3539_vm14, %v3483_v10 }
 0x296   :  { %3064 = vst.msk [vmem:[#allocation3 + $0x78] sm:$0xff] %vm3048_vm13, %v2983_v59  ;;  %2488 = vrot.lane.b32.xlu1 %v5788_v42, %s4991_s16  ;;  %4870 = vmatmul.mubr.msk.bf16.gmra.mrb[56].mxu0 %vm3539_vm14, %v3484_v54  ;;  %v2914_v59 = vpack.c.bf16 %v2877_v45, %v2876_v1 }
 0x297   :  { %1975 = vrot.lane.b32.xlu0 %v1885_v51, %s4992_s17 }
 0x298   :  { %v2467_v4 = vpop.permute.xlu1 %2466 }
 0x299   :  { %2549 = vst.msk [vmem:[#allocation3 + $0x70] sm:$0xff] %vm2534_vm11, %v2467_v4  ;;  %v1958_v63 = vpop.permute.xlu0 %1957  ;;  %v1852_v4 = vld [vmem:[#allocation2 + $0x2f1] sm:$0xff] }
 0x29a   :  { %2037 = vst.msk [vmem:[#allocation3 + $0x88] sm:$0xff] %vm2019_vm9, %v1958_v63  ;;  %2745 = vrot.lane.b32.xlu1 %v1885_v51, %s4993_s18 }
 0x29b   :  { %2232 = vrot.lane.b32.xlu0 %v2142_v22, %s4994_s19 }
 0x29c   :  { %v2724_v31 = vpop.permute.xlu1 %2723 }
 0x29d   :  { %2806 = vst.msk [vmem:[#allocation3 + $0x70] sm:$0xff] %vm2791_vm12, %v2724_v31  ;;  %v2215_v42 = vpop.permute.xlu0 %2214  ;;  %v3486_v51 = vld [vmem:[#allocation3 + $0x78] sm:$0xff] }
 0x29e   :  { %2294 = vst.msk [vmem:[#allocation3 + $0x88] sm:$0xff] %vm2276_vm10, %v2215_v42  ;;  %3002 = vrot.lane.b32.xlu1 %v2142_v22, %s4995_s20  ;;  %v1887_v42 = vpack.c.bf16 %v1852_v4, %v1851_v49  ;;  %v2880_v49 = vld [vmem:[#allocation2 + $0x302] sm:$0xff]  ;;  %v2881_v4 = vld [vmem:[#allocation2 + $0x30a] sm:$0xff] }
 0x29f   :  { %2490 = vrot.lane.b32.xlu0 %v5762_v32, %s4991_s16 }
 0x2a0   :  { %v2981_v7 = vpop.permute.xlu1 %2980 }
 0x2a1   :  { %3063 = vst.msk [vmem:[#allocation3 + $0x70] sm:$0xff] %vm3048_vm13, %v2981_v7  ;;  %v2473_v25 = vpop.permute.xlu0 %2472  ;;  %v2109_v7 = vld [vmem:[#allocation2 + $0x2f2] sm:$0xff] }
 0x2a2   :  { %2552 = vst.msk [vmem:[#allocation3 + $0x88] sm:$0xff] %vm2534_vm11, %v2473_v25  ;;  %1720 = vrot.lane.b32.xlu1 %v5762_v32, %s4990_s2 }
 0x2a3   :  { %2747 = vrot.lane.b32.xlu0 %v2657_v9, %s4993_s18 }
 0x2a4   :  { %v1956_v56 = vpop.permute.xlu1 %1955 }
 0x2a5   :  { %2036 = vst.msk [vmem:[#allocation3 + $0x80] sm:$0xff] %vm2019_vm9, %v1956_v56  ;;  %v2730_v10 = vpop.permute.xlu0 %2729  ;;  %v2144_v56 = vpack.c.bf16 %v2109_v7, %v2108_v6  ;;  %v2916_v6 = vpack.c.bf16 %v2881_v4, %v2880_v49  ;;  %v2370_v4 = vld [vmem:[#allocation2 + $0x330] sm:$0xff] }
 0x2a6   :  { %2809 = vst.msk [vmem:[#allocation3 + $0x88] sm:$0xff] %vm2791_vm12, %v2730_v10  ;;  %1977 = vrot.lane.b32.xlu1 %v2657_v9, %s4992_s17 }
 0x2a7   :  { %3004 = vrot.lane.b32.xlu0 %v2914_v59, %s4995_s20 }
 0x2a8   :  { %v2213_v54 = vpop.permute.xlu1 %2212  ;;  %v3485_v16 = vld [vmem:[#allocation3 + $0x70] sm:$0xff] }
 0x2a9   :  { %2293 = vst.msk [vmem:[#allocation3 + $0x80] sm:$0xff] %vm2276_vm10, %v2213_v54  ;;  %v2987_v32 = vpop.permute.xlu0 %2986  ;;  %4873 = vmatprep.mubr.msk.bf16.mxu0 %vm3539_vm14, %v3485_v16 }
 0x2aa   :  { %3066 = vst.msk [vmem:[#allocation3 + $0x88] sm:$0xff] %vm3048_vm13, %v2987_v32  ;;  %2234 = vrot.lane.b32.xlu1 %v2914_v59, %s4994_s19  ;;  %4874 = vmatmul.mubr.msk.bf16.gmra.mrb[60].mxu0 %vm3539_vm14, %v3486_v51  ;;  %v2623_v59 = vld [vmem:[#allocation2 + $0x301] sm:$0xff]  ;;  %v2624_v51 = vld [vmem:[#allocation2 + $0x309] sm:$0xff] }
 0x2ab   :  { %1722 = vrot.lane.b32.xlu0 %v5860_v46, %s4990_s2  ;;  %v2659_v32 = vpack.c.bf16 %v2624_v51, %v2623_v59  ;;  %v2112_v51 = vld [vmem:[#allocation2 + $0x31a] sm:$0xff] }
 0x2ac   :  { %v2471_v63 = vpop.permute.xlu1 %2470 }
 0x2ad   :  { %2551 = vst.msk [vmem:[#allocation3 + $0x80] sm:$0xff] %vm2534_vm11, %v2471_v63  ;;  %v1962_v22 = vpop.permute.xlu0 %1961 }
 0x2ae   :  { %v6452_v31 = vpop.f32.mrb[36].mxu0  ;;  %2039 = vst.msk [vmem:[#allocation3 + $0x98] sm:$0xff] %vm2019_vm9, %v1962_v22  ;;  %2492 = vrot.lane.b32.xlu1 %v5860_v46, %s4991_s16 }
 0x2af   :  { %v6455_v41 = vpop.f32.mrb[37].mxu0  ;;  %1979 = vrot.lane.b32.xlu0 %v1887_v42, %s4992_s17 }
 0x2b0   :  { %v6460_v25 = vpop.f32.mrb[38].mxu0  ;;  %v2728_v1 = vpop.permute.xlu1 %2727 }
 0x2b1   :  { %v6462_v9 = vpop.f32.mrb[39].mxu0  ;;  %2808 = vst.msk [vmem:[#allocation3 + $0x80] sm:$0xff] %vm2791_vm12, %v2728_v1  ;;  %v2219_v45 = vpop.permute.xlu0 %2218  ;;  %v3488_v7 = vld [vmem:[#allocation3 + $0x88] sm:$0xff] }
 0x2b2   :  { %2296 = vst.msk [vmem:[#allocation3 + $0x98] sm:$0xff] %vm2276_vm10, %v2219_v45  ;;  %2749 = vrot.lane.b32.xlu1 %v1887_v42, %s4993_s18  ;;  %v1855_v45 = vld [vmem:[#allocation2 + $0x319] sm:$0xff] }
 0x2b3   :  { %2236 = vrot.lane.b32.xlu0 %v2144_v56, %s4994_s19 }
 0x2b4   :  { %v2985_v46 = vpop.permute.xlu1 %2984 }
 0x2b5   :  { %3065 = vst.msk [vmem:[#allocation3 + $0x80] sm:$0xff] %vm3048_vm13, %v2985_v46  ;;  %v2477_v10 = vpop.permute.xlu0 %2476 }
 0x2b6   :  { %2554 = vst.msk [vmem:[#allocation3 + $0x98] sm:$0xff] %vm2534_vm11, %v2477_v10  ;;  %3006 = vrot.lane.b32.xlu1 %v2144_v56, %s4995_s20  ;;  %v1856_v56 = vld [vmem:[#allocation2 + $0x321] sm:$0xff] }
 0x2b7   :  { %2494 = vrot.lane.b32.xlu0 %v5854_v8, %s4991_s16  ;;  %v1889_v59 = vpack.c.bf16 %v1856_v56, %v1855_v45 }
 0x2b8   :  { %v1960_v54 = vpop.permute.xlu1 %1959 }
 0x2b9   :  { %2038 = vst.msk [vmem:[#allocation3 + $0x90] sm:$0xff] %vm2019_vm9, %v1960_v54  ;;  %v2734_v16 = vpop.permute.xlu0 %2733  ;;  %v2113_v54 = vld [vmem:[#allocation2 + $0x322] sm:$0xff] }
 0x2ba   :  { %2811 = vst.msk [vmem:[#allocation3 + $0x98] sm:$0xff] %vm2791_vm12, %v2734_v16  ;;  %1724 = vrot.lane.b32.xlu1 %v5854_v8, %s4990_s2  ;;  %v2146_v49 = vpack.c.bf16 %v2113_v54, %v2112_v51 }
 0x2bb   :  { %2751 = vrot.lane.b32.xlu0 %v2659_v32, %s4993_s18 }
 0x2bc   :  { %v2217_v63 = vpop.permute.xlu1 %2216  ;;  %v3487_v22 = vld [vmem:[#allocation3 + $0x80] sm:$0xff] }
 0x2bd   :  { %2295 = vst.msk [vmem:[#allocation3 + $0x90] sm:$0xff] %vm2276_vm10, %v2217_v63  ;;  %v2991_v42 = vpop.permute.xlu0 %2990  ;;  %4877 = vmatprep.mubr.msk.bf16.mxu0 %vm3539_vm14, %v3487_v22  ;;  %v2371_v63 = vld [vmem:[#allocation2 + $0x338] sm:$0xff] }
 0x2be   :  { %3068 = vst.msk [vmem:[#allocation3 + $0x98] sm:$0xff] %vm3048_vm13, %v2991_v42  ;;  %1981 = vrot.lane.b32.xlu1 %v2659_v32, %s4992_s17  ;;  %4878 = vmatmul.mubr.msk.bf16.gmra.mrb[64].mxu0 %vm3539_vm14, %v3488_v7  ;;  %v2404_v42 = vpack.c.bf16 %v2371_v63, %v2370_v4  ;;  %v2628_v7 = vld [vmem:[#allocation2 + $0x339] sm:$0xff]  ;;  %v2372_v63 = vld [vmem:[#allocation2 + $0x348] sm:$0xff] }
 0x2bf   :  { %3008 = vrot.lane.b32.xlu0 %v2916_v6, %s4995_s20 }
 0x2c0   :  { %v2475_v8 = vpop.permute.xlu1 %2474 }
 0x2c1   :  { %2553 = vst.msk [vmem:[#allocation3 + $0x90] sm:$0xff] %vm2534_vm11, %v2475_v8  ;;  %v1964_v1 = vpop.permute.xlu0 %1963 }
 0x2c2   :  { %2040 = vst.msk [vmem:[#allocation3 + $0xa0] sm:$0xff] %vm2019_vm9, %v1964_v1  ;;  %2238 = vrot.lane.b32.xlu1 %v2916_v6, %s4994_s19  ;;  %v2627_v6 = vld [vmem:[#allocation2 + $0x331] sm:$0xff] }
 0x2c3   :  { %1726 = vrot.lane.b32.xlu0 %v5899_v35, %s4990_s2  ;;  %v2661_v56 = vpack.c.bf16 %v2628_v7, %v2627_v6 }
 0x2c4   :  { %v2732_v46 = vpop.permute.xlu1 %2731 }
 0x2c5   :  { %2810 = vst.msk [vmem:[#allocation3 + $0x90] sm:$0xff] %vm2791_vm12, %v2732_v46  ;;  %v2221_v10 = vpop.permute.xlu0 %2220  ;;  %v3490_v46 = vld [vmem:[#allocation3 + $0x98] sm:$0xff] }
 0x2c6   :  { %2297 = vst.msk [vmem:[#allocation3 + $0xa0] sm:$0xff] %vm2276_vm10, %v2221_v10  ;;  %2496 = vrot.lane.b32.xlu1 %v5899_v35, %s4991_s16  ;;  %v2884_v10 = vld [vmem:[#allocation2 + $0x332] sm:$0xff] }
 0x2c7   :  { %1983 = vrot.lane.b32.xlu0 %v1889_v59, %s4992_s17 }
 0x2c8   :  { %v2989_v16 = vpop.permute.xlu1 %2988 }
 0x2c9   :  { %3067 = vst.msk [vmem:[#allocation3 + $0x90] sm:$0xff] %vm3048_vm13, %v2989_v16  ;;  %v2479_v32 = vpop.permute.xlu0 %2478 }
 0x2ca   :  { %2555 = vst.msk [vmem:[#allocation3 + $0xa0] sm:$0xff] %vm2534_vm11, %v2479_v32  ;;  %2753 = vrot.lane.b32.xlu1 %v1889_v59, %s4993_s18  ;;  %v2885_v59 = vld [vmem:[#allocation2 + $0x33a] sm:$0xff] }
 0x2cb   :  { %2240 = vrot.lane.b32.xlu0 %v2146_v49, %s4994_s19  ;;  %v2918_v32 = vpack.c.bf16 %v2885_v59, %v2884_v10  ;;  %v2886_v59 = vld [vmem:[#allocation2 + $0x34a] sm:$0xff] }
 0x2cc   :  { %v1709_v22 = vpop.permute.xlu1 %1708 }
 0x2cd   :  { %1784 = vst.msk [vmem:[#allocation3 + $0xa8] sm:$0xff] %vm1762_vm8, %v1709_v22  ;;  %v2736_v35 = vpop.permute.xlu0 %2735  ;;  %v2373_v22 = vld [vmem:[#allocation2 + $0x350] sm:$0xff] }
 0x2ce   :  { %2812 = vst.msk [vmem:[#allocation3 + $0xa0] sm:$0xff] %vm2791_vm12, %v2736_v35  ;;  %3010 = vrot.lane.b32.xlu1 %v2146_v49, %s4995_s20 }
 0x2cf   :  { %2498 = vrot.lane.b32.xlu0 %v2404_v42, %s4991_s16 }
 0x2d0   :  { %v1966_v8 = vpop.permute.xlu1 %1965  ;;  %v3489_v1 = vld [vmem:[#allocation3 + $0x90] sm:$0xff] }
 0x2d1   :  { %2041 = vst.msk [vmem:[#allocation3 + $0xa8] sm:$0xff] %vm2019_vm9, %v1966_v8  ;;  %v2993_v45 = vpop.permute.xlu0 %2992  ;;  %4881 = vmatprep.mubr.msk.bf16.mxu0 %vm3539_vm14, %v3489_v1  ;;  %v2405_v8 = vpack.c.bf16 %v2373_v22, %v2372_v63  ;;  %v2629_v1 = vld [vmem:[#allocation2 + $0x349] sm:$0xff] }
 0x2d2   :  { %3069 = vst.msk [vmem:[#allocation3 + $0xa0] sm:$0xff] %vm3048_vm13, %v2993_v45  ;;  %1728 = vrot.lane.b32.xlu1 %v2404_v42, %s4990_s2  ;;  %4882 = vmatmul.mubr.msk.bf16.gmra.mrb[68].mxu0 %vm3539_vm14, %v3490_v46  ;;  %v2630_v45 = vld [vmem:[#allocation2 + $0x351] sm:$0xff] }
 0x2d3   :  { %2755 = vrot.lane.b32.xlu0 %v2661_v56, %s4993_s18  ;;  %v2662_v10 = vpack.c.bf16 %v2630_v45, %v2629_v1 }
 0x2d4   :  { %v2223_v51 = vpop.permute.xlu1 %2222 }
 0x2d5   :  { %2298 = vst.msk [vmem:[#allocation3 + $0xa8] sm:$0xff] %vm2276_vm10, %v2223_v51  ;;  %v1711_v54 = vpop.permute.xlu0 %1710  ;;  %v2887_v51 = vld [vmem:[#allocation2 + $0x352] sm:$0xff] }
 0x2d6   :  { %v4855_v16 = vpop.f32.mrb[40].mxu0  ;;  %1785 = vst.msk [vmem:[#allocation3 + $0xb0] sm:$0xff] %vm1762_vm8, %v1711_v54  ;;  %1985 = vrot.lane.b32.xlu1 %v2661_v56, %s4992_s17 }
 0x2d7   :  { %v3705_v49 = vpop.f32.mrb[41].mxu0  ;;  %3012 = vrot.lane.b32.xlu0 %v2918_v32, %s4995_s20 }
 0x2d8   :  { %v6512_v4 = vpop.f32.mrb[42].mxu0  ;;  %v2481_v42 = vpop.permute.xlu1 %2480 }
 0x2d9   :  { %v6514_v35 = vpop.f32.mrb[43].mxu0  ;;  %2556 = vst.msk [vmem:[#allocation3 + $0xa8] sm:$0xff] %vm2534_vm11, %v2481_v42  ;;  %v1968_v6 = vpop.permute.xlu0 %1967  ;;  %v3491_v7 = vld [vmem:[#allocation3 + $0xa0] sm:$0xff] }
 0x2da   :  { %2042 = vst.msk [vmem:[#allocation3 + $0xb0] sm:$0xff] %vm2019_vm9, %v1968_v6  ;;  %4885 = vmatprep.mubr.msk.bf16.mxu0 %vm3539_vm14, %v3491_v7  ;;  %2242 = vrot.lane.b32.xlu1 %v2918_v32, %s4994_s19  ;;  %v2919_v32 = vpack.c.bf16 %v2887_v51, %v2886_v59 }
 0x2db   :  { %3996 = vrot.lane.b32.xlu0 %v6389_v61, %s4992_s17 }
 0x2dc   :  { %v2738_v56 = vpop.permute.xlu1 %2737 }
 0x2dd   :  { %2813 = vst.msk [vmem:[#allocation3 + $0xa8] sm:$0xff] %vm2791_vm12, %v2738_v56  ;;  %v2225_v46 = vpop.permute.xlu0 %2224 }
 0x2de   :  { %2299 = vst.msk [vmem:[#allocation3 + $0xb0] sm:$0xff] %vm2276_vm10, %v2225_v46  ;;  %2500 = vrot.lane.b32.xlu1 %v2405_v8, %s4991_s16 }
 0x2df   :  { %3992 = vrot.lane.b32.xlu0 %v6392_v50, %s4992_s17 }
 0x2e0   :  { %v2995_v54 = vpop.permute.xlu1 %2994 }
 0x2e1   :  { %3070 = vst.msk [vmem:[#allocation3 + $0xa8] sm:$0xff] %vm3048_vm13, %v2995_v54  ;;  %v2483_v61 = vpop.permute.xlu0 %2482 }
 0x2e2   :  { %2557 = vst.msk [vmem:[#allocation3 + $0xb0] sm:$0xff] %vm2534_vm11, %v2483_v61  ;;  %2757 = vrot.lane.b32.xlu1 %v2662_v10, %s4993_s18 }
 0x2e3   :  { %4004 = vrot.lane.b32.xlu0 %v6452_v31, %s4992_s17 }
 0x2e4   :  { %v1713_v63 = vpop.permute.xlu1 %1712 }
 0x2e5   :  { %1786 = vst.msk [vmem:[#allocation3 + $0xb8] sm:$0xff] %vm1762_vm8, %v1713_v63  ;;  %v2740_v22 = vpop.permute.xlu0 %2739 }
 0x2e6   :  { %2814 = vst.msk [vmem:[#allocation3 + $0xb0] sm:$0xff] %vm2791_vm12, %v2740_v22  ;;  %3014 = vrot.lane.b32.xlu1 %v2919_v32, %s4995_s20 }
 0x2e7   :  { %4000 = vrot.lane.b32.xlu0 %v6455_v41, %s4992_s17 }
 0x2e8   :  { %v1970_v50 = vpop.permute.xlu1 %1969  ;;  %v3492_v42 = vld [vmem:[#allocation3 + $0xa8] sm:$0xff] }
 0x2e9   :  { %2043 = vst.msk [vmem:[#allocation3 + $0xb8] sm:$0xff] %vm2019_vm9, %v1970_v50  ;;  %v2997_v6 = vpop.permute.xlu0 %2996  ;;  %4886 = vmatmul.mubr.msk.bf16.gmra.mrb[72].mxu0 %vm3539_vm14, %v3492_v42 }
 0x2ea   :  { %3071 = vst.msk [vmem:[#allocation3 + $0xb0] sm:$0xff] %vm3048_vm13, %v2997_v6  ;;  %3998 = vrot.lane.b32.xlu1 %v6396_v5, %s4992_s17 }
 0x2eb   :  { %4012 = vrot.lane.b32.xlu0 %v4855_v16, %s4992_s17 }
 0x2ec   :  { %v2227_v31 = vpop.permute.xlu1 %2226 }
 0x2ed   :  { %2300 = vst.msk [vmem:[#allocation3 + $0xb8] sm:$0xff] %vm2276_vm10, %v2227_v31  ;;  %v1715_v7 = vpop.permute.xlu0 %1714 }
 0x2ee   :  { %1787 = vst.msk [vmem:[#allocation3 + $0xc0] sm:$0xff] %vm1762_vm8, %v1715_v7  ;;  %3994 = vrot.lane.b32.xlu1 %v6398_v11, %s4992_s17 }
 0x2ef   :  { %4008 = vrot.lane.b32.xlu0 %v3705_v49, %s4992_s17 }
 0x2f0   :  { %v2485_v41 = vpop.permute.xlu1 %2484 }
 0x2f1   :  { %2558 = vst.msk [vmem:[#allocation3 + $0xb8] sm:$0xff] %vm2534_vm11, %v2485_v41  ;;  %v1972_v8 = vpop.permute.xlu0 %1971  ;;  %v3493_v1 = vld [vmem:[#allocation3 + $0xb0] sm:$0xff] }
 0x2f2   :  { %2044 = vst.msk [vmem:[#allocation3 + $0xc0] sm:$0xff] %vm2019_vm9, %v1972_v8  ;;  %4889 = vmatprep.mubr.msk.bf16.mxu0 %vm3539_vm14, %v3493_v1  ;;  %4006 = vrot.lane.b32.xlu1 %v6460_v25, %s4992_s17 }
 0x2f4   :  { %v2742_v5 = vpop.permute.xlu1 %2741 }
 0x2f5   :  { %2815 = vst.msk [vmem:[#allocation3 + $0xb8] sm:$0xff] %vm2791_vm12, %v2742_v5  ;;  %v2229_v16 = vpop.permute.xlu0 %2228 }
 0x2f6   :  { %2301 = vst.msk [vmem:[#allocation3 + $0xc0] sm:$0xff] %vm2276_vm10, %v2229_v16  ;;  %4002 = vrot.lane.b32.xlu1 %v6462_v9, %s4992_s17 }
 0x2f8   :  { %v2999_v11 = vpop.permute.xlu1 %2998 }
 0x2f9   :  { %3072 = vst.msk [vmem:[#allocation3 + $0xb8] sm:$0xff] %vm3048_vm13, %v2999_v11  ;;  %v2487_v49 = vpop.permute.xlu0 %2486 }
 0x2fa   :  { %2559 = vst.msk [vmem:[#allocation3 + $0xc0] sm:$0xff] %vm2534_vm11, %v2487_v49  ;;  %4014 = vrot.lane.b32.xlu1 %v6512_v4, %s4992_s17 }
 0x2fc   :  { %v1717_v45 = vpop.permute.xlu1 %1716 }
 0x2fd   :  { %1788 = vst.msk [vmem:[#allocation3 + $0xc8] sm:$0xff] %vm1762_vm8, %v1717_v45  ;;  %v2744_v25 = vpop.permute.xlu0 %2743 }
 0x2fe   :  { %v4859_v56 = vpop.f32.mrb[44].mxu0  ;;  %2816 = vst.msk [vmem:[#allocation3 + $0xc0] sm:$0xff] %vm2791_vm12, %v2744_v25  ;;  %4010 = vrot.lane.b32.xlu1 %v6514_v35, %s4992_s17 }
 0x2ff   :  { %4020 = vrot.lane.b32.xlu0 %v4859_v56, %s4992_s17  ;;  %v3721_v46 = vpop.f32.mrb[45].mxu0 }
 0x300   :  { %v4860_v9 = vpop.f32.mrb[46].mxu0  ;;  %v1974_v59 = vpop.permute.xlu1 %1973  ;;  %v3494_v51 = vld [vmem:[#allocation3 + $0xb8] sm:$0xff] }
 0x301   :  { %v3724_v10 = vpop.f32.mrb[47].mxu0  ;;  %2045 = vst.msk [vmem:[#allocation3 + $0xc8] sm:$0xff] %vm2019_vm9, %v1974_v59  ;;  %v3001_v4 = vpop.permute.xlu0 %3000  ;;  %4890 = vmatmul.mubr.msk.bf16.gmra.mrb[76].mxu0 %vm3539_vm14, %v3494_v51 }
 0x302   :  { %3073 = vst.msk [vmem:[#allocation3 + $0xc0] sm:$0xff] %vm3048_vm13, %v3001_v4  ;;  %4022 = vrot.lane.b32.xlu1 %v4860_v9, %s4992_s17 }
 0x303   :  { %4016 = vrot.lane.b32.xlu0 %v3721_v46, %s4992_s17 }
 0x304   :  { %v2231_v54 = vpop.permute.xlu1 %2230 }
 0x305   :  { %2302 = vst.msk [vmem:[#allocation3 + $0xc8] sm:$0xff] %vm2276_vm10, %v2231_v54  ;;  %v1719_v61 = vpop.permute.xlu0 %1718 }
 0x306   :  { %1789 = vst.msk [vmem:[#allocation3 + $0xd0] sm:$0xff] %vm1762_vm8, %v1719_v61  ;;  %4018 = vrot.lane.b32.xlu1 %v3724_v10, %s4992_s17 }
 0x308   :  { %v2489_v35 = vpop.permute.xlu1 %2488 }
 0x309   :  { %2560 = vst.msk [vmem:[#allocation3 + $0xc8] sm:$0xff] %vm2534_vm11, %v2489_v35  ;;  %v1976_v32 = vpop.permute.xlu0 %1975  ;;  %v3495_v63 = vld [vmem:[#allocation3 + $0xc0] sm:$0xff] }
 0x30a   :  { %2046 = vst.msk [vmem:[#allocation3 + $0xd0] sm:$0xff] %vm2019_vm9, %v1976_v32  ;;  %4893 = vmatprep.mubr.msk.bf16.mxu0 %vm3539_vm14, %v3495_v63 }
 0x30c   :  { %v2746_v22 = vpop.permute.xlu1 %2745 }
 0x30d   :  { %2817 = vst.msk [vmem:[#allocation3 + $0xc8] sm:$0xff] %vm2791_vm12, %v2746_v22  ;;  %v2233_v50 = vpop.permute.xlu0 %2232 }
 0x30e   :  { %2303 = vst.msk [vmem:[#allocation3 + $0xd0] sm:$0xff] %vm2276_vm10, %v2233_v50 }
 0x310   :  { %v3003_v42 = vpop.permute.xlu1 %3002 }
 0x311   :  { %3074 = vst.msk [vmem:[#allocation3 + $0xc8] sm:$0xff] %vm3048_vm13, %v3003_v42  ;;  %v2491_v6 = vpop.permute.xlu0 %2490 }
 0x312   :  { %2561 = vst.msk [vmem:[#allocation3 + $0xd0] sm:$0xff] %vm2534_vm11, %v2491_v6 }
 0x314   :  { %v1721_v31 = vpop.permute.xlu1 %1720 }
 0x315   :  { %1790 = vst.msk [vmem:[#allocation3 + $0xd8] sm:$0xff] %vm1762_vm8, %v1721_v31  ;;  %v2748_v7 = vpop.permute.xlu0 %2747 }
 0x316   :  { %2818 = vst.msk [vmem:[#allocation3 + $0xd0] sm:$0xff] %vm2791_vm12, %v2748_v7 }
 0x318   :  { %v1978_v41 = vpop.permute.xlu1 %1977  ;;  %v3496_v8 = vld [vmem:[#allocation3 + $0xc8] sm:$0xff] }
 0x319   :  { %2047 = vst.msk [vmem:[#allocation3 + $0xd8] sm:$0xff] %vm2019_vm9, %v1978_v41  ;;  %v3005_v1 = vpop.permute.xlu0 %3004  ;;  %4894 = vmatmul.mubr.msk.bf16.gmra.mrb[80].mxu0 %vm3539_vm14, %v3496_v8 }
 0x31a   :  { %3075 = vst.msk [vmem:[#allocation3 + $0xd0] sm:$0xff] %vm3048_vm13, %v3005_v1 }
 0x31c   :  { %v2235_v5 = vpop.permute.xlu1 %2234 }
 0x31d   :  { %2304 = vst.msk [vmem:[#allocation3 + $0xd8] sm:$0xff] %vm2276_vm10, %v2235_v5  ;;  %v1723_v16 = vpop.permute.xlu0 %1722 }
 0x31e   :  { %1791 = vst.msk [vmem:[#allocation3 + $0xe0] sm:$0xff] %vm1762_vm8, %v1723_v16 }
 0x320   :  { %v2493_v11 = vpop.permute.xlu1 %2492 }
 0x321   :  { %2562 = vst.msk [vmem:[#allocation3 + $0xd8] sm:$0xff] %vm2534_vm11, %v2493_v11  ;;  %v1980_v49 = vpop.permute.xlu0 %1979  ;;  %v3497_v45 = vld [vmem:[#allocation3 + $0xd0] sm:$0xff] }
 0x322   :  { %2048 = vst.msk [vmem:[#allocation3 + $0xe0] sm:$0xff] %vm2019_vm9, %v1980_v49  ;;  %4897 = vmatprep.mubr.msk.bf16.mxu0 %vm3539_vm14, %v3497_v45 }
 0x324   :  { %v2750_v25 = vpop.permute.xlu1 %2749 }
 0x325   :  { %2819 = vst.msk [vmem:[#allocation3 + $0xd8] sm:$0xff] %vm2791_vm12, %v2750_v25  ;;  %v2237_v56 = vpop.permute.xlu0 %2236 }
 0x326   :  { %v4863_v46 = vpop.f32.mrb[48].mxu0  ;;  %2305 = vst.msk [vmem:[#allocation3 + $0xe0] sm:$0xff] %vm2276_vm10, %v2237_v56 }
 0x327   :  { %4028 = vrot.lane.b32.xlu0 %v4863_v46, %s4992_s17  ;;  %v3737_v9 = vpop.f32.mrb[49].mxu0 }
 0x328   :  { %v4864_v10 = vpop.f32.mrb[50].mxu0  ;;  %v3007_v51 = vpop.permute.xlu1 %3006 }
 0x329   :  { %4030 = vrot.lane.b32.xlu1 %v4864_v10, %s4992_s17  ;;  %v3740_v59 = vpop.f32.mrb[51].mxu0  ;;  %3076 = vst.msk [vmem:[#allocation3 + $0xd8] sm:$0xff] %vm3048_vm13, %v3007_v51  ;;  %v2495_v4 = vpop.permute.xlu0 %2494 }
 0x32a   :  { %2563 = vst.msk [vmem:[#allocation3 + $0xe0] sm:$0xff] %vm2534_vm11, %v2495_v4 }
 0x32b   :  { %4024 = vrot.lane.b32.xlu0 %v3737_v9, %s4992_s17 }
 0x32c   :  { %v1725_v54 = vpop.permute.xlu1 %1724 }
 0x32d   :  { %4026 = vrot.lane.b32.xlu1 %v3740_v59, %s4992_s17  ;;  %1792 = vst.msk [vmem:[#allocation3 + $0xe8] sm:$0xff] %vm1762_vm8, %v1725_v54  ;;  %v2752_v61 = vpop.permute.xlu0 %2751  ;;  %v6625_v59 = vld [vmem:[%s6947_s5] ss:$0 sm:$0xff]  ;;  %s4996_s5 = smov [#allocation4]  }
 0x32e   :  { %2820 = vst.msk [vmem:[#allocation3 + $0xe0] sm:$0xff] %vm2791_vm12, %v2752_v61  ;;  %s4454_s7 = sshll.u32 %s4996_s5, 4  ;;  %s4455_s7 = int_to_ptr.vmem [resolvable:$true] %s4454_s7 }
 0x32f   :  { %s4963_s8 = scalar_lea.vmem %s4455_s7, 8192  ;;  %p4968_p1 = scmp.lt.s32.totalorder %s4455_s7, %s4455_s7 }
 0x330   :  { %v1982_v35 = vpop.permute.xlu1 %1981  ;;  %v3498_v32 = vld [vmem:[#allocation3 + $0xd8] sm:$0xff]  ;;  %p4964_p0 = scmp.ne.s32.totalorder %s4455_s7, %s4963_s8  ;;  %p4969_p2 = scmp.lt.s32.totalorder %s4963_s8, %s4963_s8 }
 0x331   :  { %2049 = vst.msk [vmem:[#allocation3 + $0xe8] sm:$0xff] %vm2019_vm9, %v1982_v35  ;;  %v3009_v63 = vpop.permute.xlu0 %3008  ;;  %4898 = vmatmul.mubr.msk.bf16.gmra.mrb[84].mxu0 %vm3539_vm14, %v3498_v32 }
 0x332   :  { %3077 = vst.msk [vmem:[#allocation3 + $0xe0] sm:$0xff] %vm3048_vm13, %v3009_v63  ;;  %p4970_p3 = por %p4969_p2, %p4968_p1 }
 0x334   :  { %v2239_v22 = vpop.permute.xlu1 %2238  ;;  %p4971_p4 = pnand %p4970_p3, %p4964_p0 }
 0x335   :  { %2306 = vst.msk [vmem:[#allocation3 + $0xe8] sm:$0xff] %vm2276_vm10, %v2239_v22  ;;  %v1727_v50 = vpop.permute.xlu0 %1726 }
 0x336   :  { %1793 = vst.msk [vmem:[#allocation3 + $0xf0] sm:$0xff] %vm1762_vm8, %v1727_v50 }
 0x338   :  { %v2497_v42 = vpop.permute.xlu1 %2496 }
 0x339   :  { %2564 = vst.msk [vmem:[#allocation3 + $0xe8] sm:$0xff] %vm2534_vm11, %v2497_v42  ;;  %v1984_v6 = vpop.permute.xlu0 %1983  ;;  %v3499_v31 = vld [vmem:[#allocation3 + $0xe0] sm:$0xff] }
 0x33a   :  { %2050 = vst.msk [vmem:[#allocation3 + $0xf0] sm:$0xff] %vm2019_vm9, %v1984_v6  ;;  %4901 = vmatprep.mubr.msk.bf16.mxu0 %vm3539_vm14, %v3499_v31 }
 0x33c   :  { %v2754_v7 = vpop.permute.xlu1 %2753 }
 0x33d   :  { %2821 = vst.msk [vmem:[#allocation3 + $0xe8] sm:$0xff] %vm2791_vm12, %v2754_v7  ;;  %v2241_v41 = vpop.permute.xlu0 %2240 }
 0x33e   :  { %2307 = vst.msk [vmem:[#allocation3 + $0xf0] sm:$0xff] %vm2276_vm10, %v2241_v41 }
 0x340   :  { %v3011_v8 = vpop.permute.xlu1 %3010 }
 0x341   :  { %3078 = vst.msk [vmem:[#allocation3 + $0xe8] sm:$0xff] %vm3048_vm13, %v3011_v8  ;;  %v2499_v1 = vpop.permute.xlu0 %2498 }
 0x342   :  { %2565 = vst.msk [vmem:[#allocation3 + $0xf0] sm:$0xff] %vm2534_vm11, %v2499_v1 }
 0x344   :  { %v1729_v5 = vpop.permute.xlu1 %1728 }
 0x345   :  { %1794 = vst.msk [vmem:[#allocation3 + $0xf8] sm:$0xff] %vm1762_vm8, %v1729_v5  ;;  %v2756_v16 = vpop.permute.xlu0 %2755  ;;  %v4867_v11 = vpop.f32.mrb[52].mxu0 }
 0x346   :  { %2822 = vst.msk [vmem:[#allocation3 + $0xf0] sm:$0xff] %vm2791_vm12, %v2756_v16  ;;  %4036 = vrot.lane.b32.xlu0 %v4867_v11, %s4992_s17  ;;  %v3753_v49 = vpop.f32.mrb[53].mxu0 }
 0x347   :  { %v4868_v45 = vpop.f32.mrb[54].mxu0 }
 0x348   :  { %4038 = vrot.lane.b32.xlu1 %v4868_v45, %s4992_s17  ;;  %v3756_v25 = vpop.f32.mrb[55].mxu0  ;;  %v1986_v56 = vpop.permute.xlu1 %1985  ;;  %v3500_v46 = vld [vmem:[#allocation3 + $0xe8] sm:$0xff] }
 0x349   :  { %2051 = vst.msk [vmem:[#allocation3 + $0xf8] sm:$0xff] %vm2019_vm9, %v1986_v56  ;;  %v3013_v9 = vpop.permute.xlu0 %3012  ;;  %4902 = vmatmul.mubr.msk.bf16.gmra.mrb[88].mxu0 %vm3539_vm14, %v3500_v46 }
 0x34a   :  { %3079 = vst.msk [vmem:[#allocation3 + $0xf0] sm:$0xff] %vm3048_vm13, %v3013_v9  ;;  %4032 = vrot.lane.b32.xlu0 %v3753_v49, %s4992_s17 }
 0x34c   :  { %4034 = vrot.lane.b32.xlu1 %v3756_v25, %s4992_s17  ;;  %v2243_v10 = vpop.permute.xlu1 %2242 }
 0x34d   :  { %2308 = vst.msk [vmem:[#allocation3 + $0xf8] sm:$0xff] %vm2276_vm10, %v2243_v10  ;;  %v3997_v51 = vpop.permute.xlu0 %3996 }
 0x34e   :  { %v4187_v4 = vsel %vm4184_vm15, %v5944_v24, %v3997_v51 }
 0x34f   :  { %v4258_v54 = vadd.f32 %v6625_v59, %v4187_v4 }
 0x350   :  { %v2501_v61 = vpop.permute.xlu1 %2500 }
 0x351   :  { %v4322_v35 = vmax.f32 %v4258_v54, 0.0  ;;  %2566 = vst.msk [vmem:[#allocation3 + $0xf8] sm:$0xff] %vm2534_vm11, %v2501_v61  ;;  %v3993_v32 = vpop.permute.xlu0 %3992  ;;  %v3501_v63 = vld [vmem:[#allocation3 + $0xf0] sm:$0xff] }
 0x352   :  { %v4185_v22 = vsel %vm4184_vm15, %v5948_v26, %v3993_v32  ;;  %4905 = vmatprep.mubr.msk.bf16.mxu0 %vm3539_vm14, %v3501_v63 }
 0x353   :  { %4387 = vst.msk [vmem:[#allocation4 + $0x10] sm:$0xff] %vm4384_vm0, %v4322_v35  ;;  %v4256_v50 = vadd.f32 %v6625_v59, %v4185_v22 }
 0x354   :  { %v2758_v42 = vpop.permute.xlu1 %2757 }
 0x355   :  { %v4320_v24 = vmax.f32 %v4256_v50, 0.0  ;;  %2823 = vst.msk [vmem:[#allocation3 + $0xf8] sm:$0xff] %vm2791_vm12, %v2758_v42  ;;  %v4005_v6 = vpop.permute.xlu0 %4004 }
 0x356   :  { %v4191_v31 = vsel %vm4184_vm15, %v5963_v20, %v4005_v6 }
 0x357   :  { %4385 = vst.msk [vmem:[#allocation4] sm:$0xff] %vm4384_vm0, %v4320_v24  ;;  %v4262_v7 = vadd.f32 %v6625_v59, %v4191_v31 }
 0x358   :  { %v3015_v41 = vpop.permute.xlu1 %3014 }
 0x359   :  { %v4326_v26 = vmax.f32 %v4262_v7, 0.0  ;;  %3080 = vst.msk [vmem:[#allocation3 + $0xf8] sm:$0xff] %vm3048_vm13, %v3015_v41  ;;  %v4001_v8 = vpop.permute.xlu0 %4000 }
 0x35a   :  { %v4189_v1 = vsel %vm4184_vm15, %v5967_v52, %v4001_v8 }
 0x35b   :  { %4391 = vst.msk [vmem:[#allocation4 + $0x30] sm:$0xff] %vm4384_vm0, %v4326_v26  ;;  %v4260_v5 = vadd.f32 %v6625_v59, %v4189_v1 }
 0x35c   :  { %v3999_v16 = vpop.permute.xlu1 %3998 }
 0x35d   :  { %v4324_v11 = vmax.f32 %v4260_v5, 0.0  ;;  %v4188_v20 = vsel %vm4184_vm15, %v5950_v58, %v3999_v16  ;;  %v4013_v49 = vpop.permute.xlu0 %4012 }
 0x35e   :  { %v4259_v45 = vadd.f32 %v6625_v59, %v4188_v20  ;;  %v4195_v25 = vsel %vm4184_vm15, %v5980_v30, %v4013_v49 }
 0x35f   :  { %4389 = vst.msk [vmem:[#allocation4 + $0x20] sm:$0xff] %vm4384_vm0, %v4324_v11  ;;  %v4266_v56 = vadd.f32 %v6625_v59, %v4195_v25 }
 0x360   :  { %v4323_v52 = vmax.f32 %v4259_v45, 0.0  ;;  %v3995_v46 = vpop.permute.xlu1 %3994  ;;  %v3502_v9 = vld [vmem:[#allocation3 + $0xf8] sm:$0xff] }
 0x361   :  { %v4330_v10 = vmax.f32 %v4266_v56, 0.0  ;;  %v4186_v51 = vsel %vm4184_vm15, %v5954_v43, %v3995_v46  ;;  %v4009_v4 = vpop.permute.xlu0 %4008  ;;  %4906 = vmatmul.mubr.msk.bf16.gmra.mrb[92].mxu0 %vm3539_vm14, %v3502_v9 }
 0x362   :  { %4388 = vst.msk [vmem:[#allocation4 + $0x18] sm:$0xff] %vm4384_vm0, %v4323_v52  ;;  %v4257_v58 = vadd.f32 %v6625_v59, %v4186_v51  ;;  %v4193_v30 = vsel %vm4184_vm15, %v5982_v39, %v4009_v4 }
 0x363   :  { %4395 = vst.msk [vmem:[#allocation4 + $0x50] sm:$0xff] %vm4384_vm0, %v4330_v10  ;;  %v4264_v54 = vadd.f32 %v6625_v59, %v4193_v30 }
 0x364   :  { %v4321_v61 = vmax.f32 %v4257_v58, 0.0  ;;  %v4007_v35 = vpop.permute.xlu1 %4006 }
 0x365   :  { %v4328_v32 = vmax.f32 %v4264_v54, 0.0  ;;  %v4192_v43 = vsel %vm4184_vm15, %v5969_v38, %v4007_v35 }
 0x366   :  { %4386 = vst.msk [vmem:[#allocation4 + $0x8] sm:$0xff] %vm4384_vm0, %v4321_v61  ;;  %v4263_v63 = vadd.f32 %v6625_v59, %v4192_v43 }
 0x367   :  { %4393 = vst.msk [vmem:[#allocation4 + $0x40] sm:$0xff] %vm4384_vm0, %v4328_v32 }
 0x368   :  { %v4327_v22 = vmax.f32 %v4263_v63, 0.0  ;;  %v4003_v50 = vpop.permute.xlu1 %4002 }
 0x369   :  { %v4190_v39 = vsel %vm4184_vm15, %v5973_v34, %v4003_v50  ;;  %v4871_v42 = vpop.f32.mrb[56].mxu0 }
 0x36a   :  { %4392 = vst.msk [vmem:[#allocation4 + $0x38] sm:$0xff] %vm4384_vm0, %v4327_v22  ;;  %v4261_v24 = vadd.f32 %v6625_v59, %v4190_v39  ;;  %4044 = vrot.lane.b32.xlu0 %v4871_v42, %s4992_s17  ;;  %v3769_v6 = vpop.f32.mrb[57].mxu0 }
 0x36b   :  { %v4872_v38 = vpop.f32.mrb[58].mxu0 }
 0x36c   :  { %v4325_v31 = vmax.f32 %v4261_v24, 0.0  ;;  %v4015_v7 = vpop.permute.xlu1 %4014  ;;  %4046 = vrot.lane.b32.xlu1 %v4872_v38, %s4992_s17  ;;  %v3772_v41 = vpop.f32.mrb[59].mxu0 }
 0x36d   :  { %v4196_v26 = vsel %vm4184_vm15, %v5985_v55, %v4015_v7 }
 0x36e   :  { %4390 = vst.msk [vmem:[#allocation4 + $0x28] sm:$0xff] %vm4384_vm0, %v4325_v31  ;;  %v4267_v34 = vadd.f32 %v6625_v59, %v4196_v26  ;;  %4040 = vrot.lane.b32.xlu0 %v3769_v6, %s4992_s17 }
 0x370   :  { %v4331_v8 = vmax.f32 %v4267_v34, 0.0  ;;  %v4011_v5 = vpop.permute.xlu1 %4010  ;;  %4042 = vrot.lane.b32.xlu1 %v3772_v41, %s4992_s17 }
 0x371   :  { %v4021_v1 = vpop.permute.xlu0 %4020  ;;  %v4194_v11 = vsel %vm4184_vm15, %v5989_v19, %v4011_v5 }
 0x372   :  { %v4199_v16 = vsel %vm4184_vm15, %v6000_v57, %v4021_v1  ;;  %4396 = vst.msk [vmem:[#allocation4 + $0x58] sm:$0xff] %vm4384_vm0, %v4331_v8  ;;  %v4265_v20 = vadd.f32 %v6625_v59, %v4194_v11 }
 0x373   :  { %v4270_v55 = vadd.f32 %v6625_v59, %v4199_v16 }
 0x374   :  { %v4329_v45 = vmax.f32 %v4265_v20, 0.0  ;;  %v4023_v56 = vpop.permute.xlu1 %4022 }
 0x375   :  { %v4334_v49 = vmax.f32 %v4270_v55, 0.0  ;;  %v4017_v25 = vpop.permute.xlu0 %4016  ;;  %v4200_v46 = vsel %vm4184_vm15, %v6006_v60, %v4023_v56 }
 0x376   :  { %v4197_v52 = vsel %vm4184_vm15, %v6003_v2, %v4017_v25  ;;  %4394 = vst.msk [vmem:[#allocation4 + $0x48] sm:$0xff] %vm4384_vm0, %v4329_v45  ;;  %v4271_v57 = vadd.f32 %v6625_v59, %v4200_v46 }
 0x377   :  { %4399 = vst.msk [vmem:[#allocation4 + $0x70] sm:$0xff] %vm4384_vm0, %v4334_v49  ;;  %v4268_v19 = vadd.f32 %v6625_v59, %v4197_v52 }
 0x378   :  { %v4335_v10 = vmax.f32 %v4271_v57, 0.0  ;;  %v4019_v51 = vpop.permute.xlu1 %4018 }
 0x379   :  { %v4332_v9 = vmax.f32 %v4268_v19, 0.0  ;;  %v4198_v4 = vsel %vm4184_vm15, %v6010_v48, %v4019_v51 }
 0x37a   :  { %4400 = vst.msk [vmem:[#allocation4 + $0x78] sm:$0xff] %vm4384_vm0, %v4335_v10  ;;  %v4269_v2 = vadd.f32 %v6625_v59, %v4198_v4 }
 0x37b   :  { %4397 = vst.msk [vmem:[#allocation4 + $0x60] sm:$0xff] %vm4384_vm0, %v4332_v9 }
 0x37c   :  { %v4333_v60 = vmax.f32 %v4269_v2, 0.0 }
 0x37d   :  { %v4875_v58 = vpop.f32.mrb[60].mxu0 }
 0x37e   :  { %4398 = vst.msk [vmem:[#allocation4 + $0x68] sm:$0xff] %vm4384_vm0, %v4333_v60  ;;  %4052 = vrot.lane.b32.xlu0 %v4875_v58, %s4992_s17  ;;  %v3785_v30 = vpop.f32.mrb[61].mxu0 }
 0x37f   :  { %v4876_v54 = vpop.f32.mrb[62].mxu0 }
 0x380   :  { %4054 = vrot.lane.b32.xlu1 %v4876_v54, %s4992_s17  ;;  %v3788_v61 = vpop.f32.mrb[63].mxu0 }
 0x382   :  { %4048 = vrot.lane.b32.xlu0 %v3785_v30, %s4992_s17 }
 0x384   :  { %4050 = vrot.lane.b32.xlu1 %v3788_v61, %s4992_s17 }
 0x391   :  { %v4879_v48 = vpop.f32.mrb[64].mxu0 }
 0x392   :  { %4060 = vrot.lane.b32.xlu0 %v4879_v48, %s4992_s17  ;;  %v3801_v35 = vpop.f32.mrb[65].mxu0 }
 0x393   :  { %v4880_v32 = vpop.f32.mrb[66].mxu0 }
 0x394   :  { %4062 = vrot.lane.b32.xlu1 %v4880_v32, %s4992_s17  ;;  %v3804_v43 = vpop.f32.mrb[67].mxu0 }
 0x396   :  { %4056 = vrot.lane.b32.xlu0 %v3801_v35, %s4992_s17 }
 0x398   :  { %4058 = vrot.lane.b32.xlu1 %v3804_v43, %s4992_s17 }
 0x399   :  { %v4029_v63 = vpop.permute.xlu0 %4028 }
 0x39a   :  { %v4203_v22 = vsel %vm4184_vm15, %v6019_v28, %v4029_v63 }
 0x39b   :  { %v4274_v50 = vadd.f32 %v6625_v59, %v4203_v22  ;;  %v4031_v39 = vpop.permute.xlu1 %4030 }
 0x39c   :  { %v4204_v42 = vsel %vm4184_vm15, %v6024_v33, %v4031_v39 }
 0x39d   :  { %v4338_v24 = vmax.f32 %v4274_v50, 0.0  ;;  %v4275_v6 = vadd.f32 %v6625_v59, %v4204_v42  ;;  %v4025_v38 = vpop.permute.xlu0 %4024 }
 0x39e   :  { %v4201_v31 = vsel %vm4184_vm15, %v6021_v23, %v4025_v38 }
 0x39f   :  { %4403 = vst.msk [vmem:[#allocation4 + $0x90] sm:$0xff] %vm4384_vm0, %v4338_v24  ;;  %v4339_v7 = vmax.f32 %v4275_v6, 0.0  ;;  %v4272_v41 = vadd.f32 %v6625_v59, %v4201_v31  ;;  %v4027_v26 = vpop.permute.xlu1 %4026 }
 0x3a0   :  { %v4202_v28 = vsel %vm4184_vm15, %v6031_v17, %v4027_v26 }
 0x3a1   :  { %4404 = vst.msk [vmem:[#allocation4 + $0x98] sm:$0xff] %vm4384_vm0, %v4339_v7  ;;  %v4336_v34 = vmax.f32 %v4272_v41, 0.0  ;;  %v4273_v33 = vadd.f32 %v6625_v59, %v4202_v28 }
 0x3a3   :  { %4401 = vst.msk [vmem:[#allocation4 + $0x80] sm:$0xff] %vm4384_vm0, %v4336_v34  ;;  %v4337_v8 = vmax.f32 %v4273_v33, 0.0 }
 0x3a5   :  { %4402 = vst.msk [vmem:[#allocation4 + $0x88] sm:$0xff] %vm4384_vm0, %v4337_v8  ;;  %v4883_v23 = vpop.f32.mrb[68].mxu0 }
 0x3a6   :  { %4068 = vrot.lane.b32.xlu0 %v4883_v23, %s4992_s17  ;;  %v3817_v1 = vpop.f32.mrb[69].mxu0 }
 0x3a7   :  { %v4884_v5 = vpop.f32.mrb[70].mxu0 }
 0x3a8   :  { %4070 = vrot.lane.b32.xlu1 %v4884_v5, %s4992_s17  ;;  %v3820_v16 = vpop.f32.mrb[71].mxu0  ;;  %v6976_v5 = vld [vmem:[#allocation7_spill] sm:$0xff] }
 0x3aa   :  { %4064 = vrot.lane.b32.xlu0 %v3817_v1, %s4992_s17 }
 0x3ac   :  { %4066 = vrot.lane.b32.xlu1 %v3820_v16, %s4992_s17 }
 0x3b8   :  { %v4037_v17 = vpop.permute.xlu0 %4036 }
 0x3b9   :  { %v4207_v11 = vsel %vm4184_vm15, %v6044_v47, %v4037_v17 }
 0x3ba   :  { %v4278_v55 = vadd.f32 %v6625_v59, %v4207_v11  ;;  %v4039_v20 = vpop.permute.xlu1 %4038 }
 0x3bb   :  { %v4208_v49 = vsel %vm4184_vm15, %v6052_v62, %v4039_v20 }
 0x3bc   :  { %v4342_v45 = vmax.f32 %v4278_v55, 0.0  ;;  %v4279_v25 = vadd.f32 %v6625_v59, %v4208_v49  ;;  %v4033_v56 = vpop.permute.xlu0 %4032  ;;  %v4887_v52 = vpop.f32.mrb[72].mxu0  ;;  %v6977_v55 = vld [vmem:[#allocation8_spill] sm:$0xff] }
 0x3bd   :  { %v4205_v46 = vsel %vm4184_vm15, %v6048_v53, %v4033_v56  ;;  %4076 = vrot.lane.b32.xlu0 %v4887_v52, %s4992_s17  ;;  %v3833_v19 = vpop.f32.mrb[73].mxu0  ;;  %v6978_v52 = vld [vmem:[#allocation9_spill] sm:$0xff] }
 0x3be   :  { %4407 = vst.msk [vmem:[#allocation4 + $0xb0] sm:$0xff] %vm4384_vm0, %v4342_v45  ;;  %v4343_v47 = vmax.f32 %v4279_v25, 0.0  ;;  %v4276_v57 = vadd.f32 %v6625_v59, %v4205_v46  ;;  %v4035_v9 = vpop.permute.xlu1 %4034  ;;  %v4888_v10 = vpop.f32.mrb[74].mxu0 }
 0x3bf   :  { %v4206_v62 = vsel %vm4184_vm15, %v6057_v12, %v4035_v9  ;;  %4078 = vrot.lane.b32.xlu1 %v4888_v10, %s4992_s17  ;;  %v3836_v51 = vpop.f32.mrb[75].mxu0  ;;  %v6979_v10 = vld [vmem:[#allocation11_spill] sm:$0xff] }
 0x3c0   :  { %4408 = vst.msk [vmem:[#allocation4 + $0xb8] sm:$0xff] %vm4384_vm0, %v4343_v47  ;;  %v4340_v4 = vmax.f32 %v4276_v57, 0.0  ;;  %v4277_v53 = vadd.f32 %v6625_v59, %v4206_v62 }
 0x3c1   :  { %4072 = vrot.lane.b32.xlu0 %v3833_v19, %s4992_s17 }
 0x3c2   :  { %4405 = vst.msk [vmem:[#allocation4 + $0xa0] sm:$0xff] %vm4384_vm0, %v4340_v4  ;;  %v4341_v2 = vmax.f32 %v4277_v53, 0.0 }
 0x3c3   :  { %4074 = vrot.lane.b32.xlu1 %v3836_v51, %s4992_s17 }
 0x3c4   :  { %4406 = vst.msk [vmem:[#allocation4 + $0xa8] sm:$0xff] %vm4384_vm0, %v4341_v2 }
 0x3d4   :  { %v4891_v60 = vpop.f32.mrb[76].mxu0 }
 0x3d5   :  { %4084 = vrot.lane.b32.xlu0 %v4891_v60, %s4992_s17  ;;  %v3849_v12 = vpop.f32.mrb[77].mxu0  ;;  %v6980_v60 = vld [vmem:[#allocation10_spill] sm:$0xff] }
 0x3d6   :  { %v4892_v58 = vpop.f32.mrb[78].mxu0 }
 0x3d7   :  { %4086 = vrot.lane.b32.xlu1 %v4892_v58, %s4992_s17  ;;  %v3852_v30 = vpop.f32.mrb[79].mxu0 }
 0x3d9   :  { %4080 = vrot.lane.b32.xlu0 %v3849_v12, %s4992_s17 }
 0x3db   :  { %4082 = vrot.lane.b32.xlu1 %v3852_v30, %s4992_s17 }
 0x3dc   :  { %v4045_v54 = vpop.permute.xlu0 %4044 }
 0x3dd   :  { %v4211_v61 = vsel %vm4184_vm15, %v6066_v15, %v4045_v54 }
 0x3de   :  { %v4282_v48 = vadd.f32 %v6625_v59, %v4211_v61  ;;  %v4047_v35 = vpop.permute.xlu1 %4046  ;;  %v6981_v61 = vld [vmem:[#allocation12_spill] sm:$0xff] }
 0x3df   :  { %v4212_v32 = vsel %vm4184_vm15, %v6072_v0, %v4047_v35 }
 0x3e0   :  { %v4346_v43 = vmax.f32 %v4282_v48, 0.0  ;;  %v4283_v63 = vadd.f32 %v6625_v59, %v4212_v32  ;;  %v4041_v22 = vpop.permute.xlu0 %4040 }
 0x3e1   :  { %v4209_v50 = vsel %vm4184_vm15, %v6070_v29, %v4041_v22  ;;  %v6982_v22 = vld [vmem:[#allocation13_spill] sm:$0xff] }
 0x3e2   :  { %4411 = vst.msk [vmem:[#allocation4 + $0xd0] sm:$0xff] %vm4384_vm0, %v4346_v43  ;;  %v4347_v39 = vmax.f32 %v4283_v63, 0.0  ;;  %v4280_v42 = vadd.f32 %v6625_v59, %v4209_v50  ;;  %v4043_v24 = vpop.permute.xlu1 %4042 }
 0x3e3   :  { %v4210_v15 = vsel %vm4184_vm15, %v6075_v36, %v4043_v24  ;;  %v6983_v24 = vld [vmem:[#allocation15_spill] sm:$0xff] }
 0x3e4   :  { %4412 = vst.msk [vmem:[#allocation4 + $0xd8] sm:$0xff] %vm4384_vm0, %v4347_v39  ;;  %v4344_v6 = vmax.f32 %v4280_v42, 0.0  ;;  %v4281_v0 = vadd.f32 %v6625_v59, %v4210_v15 }
 0x3e6   :  { %4409 = vst.msk [vmem:[#allocation4 + $0xc0] sm:$0xff] %vm4384_vm0, %v4344_v6  ;;  %v4345_v38 = vmax.f32 %v4281_v0, 0.0 }
 0x3e8   :  { %4410 = vst.msk [vmem:[#allocation4 + $0xc8] sm:$0xff] %vm4384_vm0, %v4345_v38 }
 0x3ec   :  { %v4895_v29 = vpop.f32.mrb[80].mxu0 }
 0x3ed   :  { %4092 = vrot.lane.b32.xlu0 %v4895_v29, %s4992_s17  ;;  %v3865_v31 = vpop.f32.mrb[81].mxu0 }
 0x3ee   :  { %v4896_v7 = vpop.f32.mrb[82].mxu0 }
 0x3ef   :  { %4094 = vrot.lane.b32.xlu1 %v4896_v7, %s4992_s17  ;;  %v3868_v41 = vpop.f32.mrb[83].mxu0 }
 0x3f0   :  { %v4053_v26 = vpop.permute.xlu0 %4052 }
 0x3f1   :  { %v4215_v36 = vsel %vm4184_vm15, %v6087_v27, %v4053_v26  ;;  %4088 = vrot.lane.b32.xlu0 %v3865_v31, %s4992_s17  ;;  %v6984_v31 = vld [vmem:[#allocation14_spill] sm:$0xff] }
 0x3f2   :  { %v4286_v28 = vadd.f32 %v6625_v59, %v4215_v36  ;;  %v4055_v34 = vpop.permute.xlu1 %4054 }
 0x3f3   :  { %v4216_v33 = vsel %vm4184_vm15, %v6092_v13, %v4055_v34  ;;  %4090 = vrot.lane.b32.xlu1 %v3868_v41, %s4992_s17 }
 0x3f4   :  { %v4350_v8 = vmax.f32 %v4286_v28, 0.0  ;;  %v4287_v23 = vadd.f32 %v6625_v59, %v4216_v33  ;;  %v4049_v1 = vpop.permute.xlu0 %4048  ;;  %v6985_v33 = vld [vmem:[#allocation16_spill] sm:$0xff] }
 0x3f5   :  { %v4213_v16 = vsel %vm4184_vm15, %v6976_v5, %v4049_v1 }
 0x3f6   :  { %4415 = vst.msk [vmem:[#allocation4 + $0xf0] sm:$0xff] %vm4384_vm0, %v4350_v8  ;;  %v4351_v27 = vmax.f32 %v4287_v23, 0.0  ;;  %v4284_v17 = vadd.f32 %v6625_v59, %v4213_v16  ;;  %v4051_v11 = vpop.permute.xlu1 %4050 }
 0x3f7   :  { %v4214_v20 = vsel %vm4184_vm15, %v6977_v55, %v4051_v11 }
 0x3f8   :  { %4416 = vst.msk [vmem:[#allocation4 + $0xf8] sm:$0xff] %vm4384_vm0, %v4351_v27  ;;  %v4348_v13 = vmax.f32 %v4284_v17, 0.0  ;;  %v4285_v49 = vadd.f32 %v6625_v59, %v4214_v20  ;;  %v6986_v17 = vld [vmem:[#allocation17_spill] sm:$0xff] }
 0x3fa   :  { %4413 = vst.msk [vmem:[#allocation4 + $0xe0] sm:$0xff] %vm4384_vm0, %v4348_v13  ;;  %v4349_v45 = vmax.f32 %v4285_v49, 0.0  ;;  %v6987_v13 = vld [vmem:[#allocation19_spill] sm:$0xff] }
 0x3fc   :  { %4414 = vst.msk [vmem:[#allocation4 + $0xe8] sm:$0xff] %vm4384_vm0, %v4349_v45 }
 0x404   :  { %v4061_v25 = vpop.permute.xlu0 %4060  ;;  %v4899_v56 = vpop.f32.mrb[84].mxu0 }
 0x405   :  { %v4219_v46 = vsel %vm4184_vm15, %v6978_v52, %v4061_v25  ;;  %4100 = vrot.lane.b32.xlu0 %v4899_v56, %s4992_s17  ;;  %v3881_v19 = vpop.f32.mrb[85].mxu0  ;;  %v6988_v52 = vld [vmem:[#allocation18_spill] sm:$0xff] }
 0x406   :  { %v4290_v47 = vadd.f32 %v6625_v59, %v4219_v46  ;;  %v4063_v57 = vpop.permute.xlu1 %4062  ;;  %v4900_v9 = vpop.f32.mrb[86].mxu0 }
 0x407   :  { %v4220_v62 = vsel %vm4184_vm15, %v6979_v10, %v4063_v57  ;;  %4102 = vrot.lane.b32.xlu1 %v4900_v9, %s4992_s17  ;;  %v3884_v51 = vpop.f32.mrb[87].mxu0 }
 0x408   :  { %v4354_v4 = vmax.f32 %v4290_v47, 0.0  ;;  %v4291_v53 = vadd.f32 %v6625_v59, %v4220_v62  ;;  %v4057_v2 = vpop.permute.xlu0 %4056  ;;  %v6989_v62 = vld [vmem:[#allocation20_spill] sm:$0xff] }
 0x409   :  { %v4217_v12 = vsel %vm4184_vm15, %v6980_v60, %v4057_v2  ;;  %4096 = vrot.lane.b32.xlu0 %v3881_v19, %s4992_s17 }
 0x40a   :  { %4419 = vst.msk [vmem:[#allocation4 + $0x110] sm:$0xff] %vm4384_vm0, %v4354_v4  ;;  %v4355_v58 = vmax.f32 %v4291_v53, 0.0  ;;  %v4288_v30 = vadd.f32 %v6625_v59, %v4217_v12  ;;  %v4059_v54 = vpop.permute.xlu1 %4058 }
 0x40b   :  { %v4218_v48 = vsel %vm4184_vm15, %v6981_v61, %v4059_v54  ;;  %4098 = vrot.lane.b32.xlu1 %v3884_v51, %s4992_s17 }
 0x40c   :  { %4420 = vst.msk [vmem:[#allocation4 + $0x118] sm:$0xff] %vm4384_vm0, %v4355_v58  ;;  %v4352_v35 = vmax.f32 %v4288_v30, 0.0  ;;  %v4289_v32 = vadd.f32 %v6625_v59, %v4218_v48  ;;  %v6990_v30 = vld [vmem:[#allocation21_spill] sm:$0xff] }
 0x40e   :  { %4417 = vst.msk [vmem:[#allocation4 + $0x100] sm:$0xff] %vm4384_vm0, %v4352_v35  ;;  %v4353_v43 = vmax.f32 %v4289_v32, 0.0  ;;  %v6991_v35 = vld [vmem:[#allocation23_spill] sm:$0xff] }
 0x410   :  { %4418 = vst.msk [vmem:[#allocation4 + $0x108] sm:$0xff] %vm4384_vm0, %v4353_v43 }
 0x418   :  { %v4069_v63 = vpop.permute.xlu0 %4068 }
 0x419   :  { %v4223_v50 = vsel %vm4184_vm15, %v6982_v22, %v4069_v63 }
 0x41a   :  { %v4294_v39 = vadd.f32 %v6625_v59, %v4223_v50  ;;  %v4071_v42 = vpop.permute.xlu1 %4070  ;;  %v6992_v50 = vld [vmem:[#allocation22_spill] sm:$0xff] }
 0x41b   :  { %v4224_v15 = vsel %vm4184_vm15, %v6983_v24, %v4071_v42 }
 0x41c   :  { %v4358_v6 = vmax.f32 %v4294_v39, 0.0  ;;  %v4295_v0 = vadd.f32 %v6625_v59, %v4224_v15  ;;  %v4065_v38 = vpop.permute.xlu0 %4064  ;;  %v4903_v29 = vpop.f32.mrb[88].mxu0 }
 0x41d   :  { %v4221_v7 = vsel %vm4184_vm15, %v6984_v31, %v4065_v38  ;;  %4108 = vrot.lane.b32.xlu0 %v4903_v29, %s4992_s17  ;;  %v3897_v41 = vpop.f32.mrb[89].mxu0 }
 0x41e   :  { %4423 = vst.msk [vmem:[#allocation4 + $0x130] sm:$0xff] %vm4384_vm0, %v4358_v6  ;;  %v4359_v26 = vmax.f32 %v4295_v0, 0.0  ;;  %v4292_v36 = vadd.f32 %v6625_v59, %v4221_v7  ;;  %v4067_v28 = vpop.permute.xlu1 %4066  ;;  %v4904_v34 = vpop.f32.mrb[90].mxu0  ;;  %v6993_v6 = vld [vmem:[#allocation24_spill] sm:$0xff] }
 0x41f   :  { %v4222_v8 = vsel %vm4184_vm15, %v6985_v33, %v4067_v28  ;;  %4110 = vrot.lane.b32.xlu1 %v4904_v34, %s4992_s17  ;;  %v3900_v23 = vpop.f32.mrb[91].mxu0 }
 0x420   :  { %4424 = vst.msk [vmem:[#allocation4 + $0x138] sm:$0xff] %vm4384_vm0, %v4359_v26  ;;  %v4356_v1 = vmax.f32 %v4292_v36, 0.0  ;;  %v4293_v5 = vadd.f32 %v6625_v59, %v4222_v8 }
 0x421   :  { %4104 = vrot.lane.b32.xlu0 %v3897_v41, %s4992_s17 }
 0x422   :  { %4421 = vst.msk [vmem:[#allocation4 + $0x120] sm:$0xff] %vm4384_vm0, %v4356_v1  ;;  %v4357_v16 = vmax.f32 %v4293_v5, 0.0 }
 0x423   :  { %4106 = vrot.lane.b32.xlu1 %v3900_v23, %s4992_s17  ;;  %v6994_v23 = vld [vmem:[#allocation25_spill] sm:$0xff] }
 0x424   :  { %4422 = vst.msk [vmem:[#allocation4 + $0x128] sm:$0xff] %vm4384_vm0, %v4357_v16 }
 0x42f   :  { %v4077_v27 = vpop.permute.xlu0 %4076 }
 0x430   :  { %v4227_v11 = vsel %vm4184_vm15, %v6986_v17, %v4077_v27 }
 0x431   :  { %v4298_v55 = vadd.f32 %v6625_v59, %v4227_v11  ;;  %v4079_v20 = vpop.permute.xlu1 %4078 }
 0x432   :  { %v4228_v49 = vsel %vm4184_vm15, %v6987_v13, %v4079_v20  ;;  %v6996_v13 = vld [vmem:[#allocation27_spill] sm:$0xff] }
 0x433   :  { %v4362_v45 = vmax.f32 %v4298_v55, 0.0  ;;  %v4299_v25 = vadd.f32 %v6625_v59, %v4228_v49  ;;  %v4073_v56 = vpop.permute.xlu0 %4072 }
 0x434   :  { %v4225_v46 = vsel %vm4184_vm15, %v6988_v52, %v4073_v56  ;;  %v4907_v19 = vpop.f32.mrb[92].mxu0  ;;  %v6997_v56 = vld [vmem:[#allocation29_spill] sm:$0xff] }
 0x435   :  { %4427 = vst.msk [vmem:[#allocation4 + $0x150] sm:$0xff] %vm4384_vm0, %v4362_v45  ;;  %v4363_v47 = vmax.f32 %v4299_v25, 0.0  ;;  %v4296_v57 = vadd.f32 %v6625_v59, %v4225_v46  ;;  %v4075_v9 = vpop.permute.xlu1 %4074  ;;  %v3913_v10 = vpop.f32.mrb[93].mxu0 }
 0x436   :  { %v4226_v51 = vsel %vm4184_vm15, %v6989_v62, %v4075_v9  ;;  %4112 = vrot.lane.b32.xlu0 %v3913_v10, %s4992_s17  ;;  %v4908_v4 = vpop.f32.mrb[94].mxu0 }
 0x437   :  { %4428 = vst.msk [vmem:[#allocation4 + $0x158] sm:$0xff] %vm4384_vm0, %v4363_v47  ;;  %v4360_v53 = vmax.f32 %v4296_v57, 0.0  ;;  %v4297_v2 = vadd.f32 %v6625_v59, %v4226_v51  ;;  %v3916_v60 = vpop.f32.mrb[95].mxu0  ;;  %v6998_v57 = vld [vmem:[#allocation28_spill] sm:$0xff] }
 0x438   :  { %4114 = vrot.lane.b32.xlu1 %v3916_v60, %s4992_s17 }
 0x439   :  { %4425 = vst.msk [vmem:[#allocation4 + $0x140] sm:$0xff] %vm4384_vm0, %v4360_v53  ;;  %v4361_v12 = vmax.f32 %v4297_v2, 0.0 }
 0x43a   :  { %4116 = vrot.lane.b32.xlu0 %v4907_v19, %s4992_s17 }
 0x43b   :  { %4426 = vst.msk [vmem:[#allocation4 + $0x148] sm:$0xff] %vm4384_vm0, %v4361_v12 }
 0x43c   :  { %4118 = vrot.lane.b32.xlu1 %v4908_v4, %s4992_s17  ;;  %v6999_v4 = vld [vmem:[#allocation30_spill] sm:$0xff] }
 0x447   :  { %v4085_v58 = vpop.permute.xlu0 %4084 }
 0x448   :  { %v4231_v54 = vsel %vm4184_vm15, %v6990_v30, %v4085_v58  ;;  %v7000_v30 = vld [vmem:[#allocation31_spill] sm:$0xff] }
 0x449   :  { %v4302_v61 = vadd.f32 %v6625_v59, %v4231_v54  ;;  %v4087_v48 = vpop.permute.xlu1 %4086 }
 0x44a   :  { %v4232_v32 = vsel %vm4184_vm15, %v6991_v35, %v4087_v48  ;;  %v7001_v35 = vld [vmem:[#allocation33_spill] sm:$0xff] }
 0x44b   :  { %v4366_v43 = vmax.f32 %v4302_v61, 0.0  ;;  %v4303_v63 = vadd.f32 %v6625_v59, %v4232_v32  ;;  %v4081_v22 = vpop.permute.xlu0 %4080 }
 0x44c   :  { %v4229_v39 = vsel %vm4184_vm15, %v6992_v50, %v4081_v22  ;;  %v7002_v50 = vld [vmem:[#allocation32_spill] sm:$0xff] }
 0x44d   :  { %4431 = vst.msk [vmem:[#allocation4 + $0x170] sm:$0xff] %vm4384_vm0, %v4366_v43  ;;  %v4367_v42 = vmax.f32 %v4303_v63, 0.0  ;;  %v4300_v24 = vadd.f32 %v6625_v59, %v4229_v39  ;;  %v4083_v15 = vpop.permute.xlu1 %4082 }
 0x44e   :  { %v4230_v0 = vsel %vm4184_vm15, %v6993_v6, %v4083_v15 }
 0x44f   :  { %4432 = vst.msk [vmem:[#allocation4 + $0x178] sm:$0xff] %vm4384_vm0, %v4367_v42  ;;  %v4364_v38 = vmax.f32 %v4300_v24, 0.0  ;;  %v4301_v29 = vadd.f32 %v6625_v59, %v4230_v0 }
 0x451   :  { %4429 = vst.msk [vmem:[#allocation4 + $0x160] sm:$0xff] %vm4384_vm0, %v4364_v38  ;;  %v4365_v31 = vmax.f32 %v4301_v29, 0.0 }
 0x453   :  { %4430 = vst.msk [vmem:[#allocation4 + $0x168] sm:$0xff] %vm4384_vm0, %v4365_v31 }
 0x45f   :  { %v4093_v7 = vpop.permute.xlu0 %4092 }
 0x460   :  { %v4235_v41 = vsel %vm4184_vm15, %v6206_v21, %v4093_v7  ;;  %v6995_v21 = vld [vmem:[#allocation26_spill] sm:$0xff] }
 0x461   :  { %v4306_v26 = vadd.f32 %v6625_v59, %v4235_v41  ;;  %v4095_v36 = vpop.permute.xlu1 %4094 }
 0x462   :  { %v4236_v28 = vsel %vm4184_vm15, %v6211_v40, %v4095_v36 }
 0x463   :  { %v4370_v34 = vmax.f32 %v4306_v26, 0.0  ;;  %v4307_v33 = vadd.f32 %v6625_v59, %v4236_v28  ;;  %v4089_v8 = vpop.permute.xlu0 %4088 }
 0x464   :  { %v4233_v1 = vsel %vm4184_vm15, %v6994_v23, %v4089_v8 }
 0x465   :  { %4435 = vst.msk [vmem:[#allocation4 + $0x190] sm:$0xff] %vm4384_vm0, %v4370_v34  ;;  %v4371_v5 = vmax.f32 %v4307_v33, 0.0  ;;  %v4304_v16 = vadd.f32 %v6625_v59, %v4233_v1  ;;  %v4091_v27 = vpop.permute.xlu1 %4090 }
 0x466   :  { %v4234_v17 = vsel %vm4184_vm15, %v6995_v21, %v4091_v27 }
 0x467   :  { %4436 = vst.msk [vmem:[#allocation4 + $0x198] sm:$0xff] %vm4384_vm0, %v4371_v5  ;;  %v4368_v11 = vmax.f32 %v4304_v16, 0.0  ;;  %v4305_v40 = vadd.f32 %v6625_v59, %v4234_v17 }
 0x469   :  { %4433 = vst.msk [vmem:[#allocation4 + $0x180] sm:$0xff] %vm4384_vm0, %v4368_v11  ;;  %v4369_v55 = vmax.f32 %v4305_v40, 0.0 }
 0x46b   :  { %4434 = vst.msk [vmem:[#allocation4 + $0x188] sm:$0xff] %vm4384_vm0, %v4369_v55 }
 0x477   :  { %v4101_v20 = vpop.permute.xlu0 %4100 }
 0x478   :  { %v4239_v49 = vsel %vm4184_vm15, %v6996_v13, %v4101_v20 }
 0x479   :  { %v4310_v45 = vadd.f32 %v6625_v59, %v4239_v49  ;;  %v4103_v25 = vpop.permute.xlu1 %4102 }
 0x47a   :  { %v4240_v52 = vsel %vm4184_vm15, %v6997_v56, %v4103_v25 }
 0x47b   :  { %v4374_v46 = vmax.f32 %v4310_v45, 0.0  ;;  %v4311_v19 = vadd.f32 %v6625_v59, %v4240_v52  ;;  %v4097_v47 = vpop.permute.xlu0 %4096 }
 0x47c   :  { %v4237_v9 = vsel %vm4184_vm15, %v6998_v57, %v4097_v47 }
 0x47d   :  { %4439 = vst.msk [vmem:[#allocation4 + $0x1b0] sm:$0xff] %vm4384_vm0, %v4374_v46  ;;  %v4375_v10 = vmax.f32 %v4311_v19, 0.0  ;;  %v4308_v62 = vadd.f32 %v6625_v59, %v4237_v9  ;;  %v4099_v51 = vpop.permute.xlu1 %4098 }
 0x47e   :  { %v4238_v53 = vsel %vm4184_vm15, %v6999_v4, %v4099_v51 }
 0x47f   :  { %4440 = vst.msk [vmem:[#allocation4 + $0x1b8] sm:$0xff] %vm4384_vm0, %v4375_v10  ;;  %v4372_v2 = vmax.f32 %v4308_v62, 0.0  ;;  %v4309_v60 = vadd.f32 %v6625_v59, %v4238_v53 }
 0x481   :  { %4437 = vst.msk [vmem:[#allocation4 + $0x1a0] sm:$0xff] %vm4384_vm0, %v4372_v2  ;;  %v4373_v12 = vmax.f32 %v4309_v60, 0.0 }
 0x483   :  { %4438 = vst.msk [vmem:[#allocation4 + $0x1a8] sm:$0xff] %vm4384_vm0, %v4373_v12 }
 0x48f   :  { %v4109_v58 = vpop.permute.xlu0 %4108 }
 0x490   :  { %v4243_v54 = vsel %vm4184_vm15, %v7000_v30, %v4109_v58 }
 0x491   :  { %v4314_v61 = vadd.f32 %v6625_v59, %v4243_v54  ;;  %v4111_v48 = vpop.permute.xlu1 %4110 }
 0x492   :  { %v4244_v32 = vsel %vm4184_vm15, %v7001_v35, %v4111_v48 }
 0x493   :  { %v4378_v43 = vmax.f32 %v4314_v61, 0.0  ;;  %v4315_v63 = vadd.f32 %v6625_v59, %v4244_v32  ;;  %v4105_v22 = vpop.permute.xlu0 %4104 }
 0x494   :  { %v4241_v39 = vsel %vm4184_vm15, %v7002_v50, %v4105_v22 }
 0x495   :  { %4443 = vst.msk [vmem:[#allocation4 + $0x1d0] sm:$0xff] %vm4384_vm0, %v4378_v43  ;;  %v4379_v42 = vmax.f32 %v4315_v63, 0.0  ;;  %v4312_v24 = vadd.f32 %v6625_v59, %v4241_v39  ;;  %v4107_v15 = vpop.permute.xlu1 %4106 }
 0x496   :  { %v4242_v6 = vsel %vm4184_vm15, %v6284_v18, %v4107_v15 }
 0x497   :  { %4444 = vst.msk [vmem:[#allocation4 + $0x1d8] sm:$0xff] %vm4384_vm0, %v4379_v42  ;;  %v4376_v0 = vmax.f32 %v4312_v24, 0.0  ;;  %v4313_v38 = vadd.f32 %v6625_v59, %v4242_v6 }
 0x499   :  { %4441 = vst.msk [vmem:[#allocation4 + $0x1c0] sm:$0xff] %vm4384_vm0, %v4376_v0  ;;  %v4377_v29 = vmax.f32 %v4313_v38, 0.0 }
 0x49b   :  { %4442 = vst.msk [vmem:[#allocation4 + $0x1c8] sm:$0xff] %vm4384_vm0, %v4377_v29 }
 0x4a8   :  { %v4113_v31 = vpop.permute.xlu0 %4112 }
 0x4a9   :  { %v4245_v7 = vsel %vm4184_vm15, %v6316_v44, %v4113_v31 }
 0x4aa   :  { %v4316_v41 = vadd.f32 %v6625_v59, %v4245_v7  ;;  %v4115_v26 = vpop.permute.xlu1 %4114 }
 0x4ab   :  { %v4246_v18 = vsel %vm4184_vm15, %v6321_v14, %v4115_v26 }
 0x4ac   :  { %v4380_v36 = vmax.f32 %v4316_v41, 0.0  ;;  %v4317_v28 = vadd.f32 %v6625_v59, %v4246_v18  ;;  %v4117_v34 = vpop.permute.xlu0 %4116 }
 0x4ad   :  { %v4247_v33 = vsel %vm4184_vm15, %v6310_v37, %v4117_v34 }
 0x4ae   :  { %4445 = vst.msk [vmem:[#allocation4 + $0x1e0] sm:$0xff] %vm4384_vm0, %v4380_v36  ;;  %v4381_v8 = vmax.f32 %v4317_v28, 0.0  ;;  %v4318_v23 = vadd.f32 %v6625_v59, %v4247_v33  ;;  %v4119_v1 = vpop.permute.xlu1 %4118 }
 0x4af   :  { %v4248_v44 = vsel %vm4184_vm15, %v6319_v3, %v4119_v1 }
 0x4b0   :  { %4446 = vst.msk [vmem:[#allocation4 + $0x1e8] sm:$0xff] %vm4384_vm0, %v4381_v8  ;;  %v4382_v14 = vmax.f32 %v4318_v23, 0.0  ;;  %v4319_v5 = vadd.f32 %v6625_v59, %v4248_v44 }
 0x4b2   :  { %4447 = vst.msk [vmem:[#allocation4 + $0x1f0] sm:$0xff] %vm4384_vm0, %v4382_v14  ;;  %v4383_v16 = vmax.f32 %v4319_v5, 0.0 }
 0x4b4   :  { %4448 = vst.msk [vmem:[#allocation4 + $0x1f8] sm:$0xff] %vm4384_vm0, %v4383_v16 }
 0x4b5   :  { %4974 = shalt.err (!%p4971_p4)
}
 0x4b6   :  { %s4975_s12 = scalar_lea.hbm %s6948_s6, 8192 }
 0x4b7   :  { %p4976_p5 = scmp.ne.s32.totalorder %s6948_s6, %s4975_s12  ;;  %p4979_p6 = scmp.lt.u32.totalorder %s4975_s12, %s6948_s6 }
 0x4b9   :  { %p4981_p7 = pnand %p4979_p6, %p4976_p5 }
 0x4bb   :  { %4984 = shalt.err (!%p4981_p7)
}
 0x4bc   :  { %s4997_s15 = smov 128  }
 0x4bd   :  { %4460 = dma.vmem_to_hbm [thread:$0]  %s4455_s7, 8192, %s6948_s6, [#allocation5], %s4997_s15, %s4997_s15, %s4988_s10  }
 0x4be   :  { %4985 = dma.done.wait [#allocation5], 8192  }
 0x4bf   :  { %4986 = vsyncadd [#allocation5], 4294959104 }
 0x4c0   :  { %4464 = vsyncpa [#allocation5], 1 }

</bundles_post_ra>
